<compile_context>
chip_gen: v5e
topology: v5e:2x2
jax: 0.10.0
libtpu: 0.0.40
codegen_flags: <defaults>
</compile_context>

<pallas_src>
import jax
import jax.numpy as jnp
from jax import lax
from jax.experimental import pallas as pl
from jax.experimental.pallas import tpu as pltpu

# ---------------- small, ConvE-consistent configuration ---------------------
NUM_ENTITIES = 128          # lane-dense output (multiple of 128)
NUM_RELATIONS = 128
EMBEDDING_DIM = 32
SHAPE = (4, 8)              # H * W == EMBEDDING_DIM
OUTPUT_CHANNELS = 8
BATCH = 512                 # grid of 4 steps at TB=128 (>=2 per core on v7x)
TB = 128                    # batch tile: fills the MXU M dimension
BN_EPS = 1e-5

H, W = SHAPE
HH = 2 * H                  # stacked head+relation image height
P = HH * W                  # conv spatial positions (p = h*W + w) == 64
LANES = 2 * P               # duplicated image width == 128 (one full vreg row)
CP = OUTPUT_CHANNELS // 2   # channel pairs
F2 = OUTPUT_CHANNELS * P    # flattened conv output width (NCHW flatten) == 512

# flat-index shift of tap k = kh*3 + kw (3x3, pad 1):  dh*W + dw
SHIFTS = tuple((kh - 1) * W + (kw - 1) for kh in range(3) for kw in range(3))


# ------------------------------- kernel -------------------------------------
def conve_kernel(img_ref, coeff_ref, bias1_ref, wfc_ref, bias2_ref, entT_ref,
                 out_ref):
    # img_ref   : (TB, 128)  image duplicated along lanes (lanes 64..127 == 0..63)
    # coeff_ref : (CP*9, 128) per-pair tap weights, zero-pad masks folded in
    # bias1_ref : (CP, 128)   folded bn0-shift/conv-bias/bn1 per pair
    # wfc_ref   : (F2, D)     fc weight (rows in NCHW feature order) * bn2 scale
    # bias2_ref : (1, D)      folded fc bias + bn2 shift
    # entT_ref  : (D, E)      entity embedding matrix, transposed
    img = img_ref[...]                                            # (TB, 128)

    z = None
    for cp in range(CP):
        base = cp * 9
        # Center tap (shift 0) carries the folded bias -> no separate bias pass.
        acc = bias1_ref[cp:cp + 1, :] + coeff_ref[base + 4:base + 5, :] * img
        for k, s in enumerate(SHIFTS):
            if s == 0:
                continue
            # Roll rebuilds tap k from the lane-duplicated image; out-of-bounds
            # (zero-padded) positions are killed by the zero coefficients.
            tap = pltpu.roll(img, shift=(-s) % LANES, axis=1)     # XLU
            acc = acc + coeff_ref[base + k:base + k + 1, :] * tap  # VPU FMA
        acc = jnp.maximum(acc, 0.0)                               # bn1 + relu
        # Fused fc chunk: K=128 per MXU call (one pair of channels).
        part = jnp.dot(acc, wfc_ref[cp * LANES:(cp + 1) * LANES, :],
                       preferred_element_type=jnp.float32)
        z = part if z is None else z + part

    z = jnp.maximum(z + bias2_ref[...], 0.0)                      # bn2 + relu
    # score against all entity embeddings: (TB, D) @ (D, E), lane-dense store
    out_ref[...] = jnp.dot(z, entT_ref[...],
                           preferred_element_type=jnp.float32)


# ------------------------------ glue / wrapper -------------------------------
def _bn_affine(g, b, m, v):
    s = g * lax.rsqrt(v + BN_EPS)
    return s, b - m * s


def _tap_masks():
    """mask[k, p] = 1 if tap k at flat position p is in-bounds (zero-pad=1)."""
    hh = jnp.arange(P) // W
    ww = jnp.arange(P) % W
    masks = []
    for kh in range(3):
        for kw in range(3):
            dh, dw = kh - 1, kw - 1
            ok = ((hh + dh >= 0) & (hh + dh < HH) &
                  (ww + dw >= 0) & (ww + dw < W))
            masks.append(ok.astype(jnp.float32))
    return jnp.stack(masks, axis=0)                               # (9, P)


def fold_params(params):
    """Fold bn0/bn1/bn2 + biases into per-pair conv coefficient planes, one
    bias per stage, and the fc weight.  Run once per parameter set."""
    s0, t0 = _bn_affine(params["bn0_g"], params["bn0_b"],
                        params["bn0_m"], params["bn0_v"])
    s1, t1 = _bn_affine(params["bn1_g"], params["bn1_b"],
                        params["bn1_m"], params["bn1_v"])
    s2, t2 = _bn_affine(params["bn2_g"], params["bn2_b"],
                        params["bn2_m"], params["bn2_v"])
    s0 = s0[0]
    t0 = t0[0]

    conv_w = params["conv_w"].reshape(OUTPUT_CHANNELS, 9)         # (C, 9)
    wk = (s1[:, None] * s0) * conv_w                              # (C, 9)

    mask = _tap_masks()                                           # (9, P)
    # bn0 shift only contributes where the tap is in-bounds (zero padding).
    msum = jnp.einsum("ck,kp->cp", conv_w, mask)                  # (C, P)
    bias1_c = (s1[:, None] * (t0 * msum + params["conv_b"][:, None])
               + t1[:, None])                                     # (C, P)

    # Channel-pair layout: lanes 0..63 -> channel 2cp, lanes 64..127 -> 2cp+1.
    wkm = wk[:, :, None] * mask[None, :, :]                       # (C, 9, P)
    coeff = jnp.concatenate([wkm[0::2], wkm[1::2]], axis=-1)      # (CP, 9, 2P)
    coeff = coeff.reshape(CP * 9, LANES).astype(jnp.float32)
    bias1 = jnp.concatenate([bias1_c[0::2], bias1_c[1::2]],
                            axis=-1).astype(jnp.float32)          # (CP, 2P)

    wfc = (params["fc_w"].T * s2[None, :]).astype(jnp.float32)    # (F2, D)
    bias2 = (s2 * params["fc_b"] + t2).reshape(1, EMBEDDING_DIM)
    bias2 = bias2.astype(jnp.float32)
    entT = params["ent_w"].T.astype(jnp.float32)                  # (D, E)
    return dict(coeff=coeff, bias1=bias1, wfc=wfc, bias2=bias2, entT=entT)


def conve_pallas(heads, relations, params, folded=None):
    if folded is None:
        folded = fold_params(params)
    B = heads.shape[0]

    # embedding lookup + stacking (glue, tiny); image flattened h-major (NCHW)
    he = params["ent_w"][heads].reshape(B, H, W)
    re = params["rel_w"][relations].reshape(B, H, W)
    img = jnp.concatenate([he, re], axis=1).reshape(B, P).astype(jnp.float32)
    img_dup = jnp.concatenate([img, img], axis=1)                 # (B, 128)

    # pad batch to a multiple of the tile; padded rows are sliced off below
    b_pad = ((B + TB - 1) // TB) * TB
    if b_pad != B:
        img_dup = jnp.pad(img_dup, ((0, b_pad - B), (0, 0)))

    out = pl.pallas_call(
        conve_kernel,
        out_shape=jax.ShapeDtypeStruct((b_pad, NUM_ENTITIES), jnp.float32),
        grid_spec=pltpu.PrefetchScalarGridSpec(
            num_scalar_prefetch=0,
            grid=(b_pad // TB,),
            in_specs=[
                pl.BlockSpec((TB, LANES), lambda i: (i, 0)),               # img
                pl.BlockSpec((CP * 9, LANES), lambda i: (0, 0)),           # coeff
                pl.BlockSpec((CP, LANES), lambda i: (0, 0)),               # bias1
                pl.BlockSpec((F2, EMBEDDING_DIM), lambda i: (0, 0)),       # wfc
                pl.BlockSpec((1, EMBEDDING_DIM), lambda i: (0, 0)),        # bias2
                pl.BlockSpec((EMBEDDING_DIM, NUM_ENTITIES),
                             lambda i: (0, 0)),                            # entT
            ],
            out_specs=pl.BlockSpec((TB, NUM_ENTITIES), lambda i: (i, 0)),
        ),
        compiler_params=pltpu.CompilerParams(
            dimension_semantics=("parallel",)),
    )(img_dup, folded["coeff"], folded["bias1"], folded["wfc"],
      folded["bias2"], folded["entT"])
    return out[:B]


# --------------------------- deterministic params ----------------------------
def init_params(key):
    ks = jax.random.split(key, 7)

    def xavier(k, shape):
        a = (6.0 / (shape[0] + shape[1])) ** 0.5
        return jax.random.uniform(k, shape, jnp.float32, -a, a)

    ent_w = xavier(ks[0], (NUM_ENTITIES, EMBEDDING_DIM))
    rel_w = xavier(ks[1], (NUM_RELATIONS, EMBEDDING_DIM))
    conv_w = jax.random.uniform(ks[2], (OUTPUT_CHANNELS, 1, 3, 3),
                                jnp.float32, -1.0 / 3, 1.0 / 3)
    conv_b = jax.random.uniform(ks[3], (OUTPUT_CHANNELS,),
                                jnp.float32, -1.0 / 3, 1.0 / 3)
    bound = 1.0 / (F2 ** 0.5)
    fc_w = jax.random.uniform(ks[4], (EMBEDDING_DIM, F2),
                              jnp.float32, -bound, bound)
    fc_b = jax.random.uniform(ks[5], (EMBEDDING_DIM,),
                              jnp.float32, -bound, bound)

    def bn(keys, n):
        g = 1.0 + 0.1 * jax.random.normal(keys[0], (n,), jnp.float32)
        b = 0.1 * jax.random.normal(keys[1], (n,), jnp.float32)
        m = 0.05 * jax.random.normal(keys[2], (n,), jnp.float32)
        v = 1.0 + 0.2 * jax.random.uniform(keys[3], (n,), jnp.float32)
        return g, b, m, v

    kbn = jax.random.split(ks[6], 12)
    bn0_g, bn0_b, bn0_m, bn0_v = bn(kbn[0:4], 1)
    bn1_g, bn1_b, bn1_m, bn1_v = bn(kbn[4:8], OUTPUT_CHANNELS)
    bn2_g, bn2_b, bn2_m, bn2_v = bn(kbn[8:12], EMBEDDING_DIM)

    return dict(ent_w=ent_w, rel_w=rel_w, conv_w=conv_w, conv_b=conv_b,
                fc_w=fc_w, fc_b=fc_b,
                bn0_g=bn0_g, bn0_b=bn0_b, bn0_m=bn0_m, bn0_v=bn0_v,
                bn1_g=bn1_g, bn1_b=bn1_b, bn1_m=bn1_m, bn1_v=bn1_v,
                bn2_g=bn2_g, bn2_b=bn2_b, bn2_m=bn2_m, bn2_v=bn2_v)


# ---------------------------- pure-JAX reference -----------------------------
def conve_reference(heads, relations, params):
    B = heads.shape[0]
    ent_w = params["ent_w"]
    he = ent_w[heads].reshape(B, 1, H, W)
    re = params["rel_w"][relations].reshape(B, 1, H, W)
    x = jnp.concatenate([he, re], axis=2)                     # (B,1,2H,W) NCHW

    def bn(x, g, b, m, v, shp):
        return ((x - m.reshape(shp)) * lax.rsqrt(v.reshape(shp) + BN_EPS)
                * g.reshape(shp) + b.reshape(shp))

    x = bn(x, params["bn0_g"], params["bn0_b"], params["bn0_m"],
           params["bn0_v"], (1, 1, 1, 1))
    x = lax.conv_general_dilated(
        x, params["conv_w"], window_strides=(1, 1), padding="SAME",
        dimension_numbers=("NCHW", "OIHW", "NCHW"))
    x = x + params["conv_b"].reshape(1, OUTPUT_CHANNELS, 1, 1)
    x = bn(x, params["bn1_g"], params["bn1_b"], params["bn1_m"],
           params["bn1_v"], (1, OUTPUT_CHANNELS, 1, 1))
    x = jnp.maximum(x, 0.0)
    x = x.reshape(B, -1)
    x = x @ params["fc_w"].T + params["fc_b"]
    x = bn(x, params["bn2_g"], params["bn2_b"], params["bn2_m"],
           params["bn2_v"], (1, EMBEDDING_DIM))
    x = jnp.maximum(x, 0.0)
    return x @ ent_w.T


# ----------------------------------- main ------------------------------------
if __name__ == "__main__":
    key = jax.random.PRNGKey(0)
    kp, kh, kr = jax.random.split(key, 3)
    params = init_params(kp)
    heads = jax.random.randint(kh, (BATCH,), 0, NUM_ENTITIES)
    relations = jax.random.randint(kr, (BATCH,), 0, NUM_RELATIONS)

    # TODO(synk): dropout is identity and BatchNorm uses folded running stats
    # (inference only); train-mode dropout / batch statistics not implemented.
    folded = fold_params(params)          # once per parameter set
    run = jax.jit(conve_pallas)
    out = run(heads, relations, params, folded)
    jax.block_until_ready(out)
    assert out.shape == (BATCH, NUM_ENTITIES)

    ref = conve_reference(heads, relations, params)
    rel_err = float(jnp.max(jnp.abs(out - ref)) /
                    (jnp.max(jnp.abs(ref)) + 1e-12))
    assert rel_err < 1e-4, f"mismatch vs reference, rel_err={rel_err}"
    print("KERNEL_OK")
</pallas_src>

<mosaic_0001>
module attributes {stable_mosaic.version = 11 : i64} {
  func.func @conve_kernel(%arg0: i32, %arg1: memref<128x128xf32, #tpu.memory_space<vmem>>, %arg2: memref<36x128xf32, #tpu.memory_space<vmem>>, %arg3: memref<4x128xf32, #tpu.memory_space<vmem>>, %arg4: memref<512x32xf32, #tpu.memory_space<vmem>>, %arg5: memref<1x32xf32, #tpu.memory_space<vmem>>, %arg6: memref<32x128xf32, #tpu.memory_space<vmem>>, %arg7: memref<128x128xf32, #tpu.memory_space<vmem>>) attributes {dimension_semantics = [#tpu.dimension_semantics<parallel>], iteration_bounds = array<i64: 4>, scalar_prefetch = 0 : i64, scratch_operands = 0 : i64, tpu.core_type = #tpu.core_type<tc>, window_params = [{transform_indices = @transform_0, window_bounds = array<i64: 128, 128>}, {pipeline_mode = #tpu.pipeline_mode<synchronous>, transform_indices = @transform_1, window_bounds = array<i64: 36, 128>}, {pipeline_mode = #tpu.pipeline_mode<synchronous>, transform_indices = @transform_2, window_bounds = array<i64: 4, 128>}, {pipeline_mode = #tpu.pipeline_mode<synchronous>, transform_indices = @transform_3, window_bounds = array<i64: 512, 32>}, {pipeline_mode = #tpu.pipeline_mode<synchronous>, transform_indices = @transform_4, window_bounds = array<i64: 1, 32>}, {pipeline_mode = #tpu.pipeline_mode<synchronous>, transform_indices = @transform_5, window_bounds = array<i64: 32, 128>}, {transform_indices = @transform_6, window_bounds = array<i64: 128, 128>}]} {
    %c0 = arith.constant 0 : index
    %c0_0 = arith.constant 0 : index
    %0 = vector.load %arg1[%c0, %c0_0] : memref<128x128xf32, #tpu.memory_space<vmem>>, vector<128x128xf32>
    %c0_1 = arith.constant 0 : index
    %c0_2 = arith.constant 0 : index
    %1 = vector.load %arg3[%c0_1, %c0_2] : memref<4x128xf32, #tpu.memory_space<vmem>>, vector<1x128xf32>
    %c4 = arith.constant 4 : index
    %c0_3 = arith.constant 0 : index
    %2 = vector.load %arg2[%c4, %c0_3] : memref<36x128xf32, #tpu.memory_space<vmem>>, vector<1x128xf32>
    %3 = vector.broadcast %2 : vector<1x128xf32> to vector<128x128xf32>
    %4 = arith.mulf %3, %0 : vector<128x128xf32>
    %5 = vector.broadcast %1 : vector<1x128xf32> to vector<128x128xf32>
    %6 = arith.addf %5, %4 : vector<128x128xf32>
    %c9_i32 = arith.constant 9 : i32
    %7 = tpu.dynamic_rotate %0 by %c9_i32 dim 1 : vector<128x128xf32>, i32 -> vector<128x128xf32>
    %c0_4 = arith.constant 0 : index
    %c0_5 = arith.constant 0 : index
    %8 = vector.load %arg2[%c0_4, %c0_5] : memref<36x128xf32, #tpu.memory_space<vmem>>, vector<1x128xf32>
    %9 = vector.broadcast %8 : vector<1x128xf32> to vector<128x128xf32>
    %10 = arith.mulf %9, %7 : vector<128x128xf32>
    %11 = arith.addf %6, %10 : vector<128x128xf32>
    %c8_i32 = arith.constant 8 : i32
    %12 = tpu.dynamic_rotate %0 by %c8_i32 dim 1 : vector<128x128xf32>, i32 -> vector<128x128xf32>
    %c1 = arith.constant 1 : index
    %c0_6 = arith.constant 0 : index
    %13 = vector.load %arg2[%c1, %c0_6] : memref<36x128xf32, #tpu.memory_space<vmem>>, vector<1x128xf32>
    %14 = vector.broadcast %13 : vector<1x128xf32> to vector<128x128xf32>
    %15 = arith.mulf %14, %12 : vector<128x128xf32>
    %16 = arith.addf %11, %15 : vector<128x128xf32>
    %c7_i32 = arith.constant 7 : i32
    %17 = tpu.dynamic_rotate %0 by %c7_i32 dim 1 : vector<128x128xf32>, i32 -> vector<128x128xf32>
    %c2 = arith.constant 2 : index
    %c0_7 = arith.constant 0 : index
    %18 = vector.load %arg2[%c2, %c0_7] : memref<36x128xf32, #tpu.memory_space<vmem>>, vector<1x128xf32>
    %19 = vector.broadcast %18 : vector<1x128xf32> to vector<128x128xf32>
    %20 = arith.mulf %19, %17 : vector<128x128xf32>
    %21 = arith.addf %16, %20 : vector<128x128xf32>
    %c1_i32 = arith.constant 1 : i32
    %22 = tpu.dynamic_rotate %0 by %c1_i32 dim 1 : vector<128x128xf32>, i32 -> vector<128x128xf32>
    %c3 = arith.constant 3 : index
    %c0_8 = arith.constant 0 : index
    %23 = vector.load %arg2[%c3, %c0_8] : memref<36x128xf32, #tpu.memory_space<vmem>>, vector<1x128xf32>
    %24 = vector.broadcast %23 : vector<1x128xf32> to vector<128x128xf32>
    %25 = arith.mulf %24, %22 : vector<128x128xf32>
    %26 = arith.addf %21, %25 : vector<128x128xf32>
    %c127_i32 = arith.constant 127 : i32
    %27 = tpu.dynamic_rotate %0 by %c127_i32 dim 1 : vector<128x128xf32>, i32 -> vector<128x128xf32>
    %c5 = arith.constant 5 : index
    %c0_9 = arith.constant 0 : index
    %28 = vector.load %arg2[%c5, %c0_9] : memref<36x128xf32, #tpu.memory_space<vmem>>, vector<1x128xf32>
    %29 = vector.broadcast %28 : vector<1x128xf32> to vector<128x128xf32>
    %30 = arith.mulf %29, %27 : vector<128x128xf32>
    %31 = arith.addf %26, %30 : vector<128x128xf32>
    %c121_i32 = arith.constant 121 : i32
    %32 = tpu.dynamic_rotate %0 by %c121_i32 dim 1 : vector<128x128xf32>, i32 -> vector<128x128xf32>
    %c6 = arith.constant 6 : index
    %c0_10 = arith.constant 0 : index
    %33 = vector.load %arg2[%c6, %c0_10] : memref<36x128xf32, #tpu.memory_space<vmem>>, vector<1x128xf32>
    %34 = vector.broadcast %33 : vector<1x128xf32> to vector<128x128xf32>
    %35 = arith.mulf %34, %32 : vector<128x128xf32>
    %36 = arith.addf %31, %35 : vector<128x128xf32>
    %c120_i32 = arith.constant 120 : i32
    %37 = tpu.dynamic_rotate %0 by %c120_i32 dim 1 : vector<128x128xf32>, i32 -> vector<128x128xf32>
    %c7 = arith.constant 7 : index
    %c0_11 = arith.constant 0 : index
    %38 = vector.load %arg2[%c7, %c0_11] : memref<36x128xf32, #tpu.memory_space<vmem>>, vector<1x128xf32>
    %39 = vector.broadcast %38 : vector<1x128xf32> to vector<128x128xf32>
    %40 = arith.mulf %39, %37 : vector<128x128xf32>
    %41 = arith.addf %36, %40 : vector<128x128xf32>
    %c119_i32 = arith.constant 119 : i32
    %42 = tpu.dynamic_rotate %0 by %c119_i32 dim 1 : vector<128x128xf32>, i32 -> vector<128x128xf32>
    %c8 = arith.constant 8 : index
    %c0_12 = arith.constant 0 : index
    %43 = vector.load %arg2[%c8, %c0_12] : memref<36x128xf32, #tpu.memory_space<vmem>>, vector<1x128xf32>
    %44 = vector.broadcast %43 : vector<1x128xf32> to vector<128x128xf32>
    %45 = arith.mulf %44, %42 : vector<128x128xf32>
    %46 = arith.addf %41, %45 : vector<128x128xf32>
    %cst = arith.constant 0.000000e+00 : f32
    %47 = vector.broadcast %cst : f32 to vector<128x128xf32>
    %48 = arith.maximumf %46, %47 : vector<128x128xf32>
    %c0_13 = arith.constant 0 : index
    %c0_14 = arith.constant 0 : index
    %49 = vector.load %arg4[%c0_13, %c0_14] : memref<512x32xf32, #tpu.memory_space<vmem>>, vector<128x32xf32>
    %cst_15 = arith.constant dense<0.000000e+00> : vector<128x32xf32>
    %50 = tpu.matmul %48, %49, %cst_15 {dimension_numbers = #tpu.dot_dimension_numbers<[1], [0], [0], [1], [0, 0, 1, 1], [], []>} : vector<128x128xf32>, vector<128x32xf32>, vector<128x32xf32> -> vector<128x32xf32>
    %c1_16 = arith.constant 1 : index
    %c0_17 = arith.constant 0 : index
    %51 = vector.load %arg3[%c1_16, %c0_17] : memref<4x128xf32, #tpu.memory_space<vmem>>, vector<1x128xf32>
    %c13 = arith.constant 13 : index
    %c0_18 = arith.constant 0 : index
    %52 = vector.load %arg2[%c13, %c0_18] : memref<36x128xf32, #tpu.memory_space<vmem>>, vector<1x128xf32>
    %53 = vector.broadcast %52 : vector<1x128xf32> to vector<128x128xf32>
    %54 = arith.mulf %53, %0 : vector<128x128xf32>
    %55 = vector.broadcast %51 : vector<1x128xf32> to vector<128x128xf32>
    %56 = arith.addf %55, %54 : vector<128x128xf32>
    %c9_i32_19 = arith.constant 9 : i32
    %57 = tpu.dynamic_rotate %0 by %c9_i32_19 dim 1 : vector<128x128xf32>, i32 -> vector<128x128xf32>
    %c9 = arith.constant 9 : index
    %c0_20 = arith.constant 0 : index
    %58 = vector.load %arg2[%c9, %c0_20] : memref<36x128xf32, #tpu.memory_space<vmem>>, vector<1x128xf32>
    %59 = vector.broadcast %58 : vector<1x128xf32> to vector<128x128xf32>
    %60 = arith.mulf %59, %57 : vector<128x128xf32>
    %61 = arith.addf %56, %60 : vector<128x128xf32>
    %c8_i32_21 = arith.constant 8 : i32
    %62 = tpu.dynamic_rotate %0 by %c8_i32_21 dim 1 : vector<128x128xf32>, i32 -> vector<128x128xf32>
    %c10 = arith.constant 10 : index
    %c0_22 = arith.constant 0 : index
    %63 = vector.load %arg2[%c10, %c0_22] : memref<36x128xf32, #tpu.memory_space<vmem>>, vector<1x128xf32>
    %64 = vector.broadcast %63 : vector<1x128xf32> to vector<128x128xf32>
    %65 = arith.mulf %64, %62 : vector<128x128xf32>
    %66 = arith.addf %61, %65 : vector<128x128xf32>
    %c7_i32_23 = arith.constant 7 : i32
    %67 = tpu.dynamic_rotate %0 by %c7_i32_23 dim 1 : vector<128x128xf32>, i32 -> vector<128x128xf32>
    %c11 = arith.constant 11 : index
    %c0_24 = arith.constant 0 : index
    %68 = vector.load %arg2[%c11, %c0_24] : memref<36x128xf32, #tpu.memory_space<vmem>>, vector<1x128xf32>
    %69 = vector.broadcast %68 : vector<1x128xf32> to vector<128x128xf32>
    %70 = arith.mulf %69, %67 : vector<128x128xf32>
    %71 = arith.addf %66, %70 : vector<128x128xf32>
    %c1_i32_25 = arith.constant 1 : i32
    %72 = tpu.dynamic_rotate %0 by %c1_i32_25 dim 1 : vector<128x128xf32>, i32 -> vector<128x128xf32>
    %c12 = arith.constant 12 : index
    %c0_26 = arith.constant 0 : index
    %73 = vector.load %arg2[%c12, %c0_26] : memref<36x128xf32, #tpu.memory_space<vmem>>, vector<1x128xf32>
    %74 = vector.broadcast %73 : vector<1x128xf32> to vector<128x128xf32>
    %75 = arith.mulf %74, %72 : vector<128x128xf32>
    %76 = arith.addf %71, %75 : vector<128x128xf32>
    %c127_i32_27 = arith.constant 127 : i32
    %77 = tpu.dynamic_rotate %0 by %c127_i32_27 dim 1 : vector<128x128xf32>, i32 -> vector<128x128xf32>
    %c14 = arith.constant 14 : index
    %c0_28 = arith.constant 0 : index
    %78 = vector.load %arg2[%c14, %c0_28] : memref<36x128xf32, #tpu.memory_space<vmem>>, vector<1x128xf32>
    %79 = vector.broadcast %78 : vector<1x128xf32> to vector<128x128xf32>
    %80 = arith.mulf %79, %77 : vector<128x128xf32>
    %81 = arith.addf %76, %80 : vector<128x128xf32>
    %c121_i32_29 = arith.constant 121 : i32
    %82 = tpu.dynamic_rotate %0 by %c121_i32_29 dim 1 : vector<128x128xf32>, i32 -> vector<128x128xf32>
    %c15 = arith.constant 15 : index
    %c0_30 = arith.constant 0 : index
    %83 = vector.load %arg2[%c15, %c0_30] : memref<36x128xf32, #tpu.memory_space<vmem>>, vector<1x128xf32>
    %84 = vector.broadcast %83 : vector<1x128xf32> to vector<128x128xf32>
    %85 = arith.mulf %84, %82 : vector<128x128xf32>
    %86 = arith.addf %81, %85 : vector<128x128xf32>
    %c120_i32_31 = arith.constant 120 : i32
    %87 = tpu.dynamic_rotate %0 by %c120_i32_31 dim 1 : vector<128x128xf32>, i32 -> vector<128x128xf32>
    %c16 = arith.constant 16 : index
    %c0_32 = arith.constant 0 : index
    %88 = vector.load %arg2[%c16, %c0_32] : memref<36x128xf32, #tpu.memory_space<vmem>>, vector<1x128xf32>
    %89 = vector.broadcast %88 : vector<1x128xf32> to vector<128x128xf32>
    %90 = arith.mulf %89, %87 : vector<128x128xf32>
    %91 = arith.addf %86, %90 : vector<128x128xf32>
    %c119_i32_33 = arith.constant 119 : i32
    %92 = tpu.dynamic_rotate %0 by %c119_i32_33 dim 1 : vector<128x128xf32>, i32 -> vector<128x128xf32>
    %c17 = arith.constant 17 : index
    %c0_34 = arith.constant 0 : index
    %93 = vector.load %arg2[%c17, %c0_34] : memref<36x128xf32, #tpu.memory_space<vmem>>, vector<1x128xf32>
    %94 = vector.broadcast %93 : vector<1x128xf32> to vector<128x128xf32>
    %95 = arith.mulf %94, %92 : vector<128x128xf32>
    %96 = arith.addf %91, %95 : vector<128x128xf32>
    %cst_35 = arith.constant 0.000000e+00 : f32
    %97 = vector.broadcast %cst_35 : f32 to vector<128x128xf32>
    %98 = arith.maximumf %96, %97 : vector<128x128xf32>
    %c128 = arith.constant 128 : index
    %c0_36 = arith.constant 0 : index
    %99 = vector.load %arg4[%c128, %c0_36] : memref<512x32xf32, #tpu.memory_space<vmem>>, vector<128x32xf32>
    %cst_37 = arith.constant dense<0.000000e+00> : vector<128x32xf32>
    %100 = tpu.matmul %98, %99, %cst_37 {dimension_numbers = #tpu.dot_dimension_numbers<[1], [0], [0], [1], [0, 0, 1, 1], [], []>} : vector<128x128xf32>, vector<128x32xf32>, vector<128x32xf32> -> vector<128x32xf32>
    %101 = arith.addf %50, %100 : vector<128x32xf32>
    %c2_38 = arith.constant 2 : index
    %c0_39 = arith.constant 0 : index
    %102 = vector.load %arg3[%c2_38, %c0_39] : memref<4x128xf32, #tpu.memory_space<vmem>>, vector<1x128xf32>
    %c22 = arith.constant 22 : index
    %c0_40 = arith.constant 0 : index
    %103 = vector.load %arg2[%c22, %c0_40] : memref<36x128xf32, #tpu.memory_space<vmem>>, vector<1x128xf32>
    %104 = vector.broadcast %103 : vector<1x128xf32> to vector<128x128xf32>
    %105 = arith.mulf %104, %0 : vector<128x128xf32>
    %106 = vector.broadcast %102 : vector<1x128xf32> to vector<128x128xf32>
    %107 = arith.addf %106, %105 : vector<128x128xf32>
    %c9_i32_41 = arith.constant 9 : i32
    %108 = tpu.dynamic_rotate %0 by %c9_i32_41 dim 1 : vector<128x128xf32>, i32 -> vector<128x128xf32>
    %c18 = arith.constant 18 : index
    %c0_42 = arith.constant 0 : index
    %109 = vector.load %arg2[%c18, %c0_42] : memref<36x128xf32, #tpu.memory_space<vmem>>, vector<1x128xf32>
    %110 = vector.broadcast %109 : vector<1x128xf32> to vector<128x128xf32>
    %111 = arith.mulf %110, %108 : vector<128x128xf32>
    %112 = arith.addf %107, %111 : vector<128x128xf32>
    %c8_i32_43 = arith.constant 8 : i32
    %113 = tpu.dynamic_rotate %0 by %c8_i32_43 dim 1 : vector<128x128xf32>, i32 -> vector<128x128xf32>
    %c19 = arith.constant 19 : index
    %c0_44 = arith.constant 0 : index
    %114 = vector.load %arg2[%c19, %c0_44] : memref<36x128xf32, #tpu.memory_space<vmem>>, vector<1x128xf32>
    %115 = vector.broadcast %114 : vector<1x128xf32> to vector<128x128xf32>
    %116 = arith.mulf %115, %113 : vector<128x128xf32>
    %117 = arith.addf %112, %116 : vector<128x128xf32>
    %c7_i32_45 = arith.constant 7 : i32
    %118 = tpu.dynamic_rotate %0 by %c7_i32_45 dim 1 : vector<128x128xf32>, i32 -> vector<128x128xf32>
    %c20 = arith.constant 20 : index
    %c0_46 = arith.constant 0 : index
    %119 = vector.load %arg2[%c20, %c0_46] : memref<36x128xf32, #tpu.memory_space<vmem>>, vector<1x128xf32>
    %120 = vector.broadcast %119 : vector<1x128xf32> to vector<128x128xf32>
    %121 = arith.mulf %120, %118 : vector<128x128xf32>
    %122 = arith.addf %117, %121 : vector<128x128xf32>
    %c1_i32_47 = arith.constant 1 : i32
    %123 = tpu.dynamic_rotate %0 by %c1_i32_47 dim 1 : vector<128x128xf32>, i32 -> vector<128x128xf32>
    %c21 = arith.constant 21 : index
    %c0_48 = arith.constant 0 : index
    %124 = vector.load %arg2[%c21, %c0_48] : memref<36x128xf32, #tpu.memory_space<vmem>>, vector<1x128xf32>
    %125 = vector.broadcast %124 : vector<1x128xf32> to vector<128x128xf32>
    %126 = arith.mulf %125, %123 : vector<128x128xf32>
    %127 = arith.addf %122, %126 : vector<128x128xf32>
    %c127_i32_49 = arith.constant 127 : i32
    %128 = tpu.dynamic_rotate %0 by %c127_i32_49 dim 1 : vector<128x128xf32>, i32 -> vector<128x128xf32>
    %c23 = arith.constant 23 : index
    %c0_50 = arith.constant 0 : index
    %129 = vector.load %arg2[%c23, %c0_50] : memref<36x128xf32, #tpu.memory_space<vmem>>, vector<1x128xf32>
    %130 = vector.broadcast %129 : vector<1x128xf32> to vector<128x128xf32>
    %131 = arith.mulf %130, %128 : vector<128x128xf32>
    %132 = arith.addf %127, %131 : vector<128x128xf32>
    %c121_i32_51 = arith.constant 121 : i32
    %133 = tpu.dynamic_rotate %0 by %c121_i32_51 dim 1 : vector<128x128xf32>, i32 -> vector<128x128xf32>
    %c24 = arith.constant 24 : index
    %c0_52 = arith.constant 0 : index
    %134 = vector.load %arg2[%c24, %c0_52] : memref<36x128xf32, #tpu.memory_space<vmem>>, vector<1x128xf32>
    %135 = vector.broadcast %134 : vector<1x128xf32> to vector<128x128xf32>
    %136 = arith.mulf %135, %133 : vector<128x128xf32>
    %137 = arith.addf %132, %136 : vector<128x128xf32>
    %c120_i32_53 = arith.constant 120 : i32
    %138 = tpu.dynamic_rotate %0 by %c120_i32_53 dim 1 : vector<128x128xf32>, i32 -> vector<128x128xf32>
    %c25 = arith.constant 25 : index
    %c0_54 = arith.constant 0 : index
    %139 = vector.load %arg2[%c25, %c0_54] : memref<36x128xf32, #tpu.memory_space<vmem>>, vector<1x128xf32>
    %140 = vector.broadcast %139 : vector<1x128xf32> to vector<128x128xf32>
    %141 = arith.mulf %140, %138 : vector<128x128xf32>
    %142 = arith.addf %137, %141 : vector<128x128xf32>
    %c119_i32_55 = arith.constant 119 : i32
    %143 = tpu.dynamic_rotate %0 by %c119_i32_55 dim 1 : vector<128x128xf32>, i32 -> vector<128x128xf32>
    %c26 = arith.constant 26 : index
    %c0_56 = arith.constant 0 : index
    %144 = vector.load %arg2[%c26, %c0_56] : memref<36x128xf32, #tpu.memory_space<vmem>>, vector<1x128xf32>
    %145 = vector.broadcast %144 : vector<1x128xf32> to vector<128x128xf32>
    %146 = arith.mulf %145, %143 : vector<128x128xf32>
    %147 = arith.addf %142, %146 : vector<128x128xf32>
    %cst_57 = arith.constant 0.000000e+00 : f32
    %148 = vector.broadcast %cst_57 : f32 to vector<128x128xf32>
    %149 = arith.maximumf %147, %148 : vector<128x128xf32>
    %c256 = arith.constant 256 : index
    %c0_58 = arith.constant 0 : index
    %150 = vector.load %arg4[%c256, %c0_58] : memref<512x32xf32, #tpu.memory_space<vmem>>, vector<128x32xf32>
    %cst_59 = arith.constant dense<0.000000e+00> : vector<128x32xf32>
    %151 = tpu.matmul %149, %150, %cst_59 {dimension_numbers = #tpu.dot_dimension_numbers<[1], [0], [0], [1], [0, 0, 1, 1], [], []>} : vector<128x128xf32>, vector<128x32xf32>, vector<128x32xf32> -> vector<128x32xf32>
    %152 = arith.addf %101, %151 : vector<128x32xf32>
    %c3_60 = arith.constant 3 : index
    %c0_61 = arith.constant 0 : index
    %153 = vector.load %arg3[%c3_60, %c0_61] : memref<4x128xf32, #tpu.memory_space<vmem>>, vector<1x128xf32>
    %c31 = arith.constant 31 : index
    %c0_62 = arith.constant 0 : index
    %154 = vector.load %arg2[%c31, %c0_62] : memref<36x128xf32, #tpu.memory_space<vmem>>, vector<1x128xf32>
    %155 = vector.broadcast %154 : vector<1x128xf32> to vector<128x128xf32>
    %156 = arith.mulf %155, %0 : vector<128x128xf32>
    %157 = vector.broadcast %153 : vector<1x128xf32> to vector<128x128xf32>
    %158 = arith.addf %157, %156 : vector<128x128xf32>
    %c9_i32_63 = arith.constant 9 : i32
    %159 = tpu.dynamic_rotate %0 by %c9_i32_63 dim 1 : vector<128x128xf32>, i32 -> vector<128x128xf32>
    %c27 = arith.constant 27 : index
    %c0_64 = arith.constant 0 : index
    %160 = vector.load %arg2[%c27, %c0_64] : memref<36x128xf32, #tpu.memory_space<vmem>>, vector<1x128xf32>
    %161 = vector.broadcast %160 : vector<1x128xf32> to vector<128x128xf32>
    %162 = arith.mulf %161, %159 : vector<128x128xf32>
    %163 = arith.addf %158, %162 : vector<128x128xf32>
    %c8_i32_65 = arith.constant 8 : i32
    %164 = tpu.dynamic_rotate %0 by %c8_i32_65 dim 1 : vector<128x128xf32>, i32 -> vector<128x128xf32>
    %c28 = arith.constant 28 : index
    %c0_66 = arith.constant 0 : index
    %165 = vector.load %arg2[%c28, %c0_66] : memref<36x128xf32, #tpu.memory_space<vmem>>, vector<1x128xf32>
    %166 = vector.broadcast %165 : vector<1x128xf32> to vector<128x128xf32>
    %167 = arith.mulf %166, %164 : vector<128x128xf32>
    %168 = arith.addf %163, %167 : vector<128x128xf32>
    %c7_i32_67 = arith.constant 7 : i32
    %169 = tpu.dynamic_rotate %0 by %c7_i32_67 dim 1 : vector<128x128xf32>, i32 -> vector<128x128xf32>
    %c29 = arith.constant 29 : index
    %c0_68 = arith.constant 0 : index
    %170 = vector.load %arg2[%c29, %c0_68] : memref<36x128xf32, #tpu.memory_space<vmem>>, vector<1x128xf32>
    %171 = vector.broadcast %170 : vector<1x128xf32> to vector<128x128xf32>
    %172 = arith.mulf %171, %169 : vector<128x128xf32>
    %173 = arith.addf %168, %172 : vector<128x128xf32>
    %c1_i32_69 = arith.constant 1 : i32
    %174 = tpu.dynamic_rotate %0 by %c1_i32_69 dim 1 : vector<128x128xf32>, i32 -> vector<128x128xf32>
    %c30 = arith.constant 30 : index
    %c0_70 = arith.constant 0 : index
    %175 = vector.load %arg2[%c30, %c0_70] : memref<36x128xf32, #tpu.memory_space<vmem>>, vector<1x128xf32>
    %176 = vector.broadcast %175 : vector<1x128xf32> to vector<128x128xf32>
    %177 = arith.mulf %176, %174 : vector<128x128xf32>
    %178 = arith.addf %173, %177 : vector<128x128xf32>
    %c127_i32_71 = arith.constant 127 : i32
    %179 = tpu.dynamic_rotate %0 by %c127_i32_71 dim 1 : vector<128x128xf32>, i32 -> vector<128x128xf32>
    %c32 = arith.constant 32 : index
    %c0_72 = arith.constant 0 : index
    %180 = vector.load %arg2[%c32, %c0_72] : memref<36x128xf32, #tpu.memory_space<vmem>>, vector<1x128xf32>
    %181 = vector.broadcast %180 : vector<1x128xf32> to vector<128x128xf32>
    %182 = arith.mulf %181, %179 : vector<128x128xf32>
    %183 = arith.addf %178, %182 : vector<128x128xf32>
    %c121_i32_73 = arith.constant 121 : i32
    %184 = tpu.dynamic_rotate %0 by %c121_i32_73 dim 1 : vector<128x128xf32>, i32 -> vector<128x128xf32>
    %c33 = arith.constant 33 : index
    %c0_74 = arith.constant 0 : index
    %185 = vector.load %arg2[%c33, %c0_74] : memref<36x128xf32, #tpu.memory_space<vmem>>, vector<1x128xf32>
    %186 = vector.broadcast %185 : vector<1x128xf32> to vector<128x128xf32>
    %187 = arith.mulf %186, %184 : vector<128x128xf32>
    %188 = arith.addf %183, %187 : vector<128x128xf32>
    %c120_i32_75 = arith.constant 120 : i32
    %189 = tpu.dynamic_rotate %0 by %c120_i32_75 dim 1 : vector<128x128xf32>, i32 -> vector<128x128xf32>
    %c34 = arith.constant 34 : index
    %c0_76 = arith.constant 0 : index
    %190 = vector.load %arg2[%c34, %c0_76] : memref<36x128xf32, #tpu.memory_space<vmem>>, vector<1x128xf32>
    %191 = vector.broadcast %190 : vector<1x128xf32> to vector<128x128xf32>
    %192 = arith.mulf %191, %189 : vector<128x128xf32>
    %193 = arith.addf %188, %192 : vector<128x128xf32>
    %c119_i32_77 = arith.constant 119 : i32
    %194 = tpu.dynamic_rotate %0 by %c119_i32_77 dim 1 : vector<128x128xf32>, i32 -> vector<128x128xf32>
    %c35 = arith.constant 35 : index
    %c0_78 = arith.constant 0 : index
    %195 = vector.load %arg2[%c35, %c0_78] : memref<36x128xf32, #tpu.memory_space<vmem>>, vector<1x128xf32>
    %196 = vector.broadcast %195 : vector<1x128xf32> to vector<128x128xf32>
    %197 = arith.mulf %196, %194 : vector<128x128xf32>
    %198 = arith.addf %193, %197 : vector<128x128xf32>
    %cst_79 = arith.constant 0.000000e+00 : f32
    %199 = vector.broadcast %cst_79 : f32 to vector<128x128xf32>
    %200 = arith.maximumf %198, %199 : vector<128x128xf32>
    %c384 = arith.constant 384 : index
    %c0_80 = arith.constant 0 : index
    %201 = vector.load %arg4[%c384, %c0_80] : memref<512x32xf32, #tpu.memory_space<vmem>>, vector<128x32xf32>
    %cst_81 = arith.constant dense<0.000000e+00> : vector<128x32xf32>
    %202 = tpu.matmul %200, %201, %cst_81 {dimension_numbers = #tpu.dot_dimension_numbers<[1], [0], [0], [1], [0, 0, 1, 1], [], []>} : vector<128x128xf32>, vector<128x32xf32>, vector<128x32xf32> -> vector<128x32xf32>
    %203 = arith.addf %152, %202 : vector<128x32xf32>
    %c0_82 = arith.constant 0 : index
    %c0_83 = arith.constant 0 : index
    %204 = vector.load %arg5[%c0_82, %c0_83] : memref<1x32xf32, #tpu.memory_space<vmem>>, vector<1x32xf32>
    %205 = vector.broadcast %204 : vector<1x32xf32> to vector<128x32xf32>
    %206 = arith.addf %203, %205 : vector<128x32xf32>
    %cst_84 = arith.constant 0.000000e+00 : f32
    %207 = vector.broadcast %cst_84 : f32 to vector<128x32xf32>
    %208 = arith.maximumf %206, %207 : vector<128x32xf32>
    %c0_85 = arith.constant 0 : index
    %c0_86 = arith.constant 0 : index
    %209 = vector.load %arg6[%c0_85, %c0_86] : memref<32x128xf32, #tpu.memory_space<vmem>>, vector<32x128xf32>
    %cst_87 = arith.constant dense<0.000000e+00> : vector<128x128xf32>
    %210 = tpu.matmul %208, %209, %cst_87 {dimension_numbers = #tpu.dot_dimension_numbers<[1], [0], [0], [1], [0, 0, 1, 1], [], []>} : vector<128x32xf32>, vector<32x128xf32>, vector<128x128xf32> -> vector<128x128xf32>
    %c0_88 = arith.constant 0 : index
    %c0_89 = arith.constant 0 : index
    %211 = vector.load %arg7[%c0_88, %c0_89] : memref<128x128xf32, #tpu.memory_space<vmem>>, vector<128x128xf32>
    tpu.vector_store %arg7[%c0_88, %c0_89], %210 {strides = array<i32>} : memref<128x128xf32, #tpu.memory_space<vmem>>, vector<128x128xf32>,
    return
  }
  func.func @transform_0(%arg0: i32) -> (i32, i32) {
    %c0_i32 = arith.constant 0 : i32
    %c0_i32_0 = arith.constant 0 : i32
    return %arg0, %c0_i32 : i32, i32
  }
  func.func @transform_1(%arg0: i32) -> (i32, i32) {
    %c0_i32 = arith.constant 0 : i32
    %c0_i32_0 = arith.constant 0 : i32
    %c0_i32_1 = arith.constant 0 : i32
    return %c0_i32, %c0_i32_0 : i32, i32
  }
  func.func @transform_2(%arg0: i32) -> (i32, i32) {
    %c0_i32 = arith.constant 0 : i32
    %c0_i32_0 = arith.constant 0 : i32
    %c0_i32_1 = arith.constant 0 : i32
    return %c0_i32, %c0_i32_0 : i32, i32
  }
  func.func @transform_3(%arg0: i32) -> (i32, i32) {
    %c0_i32 = arith.constant 0 : i32
    %c0_i32_0 = arith.constant 0 : i32
    %c0_i32_1 = arith.constant 0 : i32
    return %c0_i32, %c0_i32_0 : i32, i32
  }
  func.func @transform_4(%arg0: i32) -> (i32, i32) {
    %c0_i32 = arith.constant 0 : i32
    %c0_i32_0 = arith.constant 0 : i32
    %c0_i32_1 = arith.constant 0 : i32
    return %c0_i32, %c0_i32_0 : i32, i32
  }
  func.func @transform_5(%arg0: i32) -> (i32, i32) {
    %c0_i32 = arith.constant 0 : i32
    %c0_i32_0 = arith.constant 0 : i32
    %c0_i32_1 = arith.constant 0 : i32
    return %c0_i32, %c0_i32_0 : i32, i32
  }
  func.func @transform_6(%arg0: i32) -> (i32, i32) {
    %c0_i32 = arith.constant 0 : i32
    %c0_i32_0 = arith.constant 0 : i32
    return %arg0, %c0_i32 : i32, i32
  }
}

</mosaic_0001>

<bundles_post_ra>
// kernel: conve_pallas.1
= control target key start
LH: loop header
LB: loop body
LE: loop exit
PB: predicated region body
PF: predicated region fallthrough
CT: control target
= control target key end

     0   :  { %11 = vsyncpa [#allocation3], 0  ;;  %s5852_s0 = inlined_call_operand.vmem [shape: f32[512,128], index: 0, kind: input, shape index: {}]   ;;  %s5853_s1 = inlined_call_operand.vmem [shape: f32[36,128], index: 1, kind: input, shape index: {}]   ;;  %s5854_s2 = inlined_call_operand.vmem [shape: f32[4,128], index: 2, kind: input, shape index: {}]   ;;  %s5855_s3 = inlined_call_operand.vmem [shape: f32[512,32], index: 3, kind: input, shape index: {}]   ;;  %s5856_s4 = inlined_call_operand.vmem [shape: f32[1,32], index: 4, kind: input, shape index: {}]   ;;  %s5857_s5 = inlined_call_operand.vmem [shape: f32[32,128], index: 5, kind: input, shape index: {}]   ;;  %s5858_s6 = inlined_call_operand.hbm [shape: f32[512,128], index: 6, kind: output, shape index: {}]  }
   0x1   :  { %13 = vsyncpa [#allocation3 + $0x1], 0  ;;  %s2788_s21 = smov 0   ;;  %s2790_s22 = smov 0  }
   0x2   :  { %s2792_s23 = smov 0   ;;  %s2794_s24 = smov 0  }
   0x3 LB: > { %s2809_s25 = sadd.s32 4294967295, %s2742_s24   ;;  %s2425_s26 = sadd.s32 4294967294, %s2742_s24   ;;  %s2742_s24 = sphi %s2794_s24, %s6498_s24   ;;  %s2738_s23 = sphi %s2792_s23, %s6497_s23   ;;  %s2734_s22 = sphi %s2790_s22, %s6496_s22   ;;  %s2730_s21 = sphi %s2788_s21, %s6495_s21  }
   0x4   : > { %s2813_s27 = sadd.s32 1, %s2742_s24   ;;  %s157_s28 = sadd.s32 1, %s2738_s23 }
   0x5   : > { %s154_s29 = ssub.s32 %s2742_s24, %s2813_s27  ;;  %p167_p0 = scmp.ne.s32.totalorder %s2738_s23, %s2734_s22 }
   0x6   : > { %p155_p1 = scmp.eq.s32.totalorder %s154_s29, 0  ;;  %p168_p2 = scmp.eq.s32.totalorder %s2809_s25, 3 }
   0x7   : > { %p173_p3 = scmp.ne.s32.totalorder %s2734_s22, %s2730_s21  ;;  %p174_p4 = scmp.eq.s32.totalorder %s2425_s26, 3 }
   0x8   : > { %s2824_s30 = scalar_select %p155_p1, %s2738_s23, %s157_s28  }
   0x9   : > { %p2826_p5 = por %p168_p2, %p167_p0  ;;  %p2830_p6 = por %p174_p4, %p173_p3 }
   0xa   : > { %p2428_p7 = scmp.ge.s32.totalorder %s2742_s24, 1  ;;  %p216_p8 = scmp.lt.s32.totalorder %s2742_s24, 5 }
   0xc   : > { %p217_p9 = pnand %p2428_p7, %p216_p8 }
   0xe   : > { %220 = sbr.rel (%p217_p9) target bundleno = 858 (0x35a), region = 44 }
  0x13   : > { %s2430_s9 = sshll.u32 %s2809_s25, 4  ;;  %s5899_s14 = smov 8   ;;  %v2949_v10 = vld [vmem:[%s5853_s1 + $0x4] ss:$0 sm:$0xff]  ;;  %v2954_v11 = vld [vmem:[%s5853_s1 + $0xd] ss:$0 sm:$0xff] }
  0x14   : > { %p247_p10 = scmp.lt.s32.totalorder %s2430_s9, 63  ;;  %s5964_s15 = smov 9   ;;  %6089 = vst [vmem:[#allocation6_spill] sm:$0xff] %v2949_v10  ;;  %v2959_v12 = vld [vmem:[%s5853_s1 + $0x16] ss:$0 sm:$0xff]  ;;  %v1204_v14 = vld [vmem:[%s5855_s3 + $0xf8] sm:$0xff] }
  0x15   : > { %s2746_s16 = smov 7   ;;  %s5859_s17 = smov 1   ;;  %6090 = vst [vmem:[#allocation7_spill] sm:$0xff] %v2954_v11  ;;  %v2968_v13 = vld [vmem:[%s5853_s1 + $0x1f] ss:$0 sm:$0xff]  ;;  %2455 = vmatpush.msra.mxu2 %v1204_v14  ;;  %2456 = vmatpush.msra.mxu3 %v1204_v14  ;;  %v3008_v24 = vld [vmem:[%s5855_s3 + $0xf0] sm:$0xff] }
  0x16   : > { %s6500_s9 = smov (!%p247_p10, %s2430_s9), 63  ;;  %s2748_s18 = smov 127   ;;  %6091 = vst [vmem:[#allocation8_spill] sm:$0xff] %v2959_v12  ;;  %v2980_v16 = vld [vmem:[%s5854_s2] ss:$0 sm:$0xff]  ;;  %2454 = vmatpush.msra.mxu1 %v1204_v14  ;;  %1205 = vmatpush.msra.mxu0 %v1204_v14  ;;  %v3049_v36 = vld [vmem:[%s5855_s3 + $0xe8] sm:$0xff] }
  0x17   : > { %s2431_s10 = sshll.u32 %s6500_s9, 3  ;;  %s5897_s19 = smov 121   ;;  %6092 = vst [vmem:[#allocation9_spill] sm:$0xff] %v2968_v13  ;;  %v2985_v17 = vld [vmem:[%s5854_s2 + $0x1] ss:$0 sm:$0xff]  ;;  %2458 = vmatpush.msra.mxu2 %v3008_v24  ;;  %2459 = vmatpush.msra.mxu3 %v3008_v24  ;;  %v3113_v53 = vld [vmem:[%s5855_s3 + $0xd8] sm:$0xff] }
  0x18   : > { %s2840_s13 = scalar_lea.vmem %s5852_s0, %s2431_s10  ;;  %s2750_s20 = smov 120   ;;  %6094 = vst [vmem:[#allocation11_spill] sm:$0xff] %v2980_v16  ;;  %v2990_v18 = vld [vmem:[%s5854_s2 + $0x2] ss:$0 sm:$0xff]  ;;  %v3001_v22 = vld [vmem:[%s5854_s2 + $0x3] ss:$0 sm:$0xff]  ;;  %2457 = vmatpush.msra.mxu1 %v3008_v24 }
  0x19   : > { %v2843_v0 = vld [vmem:[%s2840_s13 + $0x60] sm:$0xff]  ;;  %v2870_v3 = vld [vmem:[%s2840_s13 + $0x48] sm:$0xff]  ;;  %s5861_s26 = smov 119   ;;  %v2921_v6 = vld [vmem:[%s2840_s13 + $0x50] sm:$0xff]  ;;  %6095 = vst [vmem:[#allocation12_spill] sm:$0xff] %v2985_v17  ;;  %2461 = vmatpush.msra.mxu2 %v3049_v36  ;;  %2462 = vmatpush.msra.mxu3 %v3049_v36  ;;  %s6125_s9 = smov 1  }
  0x1a   : > { %v2846_v1 = vld [vmem:[%s2840_s13 + $0x40] sm:$0xff]  ;;  %395 = vrot.lane.b32.xlu2 %v2843_v0, %s5899_s14  ;;  %v2879_v4 = vld [vmem:[%s2840_s13 + $0x68] sm:$0xff]  ;;  %v2936_v8 = vld [vmem:[%s2840_s13 + $0x70] sm:$0xff]  ;;  %6096 = vst [vmem:[#allocation13_spill] sm:$0xff] %v2990_v18  ;;  %v284_v30 = vmul.f32 %v2949_v10, %v2843_v0  ;;  %v880_v33 = vmul.f32 %v2954_v11, %v2843_v0  ;;  %v1350_v34 = vmul.f32 %v2959_v12, %v2843_v0  ;;  %s6129_s29 = smov 119   ;;  %s6172_s12 = smov 8  }
  0x1b   : > { %387 = vrot.lane.b32.xlu1 %v2846_v1, %s5899_s14  ;;  %321 = vrot.lane.b32.xlu0 %v2846_v1, %s5964_s15  ;;  %v2855_v2 = vld [vmem:[%s2840_s13 + $0x20] sm:$0xff]  ;;  %v2894_v5 = vld [vmem:[%s2840_s13 + $0x28] sm:$0xff]  ;;  %6088 = vst [vmem:[#allocation5_spill] sm:$0xff] %v2936_v8  ;;  %v280_v19 = vmul.f32 %v2949_v10, %v2846_v1  ;;  %v876_v20 = vmul.f32 %v2954_v11, %v2846_v1  ;;  %s6188_s28 = smov 121   ;;  %s6300_s11 = smov 9   ;;  %vm2217_vm0 = vcmask 261120  }
  0x1c   : > { %v1346_v21 = vmul.f32 %v2959_v12, %v2846_v1  ;;  %6097 = vst [vmem:[#allocation14_spill] sm:$0xff] %v3001_v22  ;;  %v1767_v23 = vmul.f32 %v2968_v13, %v2846_v1  ;;  %v3013_v25 = vld [vmem:[%s5853_s1 + $0x1] ss:$0 sm:$0xff]  ;;  %v3016_v26 = vld [vmem:[%s2840_s13 + $0x30] sm:$0xff]  ;;  %v3033_v31 = vld [vmem:[%s5853_s1 + $0xa] ss:$0 sm:$0xff]  ;;  %v1771_v35 = vmul.f32 %v2968_v13, %v2843_v0  ;;  %v276_v39 = vmul.f32 %v2949_v10, %v2855_v2 }
  0x1d   : > { %6098 = vst [vmem:[#allocation15_spill] sm:$0xff] %v3008_v24  ;;  %v3019_v27 = vadd.f32 %v2980_v16, %v280_v19  ;;  %v3022_v28 = vadd.f32 %v2985_v17, %v876_v20  ;;  %v3038_v32 = vld [vmem:[%s5853_s1 + $0x13] ss:$0 sm:$0xff]  ;;  %v3056_v37 = vld [vmem:[%s5853_s1 + $0x1c] ss:$0 sm:$0xff]  ;;  %v872_v40 = vmul.f32 %v2954_v11, %v2855_v2  ;;  %v3070_v41 = vld [vmem:[%s5855_s3 + $0xe0] sm:$0xff]  ;;  %v1342_v51 = vmul.f32 %v2959_v12, %v2855_v2 }
  0x1e   : > { %v3025_v29 = vadd.f32 %v2990_v18, %v1346_v21  ;;  %6100 = vst [vmem:[#allocation17_spill] sm:$0xff] %v3033_v31  ;;  %v1784_v38 = vadd.f32 %v3001_v22, %v1767_v23  ;;  %v3086_v45 = vld [vmem:[%s5853_s1] ss:$0 sm:$0xff]  ;;  %v3091_v46 = vld [vmem:[%s5853_s1 + $0x12] ss:$0 sm:$0xff]  ;;  %v1763_v52 = vmul.f32 %v2968_v13, %v2855_v2  ;;  %2460 = vmatpush.msra.mxu1 %v3049_v36 }
  0x1f   : > { %6099 = vst [vmem:[#allocation16_spill] sm:$0xff] %v3022_v28  ;;  %v3096_v47 = vld [vmem:[%s5853_s1 + $0x1b] ss:$0 sm:$0xff]  ;;  %v3120_v55 = vadd.f32 %v2980_v16, %v284_v30  ;;  %v3123_v56 = vadd.f32 %v2985_v17, %v880_v33  ;;  %v3126_v57 = vadd.f32 %v2990_v18, %v1350_v34  ;;  %v3129_v58 = vadd.f32 %v3001_v22, %v1771_v35  ;;  %v3135_v59 = vld [vmem:[%s5853_s1 + $0x2] ss:$0 sm:$0xff]  ;;  %v3205_v24 = vld [vmem:[%s5855_s3 + $0xd0] sm:$0xff] }
  0x20   : > { %6101 = vst [vmem:[#allocation18_spill] sm:$0xff] %v3038_v32  ;;  %2464 = vmatpush.msra.mxu2 %v3070_v41  ;;  %v3140_v60 = vld [vmem:[%s5853_s1 + $0xb] ss:$0 sm:$0xff]  ;;  %v3145_v61 = vld [vmem:[%s5853_s1 + $0x14] ss:$0 sm:$0xff]  ;;  %2465 = vmatpush.msra.mxu3 %v3070_v41  ;;  %v3183_v30 = vadd.f32 %v2990_v18, %v1342_v51  ;;  %v3186_v33 = vadd.f32 %v3001_v22, %v1763_v52 }
  0x21   : > { %6102 = vst [vmem:[#allocation19_spill] sm:$0xff] %v3049_v36  ;;  %v3170_v20 = vld [vmem:[%s5853_s1 + $0x1d] ss:$0 sm:$0xff]  ;;  %v3175_v21 = vld [vmem:[%s5853_s1 + $0x3] ss:$0 sm:$0xff]  ;;  %v281_v34 = vmul.f32 %v2949_v10, %v2870_v3  ;;  %v877_v35 = vmul.f32 %v2954_v11, %v2870_v3  ;;  %v1347_v52 = vmul.f32 %v2959_v12, %v2870_v3  ;;  %2463 = vmatpush.msra.mxu1 %v3070_v41 }
  0x22   : > { %453 = vrot.lane.b32.xlu2 %v2846_v1, %s2746_s16  ;;  %6103 = vst [vmem:[#allocation20_spill] sm:$0xff] %v3056_v37  ;;  %2467 = vmatpush.msra.mxu2 %v3113_v53  ;;  %v3180_v23 = vld [vmem:[%s5853_s1 + $0x15] ss:$0 sm:$0xff] }
  0x23   : > { %313 = vrot.lane.b32.xlu1 %v2855_v2, %s5964_s15  ;;  %329 = vrot.lane.b32.xlu0 %v2843_v0, %s5964_s15  ;;  %6104 = vst [vmem:[#allocation21_spill] sm:$0xff] %v3070_v41  ;;  %v3261_v12 = vadd.f32 %v2985_v17, %v877_v35 }
  0x24   : > { %6105 = vst [vmem:[#allocation22_spill] sm:$0xff] %v3086_v45  ;;  %2468 = vmatpush.msra.mxu3 %v3113_v53  ;;  %2470 = vmatpush.msra.mxu2 %v3205_v24 }
  0x25   : > { %6106 = vst [vmem:[#allocation23_spill] sm:$0xff] %v3091_v46  ;;  %2466 = vmatpush.msra.mxu1 %v3113_v53 }
  0x26   : > { %6107 = vst [vmem:[#allocation24_spill] sm:$0xff] %v3096_v47  ;;  %2471 = vmatpush.msra.mxu3 %v3205_v24 }
  0x27   : > { %6108 = vst [vmem:[#allocation25_spill] sm:$0xff] %v3113_v53 }
  0x28   : > { %6109 = vst [vmem:[#allocation26_spill] sm:$0xff] %v3135_v59 }
  0x29   : > { %6110 = vst [vmem:[#allocation27_spill] sm:$0xff] %v3140_v60 }
  0x2a   : > { %519 = vrot.lane.b32.xlu2 %v2846_v1, %s5859_s17  ;;  %6111 = vst [vmem:[#allocation28_spill] sm:$0xff] %v3145_v61 }
  0x2b   : > { %461 = vrot.lane.b32.xlu1 %v2843_v0, %s2746_s16  ;;  %379 = vrot.lane.b32.xlu0 %v2855_v2, %s5899_s14  ;;  %6112 = vst [vmem:[#allocation29_spill] sm:$0xff] %v3170_v20 }
  0x2c   : > { %6113 = vst [vmem:[#allocation30_spill] sm:$0xff] %v3175_v21 }
  0x2d   : > { %6114 = vst [vmem:[#allocation31_spill] sm:$0xff] %v3180_v23 }
  0x2e   : > { %6116 = vst [vmem:[#allocation33_spill] sm:$0xff] %v3205_v24  ;;  %v3269_v24 = vld [vmem:[%s5855_s3 + $0xc0] sm:$0xff] }
  0x2f   : > { %6122 = vst [vmem:[#allocation39_spill] sm:$0xff] %v3261_v12 }
  0x32   : > { %527 = vrot.lane.b32.xlu2 %v2843_v0, %s5859_s17 }
  0x33   : > { %445 = vrot.lane.b32.xlu1 %v2855_v2, %s2746_s16  ;;  %323 = vrot.lane.b32.xlu0 %v2870_v3, %s5964_s15 }
  0x3a   : > { %389 = vrot.lane.b32.xlu2 %v2870_v3, %s5899_s14 }
  0x3b   : > { %331 = vrot.lane.b32.xlu1 %v2879_v4, %s5964_s15  ;;  %585 = vrot.lane.b32.xlu0 %v2846_v1, %s2748_s18 }
  0x42   : > { %651 = vrot.lane.b32.xlu2 %v2846_v1, %s5897_s19 }
  0x43   : > { %593 = vrot.lane.b32.xlu1 %v2843_v0, %s2748_s18  ;;  %511 = vrot.lane.b32.xlu0 %v2855_v2, %s5859_s17 }
  0x4a   : > { %455 = vrot.lane.b32.xlu2 %v2870_v3, %s2746_s16 }
  0x4b   : > { %397 = vrot.lane.b32.xlu1 %v2879_v4, %s5899_s14  ;;  %315 = vrot.lane.b32.xlu0 %v2894_v5, %s5964_s15 }
  0x52   : > { %717 = vrot.lane.b32.xlu2 %v2846_v1, %s2750_s20 }
  0x53   : > { %659 = vrot.lane.b32.xlu1 %v2843_v0, %s5897_s19  ;;  %577 = vrot.lane.b32.xlu0 %v2855_v2, %s2748_s18 }
  0x5a   : > { %521 = vrot.lane.b32.xlu2 %v2870_v3, %s5859_s17 }
  0x5b   : > { %463 = vrot.lane.b32.xlu1 %v2879_v4, %s2746_s16  ;;  %381 = vrot.lane.b32.xlu0 %v2894_v5, %s5899_s14 }
  0x62   : > { %783 = vrot.lane.b32.xlu2 %v2846_v1, %s5861_s26  ;;  %v3155_v1 = vadd.f32 %v2985_v17, %v872_v40 }
  0x63   : > { %725 = vrot.lane.b32.xlu1 %v2843_v0, %s2750_s20  ;;  %643 = vrot.lane.b32.xlu0 %v2855_v2, %s5897_s19 }
  0x6a   : > { %529 = vrot.lane.b32.xlu2 %v2879_v4, %s5859_s17 }
  0x6b   : > { %447 = vrot.lane.b32.xlu1 %v2894_v5, %s2746_s16  ;;  %325 = vrot.lane.b32.xlu0 %v2921_v6, %s5964_s15 }
  0x72   : > { %791 = vrot.lane.b32.xlu2 %v2843_v0, %s5861_s26  ;;  %v3152_v0 = vadd.f32 %v2980_v16, %v276_v39  ;;  %v3196_v39 = vld [vmem:[%s5853_s1 + $0x1e] ss:$0 sm:$0xff] }
  0x73   : > { %709 = vrot.lane.b32.xlu1 %v2855_v2, %s2750_s20  ;;  %587 = vrot.lane.b32.xlu0 %v2870_v3, %s2748_s18  ;;  %6115 = vst [vmem:[#allocation32_spill] sm:$0xff] %v3196_v39 }
  0x74   : > { %v396_v7 = vpop.permute.xlu2 %395 }
  0x75   : > { %v3073_v42 = vmul.f32 %v3013_v25, %v396_v7  ;;  %v3076_v43 = vmul.f32 %v3033_v31, %v396_v7  ;;  %v3079_v44 = vmul.f32 %v3038_v32, %v396_v7  ;;  %v3100_v48 = vmul.f32 %v3056_v37, %v396_v7 }
  0x7a   : > { %513 = vrot.lane.b32.xlu2 %v2894_v5, %s5859_s17 }
  0x7b   : > { %391 = vrot.lane.b32.xlu1 %v2921_v6, %s5899_s14  ;;  %333 = vrot.lane.b32.xlu0 %v2936_v8, %s5964_s15 }
  0x7c   : > { %v2944_v9 = vpop.permute.xlu2 %453 }
  0x7d   : > { %v479_v11 = vmul.f32 %v3135_v59, %v2944_v9  ;;  %v3212_v28 = vmul.f32 %v3140_v60, %v2944_v9  ;;  %v1870_v41 = vmul.f32 %v3170_v20, %v2944_v9 }
  0x7f   : > { %6117 = vst [vmem:[#allocation34_spill] sm:$0xff] %v3212_v28 }
  0x82   : > { %775 = vrot.lane.b32.xlu2 %v2855_v2, %s5861_s26 }
  0x83   : > { %653 = vrot.lane.b32.xlu1 %v2870_v3, %s5897_s19  ;;  %595 = vrot.lane.b32.xlu0 %v2879_v4, %s2748_s18 }
  0x84   : > { %v2975_v15 = vpop.permute.xlu2 %519 }
  0x85   : > { %6093 = vst [vmem:[#allocation10_spill] sm:$0xff] %v2975_v15  ;;  %v3233_v28 = vmul.f32 %v3175_v21, %v2975_v15 }
  0x8a   : > { %457 = vrot.lane.b32.xlu2 %v2921_v6, %s2746_s16 }
  0x8b   : > { %399 = vrot.lane.b32.xlu1 %v2936_v8, %s5899_s14  ;;  %317 = vrot.lane.b32.xlu0 %v3016_v26, %s5964_s15 }
  0x8c   : > { %v3102_v49 = vpop.permute.xlu2 %527 }
  0x8d   : > { %v3104_v50 = vpop.permute.xlu1 %387  ;;  %v3117_v54 = vpop.permute.xlu0 %321  ;;  %v3279_v35 = vmul.f32 %v3175_v21, %v3102_v49  ;;  %v3287_v53 = vmul.f32 %v3180_v23, %v3102_v49 }
  0x8e   : > { %v413_v62 = vmul.f32 %v3013_v25, %v3104_v50  ;;  %v1415_v63 = vmul.f32 %v3038_v32, %v3104_v50  ;;  %v1836_v2 = vmul.f32 %v3056_v37, %v3104_v50  ;;  %v347_v7 = vmul.f32 %v3086_v45, %v3117_v54 }
  0x8f   : > { %v1381_v14 = vmul.f32 %v3091_v46, %v3117_v54  ;;  %v1802_v19 = vmul.f32 %v3096_v47, %v3117_v54 }
  0x90   : > { %v363_v40 = vadd.f32 %v347_v7, %v3019_v27  ;;  %v1449_v27 = vmul.f32 %v3145_v61, %v2944_v9  ;;  %v3251_v9 = vld [vmem:[%s5853_s1 + $0xc] ss:$0 sm:$0xff] }
  0x91   : > { %v1397_v51 = vadd.f32 %v1381_v14, %v3025_v29  ;;  %v1818_v36 = vadd.f32 %v1802_v19, %v1784_v38  ;;  %v1768_v14 = vmul.f32 %v2968_v13, %v2870_v3  ;;  %v3227_v19 = vld [vmem:[%s5855_s3 + $0xc8] sm:$0xff]  ;;  %6120 = vst [vmem:[#allocation37_spill] sm:$0xff] %v3251_v9  ;;  %v3258_v13 = vadd.f32 %v2980_v16, %v281_v34 }
  0x92   : > { %719 = vrot.lane.b32.xlu2 %v2870_v3, %s2750_s20  ;;  %v429_v29 = vadd.f32 %v413_v62, %v363_v40  ;;  %v3242_v62 = vld [vmem:[%s5853_s1 + $0x9] ss:$0 sm:$0xff]  ;;  %v3255_v40 = vmul.f32 %v3196_v39, %v2975_v15  ;;  %2473 = vmatpush.msra.mxu2 %v3227_v19 }
  0x93   : > { %661 = vrot.lane.b32.xlu1 %v2879_v4, %s5897_s19  ;;  %v1431_v38 = vadd.f32 %v1415_v63, %v1397_v51  ;;  %v1852_v7 = vadd.f32 %v1836_v2, %v1818_v36  ;;  %579 = vrot.lane.b32.xlu0 %v2894_v5, %s2748_s18  ;;  %v3237_v36 = vmul.f32 %v3180_v23, %v2975_v15 }
  0x94   : > { %6118 = vst [vmem:[#allocation35_spill] sm:$0xff] %v3242_v62  ;;  %v3244_v63 = vpop.permute.xlu2 %389  ;;  %2474 = vmatpush.msra.mxu3 %v3227_v19  ;;  %2476 = vmatpush.msra.mxu2 %v3269_v24 }
  0x95   : > { %6119 = vst [vmem:[#allocation36_spill] sm:$0xff] %v3244_v63  ;;  %v314_v2 = vpop.permute.xlu1 %313  ;;  %v330_v51 = vpop.permute.xlu0 %329  ;;  %v3264_v63 = vadd.f32 %v2990_v18, %v1347_v52  ;;  %v3283_v52 = vmul.f32 %v3251_v9, %v3102_v49  ;;  %v3290_v18 = vadd.f32 %v3001_v22, %v1768_v14 }
  0x96   : > { %6121 = vst [vmem:[#allocation38_spill] sm:$0xff] %v3255_v40  ;;  %v351_v15 = vmul.f32 %v3086_v45, %v330_v51  ;;  %v915_v40 = vmul.f32 %v3242_v62, %v330_v51  ;;  %v1385_v34 = vmul.f32 %v3091_v46, %v330_v51  ;;  %v1806_v16 = vmul.f32 %v3096_v47, %v330_v51 }
  0x97   : > { %6123 = vst [vmem:[#allocation40_spill] sm:$0xff] %v3264_v63  ;;  %v343_v63 = vmul.f32 %v3086_v45, %v314_v2  ;;  %v907_v23 = vmul.f32 %v3242_v62, %v314_v2  ;;  %v1377_v12 = vmul.f32 %v3091_v46, %v314_v2  ;;  %v1798_v14 = vmul.f32 %v3096_v47, %v314_v2 }
  0x98   : > { %v367_v51 = vadd.f32 %v351_v15, %v3120_v55  ;;  %v1401_v17 = vadd.f32 %v1385_v34, %v3126_v57  ;;  %v1822_v21 = vadd.f32 %v1806_v16, %v3129_v58  ;;  %v931_v9 = vadd.f32 %v915_v40, %v3123_v56  ;;  %v3305_v15 = vld [vmem:[%s5855_s3 + $0xb8] sm:$0xff]  ;;  %2477 = vmatpush.msra.mxu3 %v3269_v24  ;;  %v3326_v40 = vld [vmem:[%s5855_s3 + $0xb0] sm:$0xff] }
  0x99   : > { %6124 = vst [vmem:[#allocation41_spill] sm:$0xff] %v3305_v15  ;;  %v1908_v16 = vmul.f32 %v3196_v39, %v3102_v49  ;;  %v3318_v57 = vmul.f32 %v3033_v31, %v3104_v50  ;;  %v495_v49 = vadd.f32 %v479_v11, %v429_v29  ;;  %v1465_v2 = vadd.f32 %v1449_v27, %v1431_v38 }
  0x9a   : > { %523 = vrot.lane.b32.xlu2 %v2921_v6, %s6125_s9  ;;  %v433_v55 = vadd.f32 %v3073_v42, %v367_v51  ;;  %v1435_v56 = vadd.f32 %v3079_v44, %v1401_v17  ;;  %v1856_v58 = vadd.f32 %v3100_v48, %v1822_v21  ;;  %6126 = vst [vmem:[#allocation42_spill] sm:$0xff] %v3326_v40 }
  0x9b   : > { %465 = vrot.lane.b32.xlu1 %v2936_v8, %s2746_s16  ;;  %383 = vrot.lane.b32.xlu0 %v3016_v26, %s5899_s14  ;;  %v911_v42 = vmul.f32 %v3242_v62, %v3117_v54  ;;  %v359_v17 = vadd.f32 %v343_v63, %v3152_v0  ;;  %v1886_v34 = vadd.f32 %v1870_v41, %v1852_v7  ;;  %v3345_v0 = vld [vmem:[%s5855_s3 + $0xa8] sm:$0xff] }
  0x9c   : > { %v3331_v44 = vpop.permute.xlu2 %651  ;;  %v3335_v51 = vmul.f32 %v2949_v10, %v2879_v4  ;;  %2479 = vmatpush.msra.mxu2 %v3305_v15  ;;  %v923_v11 = vadd.f32 %v907_v23, %v3155_v1  ;;  %v1393_v48 = vadd.f32 %v1377_v12, %v3183_v30  ;;  %v1814_v21 = vadd.f32 %v1798_v14, %v3186_v33 }
  0x9d   : > { %v462_v50 = vpop.permute.xlu1 %461  ;;  %v380_v27 = vpop.permute.xlu0 %379  ;;  %v965_v54 = vadd.f32 %v3076_v43, %v931_v9  ;;  %2480 = vmatpush.msra.mxu3 %v3305_v15  ;;  %v3364_v15 = vld [vmem:[%s5855_s3 + $0xa0] sm:$0xff] }
  0x9e   : > { %v409_v41 = vmul.f32 %v3013_v25, %v380_v27  ;;  %v941_v29 = vmul.f32 %v3033_v31, %v380_v27  ;;  %v1411_v1 = vmul.f32 %v3038_v32, %v380_v27  ;;  %v1832_v12 = vmul.f32 %v3056_v37, %v380_v27  ;;  %2482 = vmatpush.msra.mxu2 %v3326_v40 }
  0x9f   : > { %v483_v23 = vmul.f32 %v3135_v59, %v462_v50  ;;  %v983_v43 = vmul.f32 %v3140_v60, %v462_v50  ;;  %v1453_v30 = vmul.f32 %v3145_v61, %v462_v50  ;;  %v1874_v33 = vmul.f32 %v3170_v20, %v462_v50  ;;  %2483 = vmatpush.msra.mxu3 %v3326_v40  ;;  %v6128_v50 = vld [vmem:[#allocation16_spill] sm:$0xff] }
  0xa0   : > { %v425_v38 = vadd.f32 %v409_v41, %v359_v17  ;;  %v3358_v7 = vadd.f32 %v941_v29, %v923_v11  ;;  %v1427_v63 = vadd.f32 %v1411_v1, %v1393_v48  ;;  %v1848_v9 = vadd.f32 %v1832_v12, %v1814_v21  ;;  %2485 = vmatpush.msra.mxu2 %v3345_v0  ;;  %v3416_v29 = vld [vmem:[%s5855_s3 + $0x90] sm:$0xff] }
  0xa1   : > { %v499_v14 = vadd.f32 %v483_v23, %v433_v55  ;;  %v999_v27 = vadd.f32 %v983_v43, %v965_v54  ;;  %v1469_v10 = vadd.f32 %v1453_v30, %v1435_v56  ;;  %v1890_v39 = vadd.f32 %v1874_v33, %v1856_v58  ;;  %2486 = vmatpush.msra.mxu3 %v3345_v0  ;;  %v6130_v58 = vld [vmem:[#allocation38_spill] sm:$0xff] }
  0xa2   : > { %6127 = vst [vmem:[#allocation43_spill] sm:$0xff] %v3358_v7  ;;  %v927_v40 = vadd.f32 %v911_v42, %v6128_v50  ;;  %785 = vrot.lane.b32.xlu2 %v2870_v3, %s6129_s29  ;;  %v3373_v55 = vadd.f32 %v3233_v28, %v495_v49  ;;  %v3376_v56 = vadd.f32 %v3237_v36, %v1465_v2  ;;  %v3395_v28 = vld [vmem:[%s5855_s3 + $0x98] sm:$0xff] }
  0xa3   : > { %727 = vrot.lane.b32.xlu1 %v2879_v4, %s2750_s20  ;;  %645 = vrot.lane.b32.xlu0 %v2894_v5, %s5897_s19  ;;  %v3381_v17 = vadd.f32 %v6130_v58, %v1886_v34  ;;  %v3384_v42 = vadd.f32 %v3279_v35, %v499_v14  ;;  %v3387_v3 = vadd.f32 %v3283_v52, %v999_v27  ;;  %v6133_v36 = vld [vmem:[#allocation36_spill] sm:$0xff]  ;;  %v6136_v27 = vld [vmem:[#allocation39_spill] sm:$0xff] }
  0xa4   : > { %v3390_v11 = vadd.f32 %v3287_v53, %v1469_v10  ;;  %6132 = vst [vmem:[#allocation38_spill] sm:$0xff] %v3395_v28  ;;  %v414_v49 = vmul.f32 %v3013_v25, %v6133_v36  ;;  %v946_v2 = vmul.f32 %v3033_v31, %v6133_v36  ;;  %v1416_v35 = vmul.f32 %v3038_v32, %v6133_v36  ;;  %v456_v34 = vpop.permute.xlu2 %455  ;;  %v6137_v58 = vld [vmem:[#allocation40_spill] sm:$0xff] }
  0xa5   : > { %6131 = vst [vmem:[#allocation16_spill] sm:$0xff] %v3387_v3  ;;  %v3403_v52 = vpop.permute.xlu1 %445  ;;  %v3405_v48 = vadd.f32 %v1908_v16, %v1890_v39  ;;  %2488 = vmatpush.msra.mxu2 %v3364_v15  ;;  %v1837_v10 = vmul.f32 %v3056_v37, %v6133_v36  ;;  %v480_v53 = vmul.f32 %v3135_v59, %v456_v34  ;;  %v324_v41 = vpop.permute.xlu0 %323  ;;  %v3444_v3 = vld [vmem:[%s5853_s1 + $0x6] ss:$0 sm:$0xff] }
  0xa6   : > { %6134 = vst [vmem:[#allocation36_spill] sm:$0xff] %v3403_v52  ;;  %v980_v21 = vmul.f32 %v3140_v60, %v456_v34  ;;  %v1450_v54 = vmul.f32 %v3145_v61, %v456_v34  ;;  %2489 = vmatpush.msra.mxu3 %v3364_v15  ;;  %v348_v39 = vmul.f32 %v3086_v45, %v324_v41  ;;  %v6149_v60 = vld [vmem:[#allocation37_spill] sm:$0xff] }
  0xa7   : > { %6135 = vst [vmem:[#allocation44_spill] sm:$0xff] %v3416_v29  ;;  %v912_v16 = vmul.f32 %v3242_v62, %v324_v41  ;;  %v1382_v1 = vmul.f32 %v3091_v46, %v324_v41  ;;  %v1803_v12 = vmul.f32 %v3096_v47, %v324_v41  ;;  %2491 = vmatpush.msra.mxu2 %v3395_v28 }
  0xa8   : > { %v1871_v23 = vmul.f32 %v3170_v20, %v456_v34  ;;  %v475_v43 = vmul.f32 %v3135_v59, %v3403_v52  ;;  %v1445_v30 = vmul.f32 %v3145_v61, %v3403_v52  ;;  %v1866_v33 = vmul.f32 %v3170_v20, %v3403_v52  ;;  %2492 = vmatpush.msra.mxu3 %v3395_v28  ;;  %v3437_v34 = vld [vmem:[%s2840_s13 + $0x58] sm:$0xff]  ;;  %v6148_v61 = vld [vmem:[#allocation10_spill] sm:$0xff] }
  0xa9   : > { %v364_v14 = vadd.f32 %v348_v39, %v3258_v13  ;;  %v928_v50 = vadd.f32 %v912_v16, %v6136_v27  ;;  %v1398_v36 = vadd.f32 %v1382_v1, %v6137_v58  ;;  %v1819_v41 = vadd.f32 %v1803_v12, %v3290_v18  ;;  %2494 = vmatpush.msra.mxu2 %v3416_v29  ;;  %v3449_v13 = vld [vmem:[%s5853_s1 + $0x18] ss:$0 sm:$0xff] }
  0xaa   : > { %v961_v7 = vadd.f32 %v3318_v57, %v927_v40  ;;  %6138 = vst [vmem:[#allocation39_spill] sm:$0xff] %v3444_v3  ;;  %v3451_v39 = vadd.f32 %v475_v43, %v425_v38  ;;  %v3453_v16 = vadd.f32 %v1445_v30, %v1427_v63  ;;  %v3455_v18 = vadd.f32 %v1866_v33, %v1848_v9  ;;  %v3460_v57 = vld [vmem:[%s5855_s3 + $0x88] sm:$0xff]  ;;  %v6140_v40 = vld [vmem:[#allocation33_spill] sm:$0xff]  ;;  %v3473_v63 = vld [vmem:[%s5853_s1 + $0x17] ss:$0 sm:$0xff] }
  0xab   : > { %6139 = vst [vmem:[#allocation40_spill] sm:$0xff] %v3449_v13  ;;  %2469 = vmatpush.msra.mxu1 %v6140_v40  ;;  %v430_v1 = vadd.f32 %v414_v49, %v364_v14  ;;  %v962_v12 = vadd.f32 %v946_v2, %v928_v50  ;;  %v1432_v27 = vadd.f32 %v1416_v35, %v1398_v36  ;;  %v3468_v38 = vld [vmem:[%s5853_s1 + $0x5] ss:$0 sm:$0xff]  ;;  %v3478_v9 = vld [vmem:[%s5853_s1 + $0x20] ss:$0 sm:$0xff]  ;;  %v6145_v2 = vld [vmem:[#allocation7_spill] sm:$0xff] }
  0xac   : > { %v1853_v58 = vadd.f32 %v1837_v10, %v1819_v41  ;;  %531 = vrot.lane.b32.xlu2 %v2936_v8, %s6125_s9  ;;  %6141 = vst [vmem:[#allocation45_spill] sm:$0xff] %v3468_v38  ;;  %v3483_v49 = vld [vmem:[%s5853_s1 + $0x21] ss:$0 sm:$0xff]  ;;  %327 = vrot.lane.b32.xlu0 %v3437_v34, %s5964_s15  ;;  %v881_v35 = vmul.f32 %v6145_v2, %v2879_v4  ;;  %v6146_v10 = vld [vmem:[#allocation8_spill] sm:$0xff]  ;;  %v3501_v33 = vld [vmem:[%s5853_s1 + $0x7] ss:$0 sm:$0xff]  ;;  %v3503_v14 = vpop.permute.xlu2 %717 }
  0xad   : > { %6142 = vst [vmem:[#allocation46_spill] sm:$0xff] %v3473_v63  ;;  %449 = vrot.lane.b32.xlu1 %v3016_v26, %s2746_s16  ;;  %v1351_v43 = vmul.f32 %v6146_v10, %v2879_v4  ;;  %v3496_v30 = vld [vmem:[%s5855_s3 + $0x80] sm:$0xff]  ;;  %v332_v50 = vpop.permute.xlu1 %331  ;;  %v3505_v36 = vadd.f32 %v480_v53, %v430_v1  ;;  %v3507_v41 = vadd.f32 %v980_v21, %v962_v12  ;;  %v3519_v8 = vld [vmem:[%s5853_s1 + $0xf] ss:$0 sm:$0xff]  ;;  %v3524_v53 = vld [vmem:[%s5853_s1 + $0x19] ss:$0 sm:$0xff]  ;;  %v586_v1 = vpop.permute.xlu0 %585 }
  0xae   : > { %6143 = vst [vmem:[#allocation47_spill] sm:$0xff] %v3478_v9  ;;  %v3509_v52 = vadd.f32 %v1450_v54, %v1432_v27  ;;  %v3511_v20 = vadd.f32 %v1871_v23, %v1853_v58  ;;  %2497 = vmatpush.msra.mxu2 %v3460_v57  ;;  %v1013_v59 = vmul.f32 %v6149_v60, %v6148_v61  ;;  %v6152_v21 = vld [vmem:[#allocation34_spill] sm:$0xff]  ;;  %v6153_v23 = vld [vmem:[#allocation11_spill] sm:$0xff]  ;;  %v6154_v27 = vld [vmem:[#allocation9_spill] sm:$0xff] }
  0xaf   : > { %6144 = vst [vmem:[#allocation48_spill] sm:$0xff] %v3483_v49  ;;  %v995_v54 = vadd.f32 %v6152_v21, %v961_v7  ;;  %v3529_v12 = vadd.f32 %v6153_v23, %v3335_v51  ;;  %v1772_v61 = vmul.f32 %v6154_v27, %v2879_v4  ;;  %2495 = vmatpush.msra.mxu3 %v3416_v29  ;;  %v3539_v40 = vld [vmem:[%s5853_s1 + $0x22] ss:$0 sm:$0xff]  ;;  %v3544_v7 = vld [vmem:[%s5853_s1 + $0xe] ss:$0 sm:$0xff]  ;;  %v6157_v10 = vld [vmem:[#allocation12_spill] sm:$0xff] }
  0xb0   : > { %6147 = vst [vmem:[#allocation49_spill] sm:$0xff] %v3501_v33  ;;  %v677_v58 = vmul.f32 %v3444_v3, %v3331_v44  ;;  %v611_v51 = vmul.f32 %v3468_v38, %v586_v1  ;;  %v1517_v21 = vmul.f32 %v3473_v63, %v586_v1  ;;  %v1938_v23 = vmul.f32 %v3478_v9, %v586_v1  ;;  %v6158_v2 = vld [vmem:[#allocation13_spill] sm:$0xff] }
  0xb1   : > { %6150 = vst [vmem:[#allocation10_spill] sm:$0xff] %v3519_v8  ;;  %2500 = vmatpush.msra.mxu2 %v3496_v30  ;;  %v1551_v3 = vmul.f32 %v3449_v13, %v3331_v44  ;;  %v1972_v27 = vmul.f32 %v3483_v49, %v3331_v44  ;;  %v3555_v29 = vadd.f32 %v6157_v10, %v881_v35 }
  0xb2   : > { %6151 = vst [vmem:[#allocation50_spill] sm:$0xff] %v3524_v53  ;;  %v3558_v28 = vadd.f32 %v6158_v2, %v1351_v43  ;;  %2472 = vmatpush.msra.mxu1 %v3227_v19  ;;  %v743_v37 = vmul.f32 %v3501_v33, %v3503_v14  ;;  %v627_v32 = vadd.f32 %v611_v51, %v3373_v55  ;;  %v6162_v33 = vld [vmem:[#allocation31_spill] sm:$0xff] }
  0xb3   : > { %6155 = vst [vmem:[#allocation34_spill] sm:$0xff] %v3539_v40  ;;  %v1533_v31 = vadd.f32 %v1517_v21, %v3376_v56  ;;  %v1954_v13 = vadd.f32 %v1938_v23, %v3381_v17  ;;  %2498 = vmatpush.msra.mxu3 %v3460_v57  ;;  %v3569_v35 = vmul.f32 %v3519_v8, %v3331_v44  ;;  %v6161_v21 = vld [vmem:[#allocation30_spill] sm:$0xff]  ;;  %v3603_v8 = vld [vmem:[%s5853_s1 + $0x10] ss:$0 sm:$0xff] }
  0xb4   : > { %6156 = vst [vmem:[#allocation51_spill] sm:$0xff] %v3544_v7  ;;  %v1585_v43 = vmul.f32 %v3524_v53, %v3503_v14  ;;  %v1029_v49 = vadd.f32 %v1013_v59, %v995_v54  ;;  %v1789_v2 = vadd.f32 %v3001_v22, %v1772_v61  ;;  %2475 = vmatpush.msra.mxu1 %v3269_v24  ;;  %v522_v61 = vpop.permute.xlu2 %521 }
  0xb5   : > { %v2006_v55 = vmul.f32 %v3539_v40, %v3503_v14  ;;  %v1047_v56 = vmul.f32 %v3544_v7, %v586_v1  ;;  %793 = vrot.lane.b32.xlu2 %v2879_v4, %s6129_s29  ;;  %2501 = vmatpush.msra.mxu3 %v3496_v30  ;;  %v693_v44 = vadd.f32 %v677_v58, %v627_v32  ;;  %v3588_v51 = vpop.permute.xlu1 %593  ;;  %v6159_v4 = vld [vmem:[#allocation41_spill] sm:$0xff]  ;;  %v6160_v32 = vld [vmem:[#allocation15_spill] sm:$0xff] }
  0xb6   : > { %v352_v17 = vmul.f32 %v3086_v45, %v332_v50  ;;  %589 = vrot.lane.b32.xlu0 %v2921_v6, %s2748_s18  ;;  %711 = vrot.lane.b32.xlu1 %v2894_v5, %s2750_s20  ;;  %v1567_v59 = vadd.f32 %v1551_v3, %v1533_v31  ;;  %v1988_v54 = vadd.f32 %v1972_v27, %v1954_v13  ;;  %v6163_v3 = vld [vmem:[#allocation32_spill] sm:$0xff]  ;;  %v3598_v27 = vpop.permute.xlu0 %511 }
  0xb7   : > { %v916_v23 = vmul.f32 %v3242_v62, %v332_v50  ;;  %v1386_v1 = vmul.f32 %v3091_v46, %v332_v50  ;;  %2478 = vmatpush.msra.mxu1 %v6159_v4  ;;  %1206 = vmatpush.msra.mxu0 %v6160_v32  ;;  %v3592_v58 = vadd.f32 %v743_v37, %v693_v44 }
  0xb8   : > { %v546_v40 = vmul.f32 %v6161_v21, %v522_v61  ;;  %v1014_v53 = vmul.f32 %v6149_v60, %v522_v61  ;;  %v1484_v31 = vmul.f32 %v6162_v33, %v522_v61  ;;  %v1905_v13 = vmul.f32 %v6163_v3, %v522_v61  ;;  %6164 = vst [vmem:[#allocation15_spill] sm:$0xff] %v3598_v27  ;;  %v6165_v61 = vld [vmem:[#allocation42_spill] sm:$0xff] }
  0xb9   : > { %v1807_v32 = vmul.f32 %v3096_v47, %v332_v50  ;;  %v541_v37 = vmul.f32 %v6161_v21, %v3598_v27  ;;  %v1479_v44 = vmul.f32 %v6162_v33, %v3598_v27  ;;  %v1900_v60 = vmul.f32 %v6163_v3, %v3598_v27  ;;  %2481 = vmatpush.msra.mxu1 %v6165_v61  ;;  %v6170_v21 = vld [vmem:[#allocation19_spill] sm:$0xff] }
  0xba   : > { %v3614_v7 = vadd.f32 %v546_v40, %v3505_v36  ;;  %v3617_v4 = vadd.f32 %v1014_v53, %v3507_v41  ;;  %v3620_v46 = vadd.f32 %v1484_v31, %v3509_v52  ;;  %v3623_v50 = vadd.f32 %v1905_v13, %v3511_v20  ;;  %1207 = vmatpush.msra.mxu0 %v6170_v21  ;;  %v3636_v36 = vld [vmem:[%s2840_s13 + $0x78] sm:$0xff]  ;;  %v6174_v31 = vld [vmem:[#allocation18_spill] sm:$0xff] }
  0xbb   : > { %v1063_v33 = vadd.f32 %v1047_v56, %v1029_v49  ;;  %v3627_v47 = vadd.f32 %v541_v37, %v3451_v39  ;;  %v3630_v27 = vadd.f32 %v1479_v44, %v3453_v16  ;;  %v3633_v40 = vadd.f32 %v1900_v60, %v3455_v18  ;;  %2484 = vmatpush.msra.mxu1 %v3345_v0  ;;  %v6171_v49 = vld [vmem:[#allocation21_spill] sm:$0xff]  ;;  %v6175_v37 = vld [vmem:[#allocation20_spill] sm:$0xff] }
  0xbc   : > { %6166 = vst [vmem:[#allocation42_spill] sm:$0xff] %v3614_v7  ;;  %v615_v20 = vmul.f32 %v3468_v38, %v3588_v51  ;;  %v1521_v52 = vmul.f32 %v3473_v63, %v3588_v51  ;;  %v1942_v39 = vmul.f32 %v3478_v9, %v3588_v51  ;;  %1208 = vmatpush.msra.mxu0 %v6171_v49  ;;  %v6183_v7 = vld [vmem:[#allocation9_spill] sm:$0xff] }
  0xbd   : > { %6167 = vst [vmem:[#allocation52_spill] sm:$0xff] %v3617_v4  ;;  %v1115_v16 = vmul.f32 %v3603_v8, %v3503_v14  ;;  %515 = vrot.lane.b32.xlu2 %v3016_v26, %s6125_s9  ;;  %2487 = vmatpush.msra.mxu1 %v3364_v15  ;;  %v1601_v60 = vadd.f32 %v1585_v43, %v1567_v59  ;;  %v6180_v4 = vld [vmem:[#allocation44_spill] sm:$0xff] }
  0xbe   : > { %6168 = vst [vmem:[#allocation53_spill] sm:$0xff] %v3620_v46  ;;  %v3651_v18 = vadd.f32 %v2006_v55, %v1988_v54  ;;  %v368_v41 = vadd.f32 %v352_v17, %v3529_v12  ;;  %v3655_v53 = vadd.f32 %v615_v20, %v3384_v42  ;;  %v3658_v56 = vadd.f32 %v1521_v52, %v3390_v11  ;;  %v784_v12 = vpop.permute.xlu2 %783  ;;  %v398_v42 = vpop.permute.xlu1 %397  ;;  %v3693_v20 = vld [vmem:[%s5853_s1 + $0x1a] ss:$0 sm:$0xff]  ;;  %v6182_v46 = vld [vmem:[#allocation33_spill] sm:$0xff] }
  0xbf   : > { %6169 = vst [vmem:[#allocation54_spill] sm:$0xff] %v3623_v50  ;;  %v3661_v21 = vadd.f32 %v1942_v39, %v3405_v48  ;;  %335 = vrot.lane.b32.xlu0 %v3636_v36, %s5964_s15  ;;  %v932_v14 = vadd.f32 %v916_v23, %v3555_v29  ;;  %v1402_v43 = vadd.f32 %v1386_v1, %v3558_v28  ;;  %v316_v11 = vpop.permute.xlu0 %315  ;;  %v6173_v48 = vld [vmem:[#allocation17_spill] sm:$0xff]  ;;  %v3677_v28 = vld [vmem:[%s5853_s1 + $0x11] ss:$0 sm:$0xff]  ;;  %v6176_v29 = vld [vmem:[#allocation38_spill] sm:$0xff] }
  0xc0   : > { %v1823_v55 = vadd.f32 %v1807_v32, %v1789_v2  ;;  %393 = vrot.lane.b32.xlu1 %v3437_v34, %s6172_s12  ;;  %v1097_v17 = vadd.f32 %v3569_v35, %v1063_v33  ;;  %v418_v59 = vmul.f32 %v3013_v25, %v398_v42  ;;  %v950_v54 = vmul.f32 %v6173_v48, %v398_v42  ;;  %v6177_v2 = vld [vmem:[#allocation6_spill] sm:$0xff]  ;;  %v6178_v33 = vld [vmem:[#allocation7_spill] sm:$0xff]  ;;  %v6179_v1 = vld [vmem:[#allocation25_spill] sm:$0xff] }
  0xc1   : > { %v1420_v13 = vmul.f32 %v6174_v31, %v398_v42  ;;  %v1841_v44 = vmul.f32 %v6175_v37, %v398_v42  ;;  %2490 = vmatpush.msra.mxu1 %v6176_v29  ;;  %v277_v23 = vmul.f32 %v6177_v2, %v2894_v5  ;;  %v873_v35 = vmul.f32 %v6178_v33, %v2894_v5  ;;  %v3688_v32 = vld [vmem:[%s5853_s1 + $0x8] ss:$0 sm:$0xff] }
  0xc2   : > { %1209 = vmatpush.msra.mxu0 %v6179_v1  ;;  %v3695_v52 = vadd.f32 %v418_v59, %v368_v41  ;;  %v3697_v39 = vadd.f32 %v950_v54, %v932_v14  ;;  %v6181_v1 = vld [vmem:[#allocation8_spill] sm:$0xff]  ;;  %v1764_v33 = vmul.f32 %v6183_v7, %v2894_v5  ;;  %v1131_v2 = vadd.f32 %v1115_v16, %v1097_v17  ;;  %v3717_v14 = vld [vmem:[%s5853_s1 + $0x23] ss:$0 sm:$0xff] }
  0xc3   : > { %v3699_v49 = vadd.f32 %v1420_v13, %v1402_v43  ;;  %v3701_v42 = vadd.f32 %v1841_v44, %v1823_v55  ;;  %2493 = vmatpush.msra.mxu1 %v6180_v4  ;;  %v1343_v50 = vmul.f32 %v6181_v1, %v2894_v5  ;;  %v1149_v41 = vmul.f32 %v3677_v28, %v784_v12  ;;  %v6185_v55 = vld [vmem:[#allocation11_spill] sm:$0xff]  ;;  %v6186_v59 = vld [vmem:[#allocation5_spill] sm:$0xff] }
  0xc4   : > { %1210 = vmatpush.msra.mxu0 %v6182_v46  ;;  %6184 = vst [vmem:[#allocation19_spill] sm:$0xff] %v3717_v14  ;;  %v809_v46 = vmul.f32 %v3688_v32, %v784_v12  ;;  %v1619_v43 = vmul.f32 %v3693_v20, %v784_v12  ;;  %v294_v16 = vadd.f32 %v6185_v55, %v277_v23  ;;  %v6191_v55 = vld [vmem:[#allocation23_spill] sm:$0xff] }
  0xc5   : > { %2496 = vmatpush.msra.mxu1 %v3460_v57  ;;  %777 = vrot.lane.b32.xlu2 %v2894_v5, %s6129_s29  ;;  %v890_v17 = vadd.f32 %v6157_v10, %v873_v35  ;;  %v1165_v54 = vadd.f32 %v1149_v41, %v1131_v2  ;;  %v6187_v5 = vld [vmem:[#allocation13_spill] sm:$0xff]  ;;  %v1781_v10 = vadd.f32 %v3001_v22, %v1764_v33 }
  0xc6   : > { %1211 = vmatpush.msra.mxu0 %v3227_v19  ;;  %v1360_v19 = vadd.f32 %v6187_v5, %v1343_v50  ;;  %v530_v13 = vpop.permute.xlu2 %529  ;;  %v3729_v44 = vpop.permute.xlu1 %659  ;;  %v3733_v23 = vadd.f32 %v809_v46, %v3592_v58  ;;  %v3735_v35 = vadd.f32 %v1619_v43, %v1601_v60  ;;  %v344_v2 = vmul.f32 %v3086_v45, %v316_v11  ;;  %v6192_v60 = vld [vmem:[#allocation41_spill] sm:$0xff]  ;;  %v6193_v46 = vld [vmem:[#allocation24_spill] sm:$0xff] }
  0xc7   : > { %597 = vrot.lane.b32.xlu0 %v6186_v59, %s2748_s18  ;;  %2499 = vmatpush.msra.mxu1 %v3496_v30  ;;  %v908_v41 = vmul.f32 %v3242_v62, %v316_v11  ;;  %v1181_v50 = vmax.f32 %v1165_v54, 0.0  ;;  %v3740_v5 = vpop.permute.xlu0 %577  ;;  %v1378_v7 = vmul.f32 %v6191_v55, %v316_v11  ;;  %v2040_v33 = vmul.f32 %v3717_v14, %v784_v12  ;;  %v6195_v55 = vld [vmem:[#allocation40_spill] sm:$0xff] }
  0xc8   : > { %655 = vrot.lane.b32.xlu1 %v2921_v6, %s6188_s28  ;;  %1212 = vmatpush.msra.mxu0 %v3269_v24  ;;  %6189 = vst [vmem:[#allocation21_spill] sm:$0xff] %v3733_v23  ;;  %v607_v24 = vmul.f32 %v3468_v38, %v3740_v5  ;;  %v1513_v58 = vmul.f32 %v3473_v63, %v3740_v5  ;;  %v6196_v12 = vld [vmem:[#allocation48_spill] sm:$0xff] }
  0xc9   : > { %6190 = vst [vmem:[#allocation17_spill] sm:$0xff] %v3735_v35  ;;  %v1799_v43 = vmul.f32 %v6193_v46, %v316_v11  ;;  %1245 = vmatmul.f32.vlgmr.msra.gmra.mxu2 %v1181_v50  ;;  %v1934_v54 = vmul.f32 %v3478_v9, %v3740_v5  ;;  %v6194_v35 = vld [vmem:[#allocation39_spill] sm:$0xff]  ;;  %v1555_v62 = vmul.f32 %v6195_v55, %v3729_v44  ;;  %v3765_v11 = vld [vmem:[%s2840_s13 + $0x38] sm:$0xff] }
  0xca   : > { %1213 = vmatpush.msra.mxu0 %v6192_v60  ;;  %v681_v23 = vmul.f32 %v6194_v35, %v3729_v44  ;;  %v3757_v38 = vadd.f32 %v607_v24, %v3627_v47  ;;  %v3760_v63 = vadd.f32 %v1513_v58, %v3630_v27  ;;  %v1976_v60 = vmul.f32 %v6196_v12, %v3729_v44  ;;  %v6197_v50 = vld [vmem:[#allocation51_spill] sm:$0xff] }
  0xcb   : > { %v1051_v46 = vmul.f32 %v6197_v50, %v3588_v51  ;;  %v360_v9 = vadd.f32 %v344_v2, %v294_v16  ;;  %v924_v45 = vadd.f32 %v908_v41, %v890_v17  ;;  %v3771_v22 = vadd.f32 %v1934_v54, %v3633_v40  ;;  %v6199_v17 = vld [vmem:[#allocation30_spill] sm:$0xff]  ;;  %v6200_v41 = vld [vmem:[#allocation37_spill] sm:$0xff]  ;;  %v6201_v24 = vld [vmem:[#allocation31_spill] sm:$0xff] }
  0xcc   : > { %1214 = vmatpush.msra.mxu0 %v6165_v61  ;;  %v3777_v47 = vadd.f32 %v2040_v33, %v3651_v18  ;;  %v3780_v27 = vadd.f32 %v681_v23, %v3655_v53  ;;  %v3783_v61 = vadd.f32 %v1555_v62, %v3658_v56  ;;  %v1394_v51 = vadd.f32 %v1378_v7, %v1360_v19  ;;  %v6202_v53 = vld [vmem:[#allocation26_spill] sm:$0xff]  ;;  %v6203_v19 = vld [vmem:[#allocation27_spill] sm:$0xff] }
  0xcd   : > { %459 = vrot.lane.b32.xlu2 %v3437_v34, %s2746_s16  ;;  %v1815_v16 = vadd.f32 %v1799_v43, %v1781_v10  ;;  %v550_v2 = vmul.f32 %v6199_v17, %v530_v13  ;;  %v1992_v40 = vadd.f32 %v1976_v60, %v3661_v21  ;;  %v1488_v18 = vmul.f32 %v6201_v24, %v530_v13  ;;  %v6204_v21 = vld [vmem:[#allocation28_spill] sm:$0xff]  ;;  %v6205_v43 = vld [vmem:[#allocation29_spill] sm:$0xff] }
  0xce   : > { %1215 = vmatpush.msra.mxu0 %v3345_v0  ;;  %6198 = vst [vmem:[#allocation18_spill] sm:$0xff] %v3777_v47  ;;  %v1018_v0 = vmul.f32 %v6200_v41, %v530_v13  ;;  %v1909_v58 = vmul.f32 %v6163_v3, %v530_v13  ;;  %v3794_v62 = vpop.permute.xlu2 %791  ;;  %v464_v7 = vpop.permute.xlu1 %463 }
  0xcf   : > { %319 = vrot.lane.b32.xlu0 %v3765_v11, %s5964_s15  ;;  %v382_v10 = vpop.permute.xlu0 %381  ;;  %v484_v56 = vmul.f32 %v6202_v53, %v464_v7  ;;  %v984_v23 = vmul.f32 %v6203_v19, %v464_v7  ;;  %v1454_v33 = vmul.f32 %v6204_v21, %v464_v7  ;;  %v1875_v54 = vmul.f32 %v6205_v43, %v464_v7 }
  0xd0   : > { %401 = vrot.lane.b32.xlu1 %v3636_v36, %s6172_s12  ;;  %1216 = vmatpush.msra.mxu0 %v3364_v15  ;;  %v410_v60 = vmul.f32 %v3013_v25, %v382_v10  ;;  %v942_v13 = vmul.f32 %v6173_v48, %v382_v10  ;;  %v1412_v47 = vmul.f32 %v6174_v31, %v382_v10  ;;  %v6206_v48 = vld [vmem:[#allocation36_spill] sm:$0xff] }
  0xd1   : > { %v1833_v14 = vmul.f32 %v6175_v37, %v382_v10  ;;  %v500_v15 = vadd.f32 %v484_v56, %v3695_v52  ;;  %v1000_v1 = vadd.f32 %v984_v23, %v3697_v39  ;;  %v1470_v3 = vadd.f32 %v1454_v33, %v3699_v49  ;;  %v6207_v37 = vld [vmem:[#allocation10_spill] sm:$0xff] }
  0xd2   : > { %1217 = vmatpush.msra.mxu0 %v6176_v29  ;;  %v1891_v24 = vadd.f32 %v1875_v54, %v3701_v42  ;;  %v426_v17 = vadd.f32 %v410_v60, %v360_v9  ;;  %v958_v7 = vadd.f32 %v942_v13, %v924_v45  ;;  %v1428_v43 = vadd.f32 %v1412_v47, %v1394_v51  ;;  %v6209_v45 = vld [vmem:[#allocation16_spill] sm:$0xff]  ;;  %v6213_v10 = vld [vmem:[#allocation50_spill] sm:$0xff] }
  0xd3   : > { %v1849_v25 = vadd.f32 %v1833_v14, %v1815_v16  ;;  %v975_v31 = vmul.f32 %v6203_v19, %v6206_v48  ;;  %v1085_v29 = vmul.f32 %v6207_v37, %v3729_v44  ;;  %v3817_v52 = vadd.f32 %v550_v2, %v500_v15  ;;  %v6210_v44 = vld [vmem:[#allocation43_spill] sm:$0xff]  ;;  %v6214_v23 = vld [vmem:[#allocation34_spill] sm:$0xff] }
  0xd4   : > { %1218 = vmatpush.msra.mxu0 %v6180_v4  ;;  %v3819_v39 = vadd.f32 %v1018_v0, %v1000_v1  ;;  %v3821_v49 = vadd.f32 %v1488_v18, %v1470_v3  ;;  %v1067_v9 = vadd.f32 %v1051_v46, %v6209_v45  ;;  %v3826_v4 = vadd.f32 %v1909_v58, %v1891_v24  ;;  %v6211_v1 = vld [vmem:[#allocation15_spill] sm:$0xff]  ;;  %v6212_v24 = vld [vmem:[#allocation49_spill] sm:$0xff] }
  0xd5   : > { %721 = vrot.lane.b32.xlu2 %v2921_v6, %s2750_s20  ;;  %v991_v47 = vadd.f32 %v975_v31, %v6210_v44  ;;  %v1009_v3 = vmul.f32 %v6200_v41, %v6211_v1  ;;  %v813_v46 = vmul.f32 %v3688_v32, %v3794_v62  ;;  %v1153_v54 = vmul.f32 %v3677_v28, %v3794_v62 }
  0xd6   : > { %6208 = vst [vmem:[#allocation20_spill] sm:$0xff] %v3819_v39  ;;  %v514_v42 = vpop.permute.xlu2 %513  ;;  %v726_v14 = vpop.permute.xlu1 %725  ;;  %1219 = vmatpush.msra.mxu0 %v3460_v57  ;;  %v1101_v16 = vadd.f32 %v1085_v29, %v1067_v9  ;;  %v1623_v57 = vmul.f32 %v3693_v20, %v3794_v62  ;;  %v6218_v9 = vld [vmem:[#allocation7_spill] sm:$0xff] }
  0xd7   : > { %581 = vrot.lane.b32.xlu0 %v3016_v26, %s2748_s18  ;;  %v644_v51 = vpop.permute.xlu0 %643  ;;  %v747_v18 = vmul.f32 %v6212_v24, %v726_v14  ;;  %v1119_v58 = vmul.f32 %v3603_v8, %v726_v14  ;;  %v1589_v56 = vmul.f32 %v6213_v10, %v726_v14  ;;  %v2010_v33 = vmul.f32 %v6214_v23, %v726_v14 }
  0xd8   : > { %663 = vrot.lane.b32.xlu1 %v6186_v59, %s6188_s28  ;;  %v673_v2 = vmul.f32 %v6194_v35, %v644_v51  ;;  %v1547_v0 = vmul.f32 %v6195_v55, %v644_v51  ;;  %v1968_v59 = vmul.f32 %v6196_v12, %v644_v51  ;;  %1220 = vmatpush.msra.mxu0 %v3496_v30 }
  0xd9   : > { %v1135_v15 = vadd.f32 %v1119_v58, %v1101_v16  ;;  %v763_v48 = vadd.f32 %v747_v18, %v3780_v27  ;;  %v1605_v31 = vadd.f32 %v1589_v56, %v3783_v61  ;;  %v2026_v29 = vadd.f32 %v2010_v33, %v1992_v40  ;;  %v6217_v61 = vld [vmem:[#allocation6_spill] sm:$0xff]  ;;  %v6221_v18 = vld [vmem:[#allocation31_spill] sm:$0xff]  ;;  %v6222_v56 = vld [vmem:[#allocation32_spill] sm:$0xff] }
  0xda   : > { %v3849_v60 = vadd.f32 %v673_v2, %v3757_v38  ;;  %v3852_v13 = vadd.f32 %v1547_v0, %v3760_v63  ;;  %v3855_v30 = vadd.f32 %v1968_v59, %v3771_v22  ;;  %v1025_v45 = vadd.f32 %v1009_v3, %v991_v47  ;;  %v6220_v0 = vld [vmem:[#allocation30_spill] sm:$0xff] }
  0xdb   : > { %v3863_v38 = vadd.f32 %v813_v46, %v763_v48  ;;  %v3865_v63 = vadd.f32 %v1623_v57, %v1605_v31  ;;  %v1043_v22 = vmul.f32 %v6197_v50, %v3740_v5  ;;  %v282_v40 = vmul.f32 %v6217_v61, %v2921_v6  ;;  %v6219_v46 = vld [vmem:[#allocation29_spill] sm:$0xff]  ;;  %v2591_v61 = vld [vmem:[%s2840_s13 + $0x50] sm:$0xff] }
  0xdc   : > { %v878_v14 = vmul.f32 %v6218_v9, %v2921_v6  ;;  %v1169_v47 = vadd.f32 %v1153_v54, %v1135_v15  ;;  %v542_v59 = vmul.f32 %v6220_v0, %v514_v42  ;;  %v1010_v57 = vmul.f32 %v6200_v41, %v514_v42  ;;  %v6223_v9 = vld [vmem:[#allocation8_spill] sm:$0xff] }
  0xdd   : > { %525 = vrot.lane.b32.xlu2 %v3437_v34, %s6125_s9  ;;  %6215 = vst [vmem:[#allocation38_spill] sm:$0xff] %v3863_v38  ;;  %v1480_v58 = vmul.f32 %v6221_v18, %v514_v42  ;;  %v1901_v6 = vmul.f32 %v6222_v56, %v514_v42  ;;  %v1077_v31 = vmul.f32 %v6207_v37, %v644_v51  ;;  %v6224_v38 = vld [vmem:[#allocation9_spill] sm:$0xff]  ;;  %v6226_v18 = vld [vmem:[#allocation11_spill] sm:$0xff] }
  0xde   : > { %6216 = vst [vmem:[#allocation25_spill] sm:$0xff] %v3865_v63  ;;  %v3871_v27 = vpop.permute.xlu2 %775  ;;  %v448_v44 = vpop.permute.xlu1 %447  ;;  %v1348_v63 = vmul.f32 %v2591_v61, %v6223_v9  ;;  %v1769_v39 = vmul.f32 %v2591_v61, %v6224_v38  ;;  %v1185_v12 = vmax.f32 %v1169_v47, 0.0  ;;  %v1059_v55 = vadd.f32 %v1043_v22, %v1025_v45  ;;  %v6233_v38 = vld [vmem:[#allocation14_spill] sm:$0xff]  ;;  %v6239_v56 = vld [vmem:[#allocation47_spill] sm:$0xff] }
  0xdf   : > { %385 = vrot.lane.b32.xlu0 %v3765_v11, %s6172_s12  ;;  %v326_v1 = vpop.permute.xlu0 %325  ;;  %v476_v3 = vmul.f32 %v6202_v53, %v448_v44  ;;  %v976_v16 = vmul.f32 %v6203_v19, %v448_v44  ;;  %v1446_v5 = vmul.f32 %v6204_v21, %v448_v44  ;;  %v1867_v2 = vmul.f32 %v6219_v46, %v448_v44  ;;  %v6225_v44 = vld [vmem:[#allocation19_spill] sm:$0xff] }
  0xe0   : > { %467 = vrot.lane.b32.xlu1 %v3636_v36, %s2746_s16  ;;  %v2044_v0 = vmul.f32 %v6225_v44, %v3794_v62  ;;  %v299_v35 = vadd.f32 %v6226_v18, %v282_v40  ;;  %1257 = vmatmul.f32.vlgmr.msra.gmra.mxu3 %v1185_v12  ;;  %v3907_v62 = vld [vmem:[%s5854_s2 + $0x2] ss:$0 sm:$0xff]  ;;  %v1786_v22 = vadd.f32 %v6233_v38, %v1769_v39  ;;  %v3912_v40 = vld [vmem:[%s2840_s13 + $0x70] sm:$0xff] }
  0xe1   : > { %v492_v33 = vadd.f32 %v476_v3, %v426_v17  ;;  %v992_v48 = vadd.f32 %v976_v16, %v958_v7  ;;  %v1462_v54 = vadd.f32 %v1446_v5, %v1428_v43  ;;  %v1883_v15 = vadd.f32 %v1867_v2, %v1849_v25  ;;  %v6229_v7 = vld [vmem:[#allocation12_spill] sm:$0xff]  ;;  %6232 = vst [vmem:[#allocation41_spill] sm:$0xff] %v3907_v62  ;;  %v6235_v3 = vld [vmem:[#allocation22_spill] sm:$0xff]  ;;  %v6236_v5 = vld [vmem:[#allocation35_spill] sm:$0xff] }
  0xe2   : > { %v895_v25 = vadd.f32 %v6229_v7, %v878_v14  ;;  %v1365_v45 = vadd.f32 %v3907_v62, %v1348_v63  ;;  %v1093_v14 = vadd.f32 %v1077_v31, %v1059_v55  ;;  %v3916_v47 = vadd.f32 %v2044_v0, %v2026_v29  ;;  %v6238_v55 = vld [vmem:[#allocation46_spill] sm:$0xff]  ;;  %v6242_v7 = vld [vmem:[#allocation53_spill] sm:$0xff] }
  0xe3   : > { %v3893_v17 = vadd.f32 %v542_v59, %v492_v33  ;;  %v3895_v43 = vadd.f32 %v1010_v57, %v992_v48  ;;  %v3900_v42 = vadd.f32 %v1480_v58, %v1462_v54  ;;  %v3902_v51 = vadd.f32 %v1901_v6, %v1883_v15  ;;  %v6237_v57 = vld [vmem:[#allocation45_spill] sm:$0xff]  ;;  %v6241_v0 = vld [vmem:[#allocation42_spill] sm:$0xff] }
  0xe4   : > { %6234 = vst [vmem:[#allocation37_spill] sm:$0xff] %v3916_v47  ;;  %v349_v16 = vmul.f32 %v6235_v3, %v326_v1  ;;  %v913_v2 = vmul.f32 %v6236_v5, %v326_v1  ;;  %v805_v39 = vmul.f32 %v3688_v32, %v3871_v27  ;;  %v1615_v63 = vmul.f32 %v3693_v20, %v3871_v27  ;;  %v6243_v3 = vld [vmem:[#allocation54_spill] sm:$0xff] }
  0xe5   : > { %787 = vrot.lane.b32.xlu2 %v2591_v61, %s6129_s29  ;;  %6227 = vst [vmem:[#allocation44_spill] sm:$0xff] %v3893_v17  ;;  %v2036_v33 = vmul.f32 %v6225_v44, %v3871_v27  ;;  %v6240_v61 = vld [vmem:[#allocation23_spill] sm:$0xff] }
  0xe6   : > { %6228 = vst [vmem:[#allocation33_spill] sm:$0xff] %v3895_v43  ;;  %v458_v12 = vpop.permute.xlu2 %457  ;;  %v1383_v9 = vmul.f32 %v6240_v61, %v326_v1  ;;  %v3949_v43 = vld [vmem:[%s2840_s13] sm:$0xff] }
  0xe7   : > { %647 = vrot.lane.b32.xlu0 %v3016_v26, %s6188_s28  ;;  %6230 = vst [vmem:[#allocation5_spill] sm:$0xff] %v3900_v42  ;;  %v710_v26 = vpop.permute.xlu1 %709  ;;  %v3920_v59 = vpop.permute.xlu0 %587  ;;  %v981_v61 = vmul.f32 %v6203_v19, %v458_v12  ;;  %v4018_v19 = vld [vmem:[%s5853_s1 + $0x13] ss:$0 sm:$0xff] }
  0xe8   : > { %6231 = vst [vmem:[#allocation13_spill] sm:$0xff] %v3902_v51  ;;  %729 = vrot.lane.b32.xlu1 %v3912_v40, %s2750_s20  ;;  %v612_v58 = vmul.f32 %v6237_v57, %v3920_v59  ;;  %v1518_v29 = vmul.f32 %v6238_v55, %v3920_v59  ;;  %v1939_v6 = vmul.f32 %v6239_v56, %v3920_v59  ;;  %v6244_v51 = vld [vmem:[#allocation24_spill] sm:$0xff] }
  0xe9   : > { %v739_v48 = vmul.f32 %v6212_v24, %v710_v26  ;;  %v1111_v54 = vmul.f32 %v3603_v8, %v710_v26  ;;  %v1581_v15 = vmul.f32 %v6213_v10, %v710_v26  ;;  %v2002_v31 = vmul.f32 %v6214_v23, %v710_v26  ;;  %6252 = vst [vmem:[#allocation15_spill] sm:$0xff] %v4018_v19 }
  0xea   : > { %v3940_v18 = vadd.f32 %v612_v58, %v6241_v0  ;;  %v3943_v38 = vadd.f32 %v1518_v29, %v6242_v7  ;;  %v3946_v47 = vadd.f32 %v1939_v6, %v6243_v3  ;;  %v1804_v42 = vmul.f32 %v6244_v51, %v326_v1  ;;  %v3964_v1 = vld [vmem:[%s5853_s1 + $0x4] ss:$0 sm:$0xff]  ;;  %v3981_v6 = vld [vmem:[%s5853_s1 + $0xd] ss:$0 sm:$0xff] }
  0xeb   : > { %v755_v17 = vadd.f32 %v739_v48, %v3849_v60  ;;  %v1597_v44 = vadd.f32 %v1581_v15, %v3852_v13  ;;  %v2018_v26 = vadd.f32 %v2002_v31, %v3855_v30  ;;  %v1127_v58 = vadd.f32 %v1111_v54, %v1093_v14  ;;  %6248 = vst [vmem:[#allocation36_spill] sm:$0xff] %v3981_v6 }
  0xec   : > { %v1145_v29 = vmul.f32 %v3677_v28, %v3871_v27  ;;  %v286_v60 = vmul.f32 %v3964_v1, %v3912_v40  ;;  %v365_v14 = vadd.f32 %v349_v16, %v299_v35  ;;  %v882_v48 = vmul.f32 %v3981_v6, %v3912_v40 }
  0xed   : > { %533 = vrot.lane.b32.xlu2 %v3636_v36, %s6125_s9  ;;  %v3968_v13 = vadd.f32 %v805_v39, %v755_v17  ;;  %v3970_v30 = vadd.f32 %v1615_v63, %v1597_v44  ;;  %v3972_v51 = vadd.f32 %v2036_v33, %v2018_v26  ;;  %v3988_v44 = vld [vmem:[%s5853_s1 + $0x16] ss:$0 sm:$0xff]  ;;  %v3995_v17 = vld [vmem:[%s5853_s1 + $0x1f] ss:$0 sm:$0xff]  ;;  %v929_v63 = vadd.f32 %v913_v2, %v895_v25  ;;  %v4006_v26 = vld [vmem:[%s5853_s1 + $0x1] ss:$0 sm:$0xff] }
  0xee   : > { %v3976_v27 = vpop.permute.xlu2 %719  ;;  %6249 = vst [vmem:[#allocation10_spill] sm:$0xff] %v3988_v44  ;;  %v1352_v35 = vmul.f32 %v3988_v44, %v3912_v40  ;;  %v1773_v16 = vmul.f32 %v3995_v17, %v3912_v40  ;;  %v1399_v33 = vadd.f32 %v1383_v9, %v1365_v45  ;;  %v1820_v54 = vadd.f32 %v1804_v42, %v1786_v22  ;;  %v4012_v25 = vld [vmem:[%s5853_s1 + $0xa] ss:$0 sm:$0xff]  ;;  %v4030_v45 = vld [vmem:[%s5854_s2] ss:$0 sm:$0xff] }
  0xef   : > { %305 = vrot.lane.b32.xlu0 %v3949_v43, %s5964_s15  ;;  %6245 = vst [vmem:[#allocation26_spill] sm:$0xff] %v3968_v13  ;;  %v392_v39 = vpop.permute.xlu1 %391  ;;  %v481_v15 = vmul.f32 %v6202_v53, %v458_v12  ;;  %v334_v31 = vpop.permute.xlu0 %333  ;;  %v1451_v0 = vmul.f32 %v6204_v21, %v458_v12  ;;  %v1872_v7 = vmul.f32 %v6219_v46, %v458_v12  ;;  %v4024_v46 = vld [vmem:[%s5853_s1 + $0x1c] ss:$0 sm:$0xff]  ;;  %v4043_v13 = vld [vmem:[%s5854_s2 + $0x3] ss:$0 sm:$0xff] }
  0xf0   : > { %6246 = vst [vmem:[#allocation27_spill] sm:$0xff] %v3970_v30  ;;  %451 = vrot.lane.b32.xlu1 %v3765_v11, %s2746_s16  ;;  %v1161_v3 = vadd.f32 %v1145_v29, %v1127_v58  ;;  %v947_v53 = vmul.f32 %v4012_v25, %v392_v39  ;;  %v1417_v21 = vmul.f32 %v4018_v19, %v392_v39  ;;  %v4036_v29 = vld [vmem:[%s5854_s2 + $0x1] ss:$0 sm:$0xff] }
  0xf1   : > { %6247 = vst [vmem:[#allocation28_spill] sm:$0xff] %v3972_v51  ;;  %v415_v51 = vmul.f32 %v4006_v26, %v392_v39  ;;  %v1838_v42 = vmul.f32 %v4024_v46, %v392_v39  ;;  %v303_v22 = vadd.f32 %v4030_v45, %v286_v60  ;;  %v899_v30 = vadd.f32 %v4036_v29, %v882_v48 }
  0xf2   : > { %6250 = vst [vmem:[#allocation16_spill] sm:$0xff] %v3995_v17  ;;  %v963_v2 = vadd.f32 %v947_v53, %v929_v63  ;;  %v1433_v9 = vadd.f32 %v1417_v21, %v1399_v33  ;;  %v1369_v39 = vadd.f32 %v3907_v62, %v1352_v35  ;;  %v1790_v60 = vadd.f32 %v4043_v13, %v1773_v16  ;;  %v4080_v21 = vld [vmem:[%s5853_s1 + $0x1e] ss:$0 sm:$0xff] }
  0xf3   : > { %6251 = vst [vmem:[#allocation43_spill] sm:$0xff] %v4006_v26  ;;  %v431_v12 = vadd.f32 %v415_v51, %v365_v14  ;;  %v1854_v58 = vadd.f32 %v1838_v42, %v1820_v54  ;;  %v1177_v51 = vmax.f32 %v1161_v3, 0.0  ;;  %v1048_v35 = vmul.f32 %v6197_v50, %v3920_v59  ;;  %v4055_v54 = vld [vmem:[%s5853_s1] ss:$0 sm:$0xff]  ;;  %v4067_v59 = vld [vmem:[%s5853_s1 + $0x3] ss:$0 sm:$0xff] }
  0xf4   : > { %6253 = vst [vmem:[#allocation49_spill] sm:$0xff] %v4030_v45  ;;  %v997_v63 = vadd.f32 %v981_v61, %v963_v2  ;;  %v1467_v48 = vadd.f32 %v1451_v0, %v1433_v9  ;;  %v353_v16 = vmul.f32 %v4055_v54, %v334_v31  ;;  %v917_v3 = vmul.f32 %v6236_v5, %v334_v31  ;;  %v4074_v5 = vld [vmem:[%s5853_s1 + $0x15] ss:$0 sm:$0xff]  ;;  %v4108_v50 = vld [vmem:[%s5853_s1 + $0x1b] ss:$0 sm:$0xff] }
  0xf5   : > { %6254 = vst [vmem:[#allocation50_spill] sm:$0xff] %v4036_v29  ;;  %795 = vrot.lane.b32.xlu2 %v3912_v40, %s6129_s29  ;;  %v497_v14 = vadd.f32 %v481_v15, %v431_v12  ;;  %v1888_v33 = vadd.f32 %v1872_v7, %v1854_v58  ;;  %1233 = vmatmul.f32.vlgmr.msra.gmra.mxu1 %v1177_v51  ;;  %v4060_v40 = vld [vmem:[%s2840_s13 + $0x30] sm:$0xff] }
  0xf6   : > { %6255 = vst [vmem:[#allocation34_spill] sm:$0xff] %v4043_v13  ;;  %v524_v15 = vpop.permute.xlu2 %523 }
  0xf7   : > { %591 = vrot.lane.b32.xlu0 %v3437_v34, %s2748_s18  ;;  %6256 = vst [vmem:[#allocation6_spill] sm:$0xff] %v4055_v54  ;;  %v654_v61 = vpop.permute.xlu1 %653  ;;  %v547_v0 = vmul.f32 %v4067_v59, %v524_v15  ;;  %v1015_v7 = vmul.f32 %v6200_v41, %v524_v15  ;;  %v1485_v53 = vmul.f32 %v4074_v5, %v524_v15  ;;  %v4083_v12 = vpop.permute.xlu0 %595  ;;  %v4088_v41 = vld [vmem:[%s5853_s1 + $0x12] ss:$0 sm:$0xff] }
  0xf8   : > { %713 = vrot.lane.b32.xlu1 %v4060_v40, %s2750_s20  ;;  %6257 = vst [vmem:[#allocation7_spill] sm:$0xff] %v4067_v59  ;;  %v1906_v42 = vmul.f32 %v4080_v21, %v524_v15  ;;  %v1387_v2 = vmul.f32 %v4088_v41, %v334_v31  ;;  %v616_v9 = vmul.f32 %v6237_v57, %v4083_v12 }
  0xf9   : > { %6258 = vst [vmem:[#allocation29_spill] sm:$0xff] %v4074_v5  ;;  %v1522_v58 = vmul.f32 %v6238_v55, %v4083_v12  ;;  %v1943_v51 = vmul.f32 %v6239_v56, %v4083_v12  ;;  %v4097_v5 = vadd.f32 %v547_v0, %v497_v14  ;;  %v4099_v15 = vadd.f32 %v1015_v7, %v997_v63  ;;  %v6267_v63 = vld [vmem:[#allocation39_spill] sm:$0xff]  ;;  %v6268_v0 = vld [vmem:[#allocation40_spill] sm:$0xff] }
  0xfa   : > { %6259 = vst [vmem:[#allocation30_spill] sm:$0xff] %v4080_v21  ;;  %v4101_v21 = vadd.f32 %v1485_v53, %v1467_v48  ;;  %v4103_v59 = vadd.f32 %v1906_v42, %v1888_v33  ;;  %v1808_v57 = vmul.f32 %v4108_v50, %v334_v31  ;;  %v4112_v55 = vadd.f32 %v616_v9, %v3817_v52  ;;  %v6269_v53 = vld [vmem:[#allocation48_spill] sm:$0xff] }
  0xfb   : > { %6260 = vst [vmem:[#allocation31_spill] sm:$0xff] %v4083_v12  ;;  %v4115_v12 = vadd.f32 %v1522_v58, %v3821_v49  ;;  %v4118_v14 = vadd.f32 %v1943_v51, %v3826_v4  ;;  %v678_v48 = vmul.f32 %v6267_v63, %v654_v61  ;;  %v1082_v33 = vmul.f32 %v6207_v37, %v654_v61 }
  0xfc   : > { %6261 = vst [vmem:[#allocation32_spill] sm:$0xff] %v4088_v41  ;;  %v1552_v7 = vmul.f32 %v6268_v0, %v654_v61  ;;  %v1973_v42 = vmul.f32 %v6269_v53, %v654_v61  ;;  %v1116_v52 = vmul.f32 %v3603_v8, %v3976_v27  ;;  %v369_v49 = vadd.f32 %v353_v16, %v303_v22 }
  0xfd   : > { %6262 = vst [vmem:[#allocation8_spill] sm:$0xff] %v4097_v5  ;;  %599 = vrot.lane.b32.xlu2 %v3636_v36, %s2748_s18  ;;  %v694_v4 = vadd.f32 %v678_v48, %v3940_v18  ;;  %v933_v58 = vadd.f32 %v917_v3, %v899_v30  ;;  %v1403_v61 = vadd.f32 %v1387_v2, %v1369_v39 }
  0xfe   : > { %6263 = vst [vmem:[#allocation9_spill] sm:$0xff] %v4099_v15  ;;  %v6270_v15 = vld [vmem:[#allocation52_spill] sm:$0xff]  ;;  %v1568_v31 = vadd.f32 %v1552_v7, %v3943_v38  ;;  %v1989_v9 = vadd.f32 %v1973_v42, %v3946_v47  ;;  %v1824_v51 = vadd.f32 %v1808_v57, %v1790_v60  ;;  %v744_v47 = vmul.f32 %v6212_v24, %v3976_v27 }
  0xff   : > { %6264 = vst [vmem:[#allocation11_spill] sm:$0xff] %v4101_v21  ;;  %371 = vrot.lane.b32.xlu0 %v3949_v43, %s6172_s12  ;;  %v318_v5 = vpop.permute.xlu0 %317  ;;  %v1586_v57 = vmul.f32 %v6213_v10, %v3976_v27  ;;  %v2007_v30 = vmul.f32 %v6214_v23, %v3976_v27  ;;  %v278_v39 = vmul.f32 %v4060_v40, %v3964_v1 }
 0x100   : > { %6265 = vst [vmem:[#allocation12_spill] sm:$0xff] %v4103_v59  ;;  %v1064_v59 = vadd.f32 %v1048_v35, %v6270_v15  ;;  %517 = vrot.lane.b32.xlu1 %v3765_v11, %s6125_s9  ;;  %v786_v35 = vpop.permute.xlu2 %785  ;;  %v400_v15 = vpop.permute.xlu1 %399  ;;  %v874_v48 = vmul.f32 %v4060_v40, %v3981_v6  ;;  %v1765_v27 = vmul.f32 %v4060_v40, %v3995_v17 }
 0x101   : > { %6266 = vst [vmem:[#allocation14_spill] sm:$0xff] %v4108_v50  ;;  %v419_v22 = vmul.f32 %v4006_v26, %v400_v15  ;;  %v951_v16 = vmul.f32 %v4012_v25, %v400_v15  ;;  %v1421_v18 = vmul.f32 %v4018_v19, %v400_v15  ;;  %v1842_v38 = vmul.f32 %v4024_v46, %v400_v15 }
 0x102   : > { %v1098_v21 = vadd.f32 %v1082_v33, %v1064_v59  ;;  %v1344_v33 = vmul.f32 %v4060_v40, %v3988_v44  ;;  %v1150_v42 = vmul.f32 %v3677_v28, %v786_v35  ;;  %v1602_v15 = vadd.f32 %v1586_v57, %v1568_v31  ;;  %v4180_v31 = vld [vmem:[%s5853_s1 + $0x9] ss:$0 sm:$0xff] }
 0x103   : > { %v4148_v60 = vadd.f32 %v419_v22, %v369_v49  ;;  %v4150_v3 = vadd.f32 %v951_v16, %v933_v58  ;;  %v4152_v59 = vadd.f32 %v1421_v18, %v1403_v61  ;;  %v4154_v2 = vadd.f32 %v1842_v38, %v1824_v51  ;;  %6272 = vst [vmem:[#allocation35_spill] sm:$0xff] %v4180_v31 }
 0x104   : > { %v1132_v7 = vadd.f32 %v1116_v52, %v1098_v21  ;;  %v760_v49 = vadd.f32 %v744_v47, %v694_v4  ;;  %v810_v58 = vmul.f32 %v3688_v32, %v786_v35  ;;  %v295_v61 = vadd.f32 %v4030_v45, %v278_v39 }
 0x105   : > { %437 = vrot.lane.b32.xlu2 %v3949_v43, %s2746_s16  ;;  %v2023_v22 = vadd.f32 %v2007_v30, %v1989_v9  ;;  %v891_v16 = vadd.f32 %v4036_v29, %v874_v48  ;;  %v1361_v21 = vadd.f32 %v3907_v62, %v1344_v33  ;;  %v1782_v52 = vadd.f32 %v4043_v13, %v1765_v27  ;;  %v6273_v48 = vld [vmem:[#allocation45_spill] sm:$0xff]  ;;  %v6274_v27 = vld [vmem:[#allocation46_spill] sm:$0xff]  ;;  %v6278_v62 = vld [vmem:[#allocation31_spill] sm:$0xff] }
 0x106   : > { %v1166_v51 = vadd.f32 %v1150_v42, %v1132_v7  ;;  %v4174_v38 = vadd.f32 %v810_v58, %v760_v49  ;;  %v345_v47 = vmul.f32 %v4055_v54, %v318_v5  ;;  %v909_v9 = vmul.f32 %v4180_v31, %v318_v5  ;;  %v6275_v42 = vld [vmem:[#allocation19_spill] sm:$0xff]  ;;  %v6276_v54 = vld [vmem:[#allocation44_spill] sm:$0xff]  ;;  %v6277_v13 = vld [vmem:[#allocation5_spill] sm:$0xff] }
 0x107   : > { %657 = vrot.lane.b32.xlu0 %v3437_v34, %s6188_s28  ;;  %v4183_v30 = vpop.permute.xlu0 %579  ;;  %v1620_v39 = vmul.f32 %v3693_v20, %v786_v35  ;;  %v2041_v49 = vmul.f32 %v6275_v42, %v786_v35  ;;  %v1800_v58 = vmul.f32 %v4108_v50, %v318_v5  ;;  %v6279_v35 = vld [vmem:[#allocation51_spill] sm:$0xff] }
 0x108   : > { %779 = vrot.lane.b32.xlu1 %v4060_v40, %s6129_s29  ;;  %v532_v4 = vpop.permute.xlu2 %531  ;;  %v662_v18 = vpop.permute.xlu1 %661  ;;  %6271 = vst [vmem:[#allocation22_spill] sm:$0xff] %v4174_v38  ;;  %v1182_v57 = vmax.f32 %v1166_v51, 0.0  ;;  %v1379_v40 = vmul.f32 %v4088_v41, %v318_v5  ;;  %v608_v33 = vmul.f32 %v6273_v48, %v4183_v30  ;;  %v1514_v7 = vmul.f32 %v6274_v27, %v4183_v30  ;;  %v6280_v5 = vld [vmem:[#allocation13_spill] sm:$0xff] }
 0x109   : > { %v1935_v51 = vmul.f32 %v6239_v56, %v4183_v30  ;;  %v682_v38 = vmul.f32 %v6267_v63, %v662_v18  ;;  %v1556_v31 = vmul.f32 %v6268_v0, %v662_v18  ;;  %v1977_v27 = vmul.f32 %v6269_v53, %v662_v18 }
 0x10a   : > { %1248 = vmatmul.f32.gmra.mxu2 %v1182_v57  ;;  %v4198_v41 = vadd.f32 %v608_v33, %v6276_v54  ;;  %v4201_v48 = vadd.f32 %v1514_v7, %v6277_v13  ;;  %v1052_v29 = vmul.f32 %v6279_v35, %v6278_v62  ;;  %v4209_v50 = vadd.f32 %v1620_v39, %v1602_v15  ;;  %v6283_v15 = vld [vmem:[#allocation7_spill] sm:$0xff] }
 0x10b   : > { %v4207_v57 = vadd.f32 %v1935_v51, %v6280_v5  ;;  %v4213_v56 = vadd.f32 %v2041_v49, %v2023_v22  ;;  %v4216_v54 = vadd.f32 %v682_v38, %v4112_v55  ;;  %v4219_v13 = vadd.f32 %v1556_v31, %v4115_v12  ;;  %v4230_v55 = vld [vmem:[%s5853_s1 + $0xc] ss:$0 sm:$0xff]  ;;  %v6285_v22 = vld [vmem:[#allocation29_spill] sm:$0xff]  ;;  %v4252_v39 = vld [vmem:[%s5853_s1 + $0x14] ss:$0 sm:$0xff] }
 0x10c   : > { %6281 = vst [vmem:[#allocation47_spill] sm:$0xff] %v4209_v50  ;;  %v4222_v63 = vadd.f32 %v1977_v27, %v4118_v14  ;;  %v361_v62 = vadd.f32 %v345_v47, %v295_v61  ;;  %v925_v0 = vadd.f32 %v909_v9, %v891_v16  ;;  %v1395_v33 = vadd.f32 %v1379_v40, %v1361_v21  ;;  %v6286_v14 = vld [vmem:[#allocation30_spill] sm:$0xff]  ;;  %v4258_v49 = vld [vmem:[%s5853_s1 + $0x1d] ss:$0 sm:$0xff] }
 0x10d   : > { %723 = vrot.lane.b32.xlu2 %v3437_v34, %s2750_s20  ;;  %6282 = vst [vmem:[#allocation23_spill] sm:$0xff] %v4213_v56  ;;  %v1816_v7 = vadd.f32 %v1800_v58, %v1782_v52  ;;  %v551_v34 = vmul.f32 %v6283_v15, %v532_v4  ;;  %v1019_v12 = vmul.f32 %v4230_v55, %v532_v4  ;;  %v4240_v52 = vld [vmem:[%s5853_s1 + $0x2] ss:$0 sm:$0xff]  ;;  %v4246_v9 = vld [vmem:[%s5853_s1 + $0xb] ss:$0 sm:$0xff] }
 0x10e   : > { %6284 = vst [vmem:[#allocation42_spill] sm:$0xff] %v4230_v55  ;;  %v1489_v38 = vmul.f32 %v6285_v22, %v532_v4  ;;  %v1910_v31 = vmul.f32 %v6286_v14, %v532_v4 }
 0x10f   : > { %583 = vrot.lane.b32.xlu0 %v3765_v11, %s2748_s18  ;;  %v384_v21 = vpop.permute.xlu0 %383  ;;  %6287 = vst [vmem:[#allocation53_spill] sm:$0xff] %v4246_v9 }
 0x110   : > { %665 = vrot.lane.b32.xlu1 %v3636_v36, %s6188_s28  ;;  %v794_v61 = vpop.permute.xlu2 %793  ;;  %v466_v16 = vpop.permute.xlu1 %465  ;;  %6288 = vst [vmem:[#allocation54_spill] sm:$0xff] %v4252_v39  ;;  %v411_v51 = vmul.f32 %v4006_v26, %v384_v21  ;;  %v943_v27 = vmul.f32 %v4012_v25, %v384_v21  ;;  %v1413_v5 = vmul.f32 %v4018_v19, %v384_v21 }
 0x111   : > { %v485_v47 = vmul.f32 %v4240_v52, %v466_v16  ;;  %v985_v4 = vmul.f32 %v4246_v9, %v466_v16  ;;  %v1455_v40 = vmul.f32 %v4252_v39, %v466_v16  ;;  %6289 = vst [vmem:[#allocation24_spill] sm:$0xff] %v4258_v49  ;;  %v1876_v58 = vmul.f32 %v4258_v49, %v466_v16 }
 0x112   : > { %v1834_v56 = vmul.f32 %v4024_v46, %v384_v21  ;;  %v4269_v6 = vadd.f32 %v411_v51, %v361_v62  ;;  %v4271_v39 = vadd.f32 %v943_v27, %v925_v0  ;;  %v4273_v16 = vadd.f32 %v1413_v5, %v1395_v33 }
 0x113   : > { %v501_v50 = vadd.f32 %v485_v47, %v4148_v60  ;;  %v1001_v45 = vadd.f32 %v985_v4, %v4150_v3  ;;  %v1471_v17 = vadd.f32 %v1455_v40, %v4152_v59  ;;  %v1892_v44 = vadd.f32 %v1876_v58, %v4154_v2  ;;  %v6293_v2 = vld [vmem:[#allocation20_spill] sm:$0xff] }
 0x114   : > { %v4275_v26 = vadd.f32 %v1834_v56, %v1816_v7  ;;  %v1086_v19 = vmul.f32 %v6207_v37, %v662_v18  ;;  %v1068_v62 = vadd.f32 %v1052_v29, %v6293_v2  ;;  %v4299_v29 = vld [vmem:[%s5853_s1 + $0x6] ss:$0 sm:$0xff]  ;;  %v4305_v7 = vld [vmem:[%s5853_s1 + $0x18] ss:$0 sm:$0xff] }
 0x115   : > { %731 = vrot.lane.b32.xlu2 %v3636_v36, %s2750_s20  ;;  %v4280_v60 = vadd.f32 %v551_v34, %v501_v50  ;;  %v4282_v3 = vadd.f32 %v1019_v12, %v1001_v45  ;;  %v4284_v59 = vadd.f32 %v1489_v38, %v1471_v17  ;;  %v4289_v0 = vadd.f32 %v1910_v31, %v1892_v44 }
 0x116   : > { %v1102_v33 = vadd.f32 %v1086_v19, %v1068_v62  ;;  %v1154_v50 = vmul.f32 %v3677_v28, %v794_v61  ;;  %v814_v17 = vmul.f32 %v3688_v32, %v794_v61  ;;  %v1624_v45 = vmul.f32 %v3693_v20, %v794_v61  ;;  %6295 = vst [vmem:[#allocation45_spill] sm:$0xff] %v4299_v29 }
 0x117   : > { %6290 = vst [vmem:[#allocation39_spill] sm:$0xff] %v4280_v60  ;;  %503 = vrot.lane.b32.xlu0 %v3949_v43, %s6125_s9  ;;  %v646_v56 = vpop.permute.xlu0 %645  ;;  %v2045_v12 = vmul.f32 %v6275_v42, %v794_v61  ;;  %v6326_v60 = vld [vmem:[#allocation14_spill] sm:$0xff] }
 0x118   : > { %6291 = vst [vmem:[#allocation40_spill] sm:$0xff] %v4282_v3  ;;  %649 = vrot.lane.b32.xlu1 %v3765_v11, %s6188_s28  ;;  %v516_v37 = vpop.permute.xlu2 %515  ;;  %v728_v18 = vpop.permute.xlu1 %727  ;;  %v674_v44 = vmul.f32 %v4299_v29, %v646_v56  ;;  %v1548_v19 = vmul.f32 %v4305_v7, %v646_v56  ;;  %v1969_v34 = vmul.f32 %v6269_v53, %v646_v56  ;;  %v4324_v53 = vld [vmem:[%s2840_s13 + $0x8] sm:$0xff]  ;;  %v4427_v3 = vld [vmem:[%s5853_s1 + $0x19] ss:$0 sm:$0xff] }
 0x119   : > { %6292 = vst [vmem:[#allocation48_spill] sm:$0xff] %v4284_v59  ;;  %v748_v38 = vmul.f32 %v6212_v24, %v728_v18  ;;  %v1120_v31 = vmul.f32 %v3603_v8, %v728_v18  ;;  %v1590_v21 = vmul.f32 %v6213_v10, %v728_v18  ;;  %v2011_v47 = vmul.f32 %v6214_v23, %v728_v18  ;;  %v2620_v23 = vld [vmem:[%s2840_s13 + $0x58] sm:$0xff] }
 0x11a   : > { %6294 = vst [vmem:[#allocation52_spill] sm:$0xff] %v4289_v0  ;;  %v4315_v4 = vadd.f32 %v674_v44, %v4198_v41  ;;  %v4318_v40 = vadd.f32 %v1548_v19, %v4201_v48  ;;  %v4321_v58 = vadd.f32 %v1969_v34, %v4207_v57  ;;  %v543_v18 = vmul.f32 %v6283_v15, %v516_v37  ;;  %v6301_v19 = vld [vmem:[#allocation54_spill] sm:$0xff]  ;;  %v6325_v0 = vld [vmem:[#allocation12_spill] sm:$0xff] }
 0x11b   : > { %6296 = vst [vmem:[#allocation46_spill] sm:$0xff] %v4305_v7  ;;  %v1136_v61 = vadd.f32 %v1120_v31, %v1102_v33  ;;  %v764_v24 = vadd.f32 %v748_v38, %v4216_v54  ;;  %v1606_v51 = vadd.f32 %v1590_v21, %v4219_v13  ;;  %v2027_v10 = vadd.f32 %v2011_v47, %v4222_v63  ;;  %v6303_v38 = vld [vmem:[#allocation36_spill] sm:$0xff]  ;;  %v6304_v21 = vld [vmem:[#allocation10_spill] sm:$0xff] }
 0x11c   : > { %v1044_v13 = vmul.f32 %v6279_v35, %v4183_v30  ;;  %v283_v63 = vmul.f32 %v2620_v23, %v3964_v1  ;;  %v1011_v33 = vmul.f32 %v4230_v55, %v516_v37  ;;  %v4357_v35 = vld [vmem:[%s5853_s1 + $0xf] ss:$0 sm:$0xff]  ;;  %v879_v31 = vmul.f32 %v2620_v23, %v6303_v38  ;;  %v6305_v47 = vld [vmem:[#allocation16_spill] sm:$0xff]  ;;  %6320 = vst [vmem:[#allocation10_spill] sm:$0xff] %v4427_v3 }
 0x11d   : > { %569 = vrot.lane.b32.xlu2 %v3949_v43, %s2748_s18  ;;  %v1170_v41 = vadd.f32 %v1154_v50, %v1136_v61  ;;  %v4333_v48 = vadd.f32 %v814_v17, %v764_v24  ;;  %v4335_v57 = vadd.f32 %v1624_v45, %v1606_v51  ;;  %v4337_v27 = vadd.f32 %v2045_v12, %v2027_v10  ;;  %v6323_v7 = vld [vmem:[#allocation8_spill] sm:$0xff] }
 0x11e   : > { %v1481_v50 = vmul.f32 %v6285_v22, %v516_v37  ;;  %v1902_v17 = vmul.f32 %v6286_v14, %v516_v37  ;;  %6302 = vst [vmem:[#allocation31_spill] sm:$0xff] %v4357_v35  ;;  %v1078_v12 = vmul.f32 %v4357_v35, %v646_v56  ;;  %v1349_v37 = vmul.f32 %v2620_v23, %v6304_v21 }
 0x11f   : > { %789 = vrot.lane.b32.xlu0 %v2620_v23, %s6129_s29  ;;  %6297 = vst [vmem:[#allocation19_spill] sm:$0xff] %v4333_v48  ;;  %v328_v5 = vpop.permute.xlu0 %327  ;;  %v1186_v62 = vmax.f32 %v1170_v41, 0.0  ;;  %v1770_v61 = vmul.f32 %v2620_v23, %v6305_v47 }
 0x120   : > { %6298 = vst [vmem:[#allocation44_spill] sm:$0xff] %v4335_v57  ;;  %307 = vrot.lane.b32.xlu1 %v4324_v53, %s6300_s11  ;;  %v4341_v54 = vpop.permute.xlu2 %777  ;;  %v450_v2 = vpop.permute.xlu1 %449 }
 0x121   : > { %6299 = vst [vmem:[#allocation5_spill] sm:$0xff] %v4337_v27  ;;  %v477_v45 = vmul.f32 %v4240_v52, %v450_v2  ;;  %v977_v44 = vmul.f32 %v4246_v9, %v450_v2  ;;  %v1447_v34 = vmul.f32 %v6301_v19, %v450_v2  ;;  %v1868_v30 = vmul.f32 %v4258_v49, %v450_v2  ;;  %v6306_v2 = vld [vmem:[#allocation33_spill] sm:$0xff] }
 0x122   : > { %1260 = vmatmul.f32.gmra.mxu3 %v1186_v62  ;;  %v1060_v62 = vadd.f32 %v1044_v13, %v6306_v2  ;;  %v6307_v27 = vld [vmem:[#allocation49_spill] sm:$0xff]  ;;  %v6315_v2 = vld [vmem:[#allocation6_spill] sm:$0xff] }
 0x123   : > { %v493_v24 = vadd.f32 %v477_v45, %v4269_v6  ;;  %v993_v51 = vadd.f32 %v977_v44, %v4271_v39  ;;  %v1463_v10 = vadd.f32 %v1447_v34, %v4273_v16  ;;  %v1884_v41 = vadd.f32 %v1868_v30, %v4275_v26  ;;  %v6312_v16 = vld [vmem:[#allocation50_spill] sm:$0xff]  ;;  %v6313_v45 = vld [vmem:[#allocation41_spill] sm:$0xff] }
 0x124   : > { %v300_v57 = vadd.f32 %v6307_v27, %v283_v63  ;;  %v896_v26 = vadd.f32 %v6312_v16, %v879_v31  ;;  %v1366_v13 = vadd.f32 %v6313_v45, %v1349_v37  ;;  %v6314_v44 = vld [vmem:[#allocation34_spill] sm:$0xff]  ;;  %v1094_v30 = vadd.f32 %v1078_v12, %v1060_v62  ;;  %v4397_v37 = vld [vmem:[%s5853_s1 + $0x5] ss:$0 sm:$0xff]  ;;  %v4420_v62 = vld [vmem:[%s5853_s1 + $0x7] ss:$0 sm:$0xff] }
 0x125   : > { %373 = vrot.lane.b32.xlu2 %v4324_v53, %s6172_s12  ;;  %v4373_v56 = vadd.f32 %v543_v18, %v493_v24  ;;  %v4375_v23 = vadd.f32 %v1011_v33, %v993_v51  ;;  %v4377_v6 = vadd.f32 %v1481_v50, %v1463_v10  ;;  %v4379_v39 = vadd.f32 %v1902_v17, %v1884_v41  ;;  %v6316_v24 = vld [vmem:[#allocation35_spill] sm:$0xff] }
 0x126   : > { %v1787_v63 = vadd.f32 %v6314_v44, %v1770_v61  ;;  %v350_v18 = vmul.f32 %v6315_v2, %v328_v5  ;;  %v914_v33 = vmul.f32 %v6316_v24, %v328_v5  ;;  %v806_v17 = vmul.f32 %v3688_v32, %v4341_v54  ;;  %v4404_v61 = vld [vmem:[%s5853_s1 + $0x17] ss:$0 sm:$0xff]  ;;  %v4411_v32 = vld [vmem:[%s5853_s1 + $0x20] ss:$0 sm:$0xff]  ;;  %6319 = vst [vmem:[#allocation36_spill] sm:$0xff] %v4420_v62 }
 0x127   : > { %715 = vrot.lane.b32.xlu0 %v3765_v11, %s2750_s20  ;;  %6308 = vst [vmem:[#allocation51_spill] sm:$0xff] %v4373_v56  ;;  %v1616_v31 = vmul.f32 %v3693_v20, %v4341_v54  ;;  %v2037_v41 = vmul.f32 %v6275_v42, %v4341_v54  ;;  %v4433_v42 = vld [vmem:[%s5853_s1 + $0x22] ss:$0 sm:$0xff]  ;;  %v6322_v56 = vld [vmem:[#allocation32_spill] sm:$0xff] }
 0x128   : > { %6309 = vst [vmem:[#allocation13_spill] sm:$0xff] %v4375_v23  ;;  %797 = vrot.lane.b32.xlu1 %v3636_v36, %s6129_s29  ;;  %v460_v34 = vpop.permute.xlu2 %459  ;;  %v4388_v51 = vpop.permute.xlu0 %589  ;;  %v1384_v44 = vmul.f32 %v6322_v56, %v328_v5 }
 0x129   : > { %6310 = vst [vmem:[#allocation7_spill] sm:$0xff] %v4377_v6  ;;  %v712_v50 = vpop.permute.xlu1 %711  ;;  %v613_v12 = vmul.f32 %v4397_v37, %v4388_v51  ;;  %v1519_v10 = vmul.f32 %v4404_v61, %v4388_v51  ;;  %v1940_v20 = vmul.f32 %v4411_v32, %v4388_v51 }
 0x12a   : > { %6311 = vst [vmem:[#allocation29_spill] sm:$0xff] %v4379_v39  ;;  %v740_v48 = vmul.f32 %v4420_v62, %v712_v50  ;;  %v1112_v23 = vmul.f32 %v3603_v8, %v712_v50  ;;  %v1582_v39 = vmul.f32 %v4427_v3, %v712_v50  ;;  %v2003_v6 = vmul.f32 %v4433_v42, %v712_v50  ;;  %v6324_v8 = vld [vmem:[#allocation11_spill] sm:$0xff] }
 0x12b   : > { %6317 = vst [vmem:[#allocation30_spill] sm:$0xff] %v4404_v61  ;;  %v4438_v35 = vadd.f32 %v613_v12, %v6323_v7  ;;  %v4441_v29 = vadd.f32 %v1519_v10, %v6324_v8  ;;  %v4444_v59 = vadd.f32 %v1940_v20, %v6325_v0  ;;  %v1805_v3 = vmul.f32 %v6326_v60, %v328_v5 }
 0x12c   : > { %6318 = vst [vmem:[#allocation20_spill] sm:$0xff] %v4411_v32  ;;  %v756_v24 = vadd.f32 %v740_v48, %v4315_v4  ;;  %v1598_v32 = vadd.f32 %v1582_v39, %v4318_v40  ;;  %v2019_v61 = vadd.f32 %v2003_v6, %v4321_v58  ;;  %v1128_v50 = vadd.f32 %v1112_v23, %v1094_v30 }
 0x12d   : > { %6321 = vst [vmem:[#allocation16_spill] sm:$0xff] %v4433_v42  ;;  %v1146_v42 = vmul.f32 %v3677_v28, %v4341_v54  ;;  %439 = vrot.lane.b32.xlu2 %v4324_v53, %s2746_s16  ;;  %v366_v4 = vadd.f32 %v350_v18, %v300_v57  ;;  %v287_v28 = vmul.f32 %v3964_v1, %v3636_v36 }
 0x12e   : > { %v4456_v0 = vadd.f32 %v806_v17, %v756_v24  ;;  %v4458_v7 = vadd.f32 %v1616_v31, %v1598_v32  ;;  %v4460_v5 = vadd.f32 %v2037_v41, %v2019_v61  ;;  %v883_v58 = vmul.f32 %v6303_v38, %v3636_v36  ;;  %v6330_v17 = vld [vmem:[#allocation43_spill] sm:$0xff] }
 0x12f   : > { %635 = vrot.lane.b32.xlu0 %v3949_v43, %s6188_s28  ;;  %v930_v48 = vadd.f32 %v914_v33, %v896_v26  ;;  %v1400_v54 = vadd.f32 %v1384_v44, %v1366_v13  ;;  %v1821_v23 = vadd.f32 %v1805_v3, %v1787_v63  ;;  %v482_v6 = vmul.f32 %v4240_v52, %v460_v34  ;;  %v6331_v61 = vld [vmem:[#allocation15_spill] sm:$0xff]  ;;  %v2628_v3 = vld [vmem:[%s2840_s13 + $0x78] sm:$0xff] }
 0x130   : > { %6327 = vst [vmem:[#allocation33_spill] sm:$0xff] %v4456_v0  ;;  %781 = vrot.lane.b32.xlu1 %v3765_v11, %s6129_s29  ;;  %v4464_v40 = vpop.permute.xlu2 %721  ;;  %v982_v57 = vmul.f32 %v4246_v9, %v460_v34  ;;  %v1452_v30 = vmul.f32 %v6301_v19, %v460_v34  ;;  %v1873_v11 = vmul.f32 %v4258_v49, %v460_v34  ;;  %v6341_v0 = vld [vmem:[#allocation52_spill] sm:$0xff]  ;;  %v4531_v9 = vld [vmem:[%s2840_s13 + $0x10] sm:$0xff] }
 0x131   : > { %6328 = vst [vmem:[#allocation49_spill] sm:$0xff] %v4458_v7  ;;  %v336_v39 = vpop.permute.xlu0 %335  ;;  %v1162_v24 = vadd.f32 %v1146_v42, %v1128_v50  ;;  %v1353_v13 = vmul.f32 %v2628_v3, %v6304_v21  ;;  %v304_v32 = vadd.f32 %v6307_v27, %v287_v28  ;;  %v900_v34 = vadd.f32 %v6312_v16, %v883_v58 }
 0x132   : > { %6329 = vst [vmem:[#allocation50_spill] sm:$0xff] %v4460_v5  ;;  %v394_v18 = vpop.permute.xlu1 %393  ;;  %v1774_v20 = vmul.f32 %v2628_v3, %v6305_v47  ;;  %v745_v58 = vmul.f32 %v4420_v62, %v4464_v40  ;;  %v6340_v5 = vld [vmem:[#allocation48_spill] sm:$0xff] }
 0x133   : > { %v416_v31 = vmul.f32 %v6330_v17, %v394_v18  ;;  %v948_v12 = vmul.f32 %v4012_v25, %v394_v18  ;;  %v1418_v36 = vmul.f32 %v6331_v61, %v394_v18  ;;  %v1839_v26 = vmul.f32 %v4024_v46, %v394_v18  ;;  %6342 = vst [vmem:[#allocation11_spill] sm:$0xff] %v4531_v9 }
 0x134   : > { %v1178_v41 = vmax.f32 %v1162_v24, 0.0  ;;  %v6332_v24 = vld [vmem:[#allocation30_spill] sm:$0xff] }
 0x135   : > { %v432_v44 = vadd.f32 %v416_v31, %v366_v4  ;;  %v964_v63 = vadd.f32 %v948_v12, %v930_v48  ;;  %v1434_v33 = vadd.f32 %v1418_v36, %v1400_v54  ;;  %v1855_v10 = vadd.f32 %v1839_v26, %v1821_v23  ;;  %767 = vrot.lane.b32.xlu2 %v3949_v43, %s6129_s29  ;;  %v4490_v48 = vld [vmem:[%s5853_s1 + $0xe] ss:$0 sm:$0xff]  ;;  %v6333_v12 = vld [vmem:[#allocation20_spill] sm:$0xff] }
 0x136   : > { %v1049_v28 = vmul.f32 %v4490_v48, %v4388_v51  ;;  %v1370_v54 = vadd.f32 %v6313_v45, %v1353_v13  ;;  %1236 = vmatmul.f32.gmra.mxu1 %v1178_v41  ;;  %v6339_v41 = vld [vmem:[#allocation39_spill] sm:$0xff] }
 0x137   : > { %701 = vrot.lane.b32.xlu0 %v3949_v43, %s2750_s20  ;;  %v498_v42 = vadd.f32 %v482_v6, %v432_v44  ;;  %v998_v8 = vadd.f32 %v982_v57, %v964_v63  ;;  %v1468_v50 = vadd.f32 %v1452_v30, %v1434_v33  ;;  %v1889_v4 = vadd.f32 %v1873_v11, %v1855_v10  ;;  %v6338_v33 = vld [vmem:[#allocation35_spill] sm:$0xff] }
 0x138   : > { %505 = vrot.lane.b32.xlu1 %v4324_v53, %s6125_s9  ;;  %v526_v43 = vpop.permute.xlu2 %525  ;;  %v354_v11 = vmul.f32 %v6315_v2, %v336_v39  ;;  %v918_v10 = vmul.f32 %v6338_v33, %v336_v39 }
 0x139   : > { %v548_v23 = vmul.f32 %v6283_v15, %v526_v43  ;;  %v1016_v6 = vmul.f32 %v4230_v55, %v526_v43  ;;  %v1486_v57 = vmul.f32 %v6285_v22, %v526_v43  ;;  %v1907_v30 = vmul.f32 %v6286_v14, %v526_v43  ;;  %v4503_v51 = vpop.permute.xlu0 %597 }
 0x13a   : > { %v617_v18 = vmul.f32 %v4397_v37, %v4503_v51  ;;  %v1523_v31 = vmul.f32 %v6332_v24, %v4503_v51  ;;  %v1944_v36 = vmul.f32 %v6333_v12, %v4503_v51  ;;  %v656_v26 = vpop.permute.xlu1 %655 }
 0x13b   : > { %v4512_v3 = vadd.f32 %v548_v23, %v498_v42  ;;  %v4514_v13 = vadd.f32 %v1016_v6, %v998_v8  ;;  %v4516_v44 = vadd.f32 %v1486_v57, %v1468_v50  ;;  %v4518_v63 = vadd.f32 %v1907_v30, %v1889_v4  ;;  %v6343_v42 = vld [vmem:[#allocation45_spill] sm:$0xff]  ;;  %v6344_v23 = vld [vmem:[#allocation31_spill] sm:$0xff]  ;;  %v6345_v6 = vld [vmem:[#allocation46_spill] sm:$0xff] }
 0x13c   : > { %v4522_v43 = vadd.f32 %v617_v18, %v6339_v41  ;;  %v4525_v7 = vadd.f32 %v1523_v31, %v6340_v5  ;;  %v4528_v55 = vadd.f32 %v1944_v36, %v6341_v0  ;;  %v679_v8 = vmul.f32 %v6343_v42, %v656_v26  ;;  %v4539_v57 = vld [vmem:[%s5853_s1 + $0x21] ss:$0 sm:$0xff]  ;;  %v6348_v31 = vld [vmem:[#allocation34_spill] sm:$0xff] }
 0x13d   : > { %6334 = vst [vmem:[#allocation41_spill] sm:$0xff] %v4512_v3  ;;  %v1083_v50 = vmul.f32 %v6344_v23, %v656_v26  ;;  %v1553_v4 = vmul.f32 %v6345_v6, %v656_v26  ;;  %v1974_v30 = vmul.f32 %v4539_v57, %v656_v26  ;;  %v6347_v5 = vld [vmem:[#allocation9_spill] sm:$0xff]  ;;  %v1791_v0 = vadd.f32 %v6348_v31, %v1774_v20  ;;  %v4558_v20 = vld [vmem:[%s5853_s1 + $0x10] ss:$0 sm:$0xff] }
 0x13e   : > { %6335 = vst [vmem:[#allocation6_spill] sm:$0xff] %v4514_v13  ;;  %v1065_v18 = vadd.f32 %v1049_v28, %v6347_v5  ;;  %v1388_v36 = vmul.f32 %v6322_v56, %v336_v39  ;;  %v1809_v41 = vmul.f32 %v6326_v60, %v336_v39  ;;  %375 = vrot.lane.b32.xlu2 %v4531_v9, %s6172_s12 }
 0x13f   : > { %6336 = vst [vmem:[#allocation32_spill] sm:$0xff] %v4516_v44  ;;  %309 = vrot.lane.b32.xlu0 %v4531_v9, %s6300_s11  ;;  %v695_v13 = vadd.f32 %v679_v8, %v4438_v35  ;;  %v4553_v26 = vadd.f32 %v1974_v30, %v4444_v59  ;;  %v1117_v39 = vmul.f32 %v4558_v20, %v4464_v40  ;;  %v6350_v35 = vld [vmem:[#allocation10_spill] sm:$0xff] }
 0x140   : > { %6337 = vst [vmem:[#allocation8_spill] sm:$0xff] %v4518_v63  ;;  %v1569_v63 = vadd.f32 %v1553_v4, %v4441_v29  ;;  %571 = vrot.lane.b32.xlu1 %v4324_v53, %s2748_s18  ;;  %v4564_v28 = vpop.permute.xlu2 %787  ;;  %v1099_v5 = vadd.f32 %v1083_v50, %v1065_v18  ;;  %v1587_v29 = vmul.f32 %v6350_v35, %v4464_v40  ;;  %v4578_v50 = vld [vmem:[%s5853_s1 + $0x8] ss:$0 sm:$0xff] }
 0x141   : > { %6346 = vst [vmem:[#allocation12_spill] sm:$0xff] %v4539_v57  ;;  %v370_v59 = vadd.f32 %v354_v11, %v304_v32  ;;  %v934_v8 = vadd.f32 %v918_v10, %v900_v34  ;;  %v320_v4 = vpop.permute.xlu0 %319  ;;  %v761_v30 = vadd.f32 %v745_v58, %v695_v13  ;;  %v1404_v44 = vadd.f32 %v1388_v36, %v1370_v54  ;;  %v2634_v13 = vld [vmem:[%s2840_s13 + $0x38] sm:$0xff] }
 0x142   : > { %6349 = vst [vmem:[#allocation14_spill] sm:$0xff] %v4558_v20  ;;  %v1825_v3 = vadd.f32 %v1809_v41, %v1791_v0  ;;  %v402_v62 = vpop.permute.xlu1 %401  ;;  %v4571_v20 = vld [vmem:[%s5853_s1 + $0x11] ss:$0 sm:$0xff]  ;;  %v811_v32 = vmul.f32 %v4578_v50, %v4564_v28  ;;  %v279_v10 = vmul.f32 %v2634_v13, %v3964_v1  ;;  %v875_v18 = vmul.f32 %v2634_v13, %v6303_v38 }
 0x143   : > { %6351 = vst [vmem:[#allocation43_spill] sm:$0xff] %v4571_v20  ;;  %v1151_v49 = vmul.f32 %v4571_v20, %v4564_v28  ;;  %v420_v34 = vmul.f32 %v6330_v17, %v402_v62  ;;  %v952_v58 = vmul.f32 %v4012_v25, %v402_v62  ;;  %v1422_v54 = vmul.f32 %v6331_v61, %v402_v62 }
 0x144   : > { %6352 = vst [vmem:[#allocation15_spill] sm:$0xff] %v4578_v50  ;;  %v1843_v11 = vmul.f32 %v4024_v46, %v402_v62  ;;  %v1345_v0 = vmul.f32 %v2634_v13, %v6304_v21  ;;  %v1133_v36 = vadd.f32 %v1117_v39, %v1099_v5  ;;  %v4602_v1 = vadd.f32 %v811_v32, %v761_v30 }
 0x145   : > { %v4590_v41 = vadd.f32 %v420_v34, %v370_v59  ;;  %v4592_v20 = vadd.f32 %v952_v58, %v934_v8  ;;  %v4594_v35 = vadd.f32 %v1422_v54, %v1404_v44  ;;  %v1603_v38 = vadd.f32 %v1587_v29, %v1569_v63  ;;  %v6355_v58 = vld [vmem:[#allocation51_spill] sm:$0xff] }
 0x146   : > { %v4596_v50 = vadd.f32 %v1843_v11, %v1825_v3  ;;  %v1167_v19 = vadd.f32 %v1151_v49, %v1133_v36  ;;  %703 = vrot.lane.b32.xlu2 %v4324_v53, %s2750_s20  ;;  %6353 = vst [vmem:[#allocation30_spill] sm:$0xff] %v4602_v1  ;;  %v296_v21 = vadd.f32 %v6307_v27, %v279_v10  ;;  %v6354_v49 = vld [vmem:[#allocation16_spill] sm:$0xff]  ;;  %v6356_v11 = vld [vmem:[#allocation7_spill] sm:$0xff]  ;;  %v6357_v10 = vld [vmem:[#allocation29_spill] sm:$0xff] }
 0x147   : > { %637 = vrot.lane.b32.xlu0 %v4324_v53, %s6188_s28  ;;  %v1766_v62 = vmul.f32 %v2634_v13, %v6305_v47  ;;  %v2008_v39 = vmul.f32 %v6354_v49, %v4464_v40  ;;  %v892_v5 = vadd.f32 %v6312_v16, %v875_v18  ;;  %v1362_v59 = vadd.f32 %v6313_v45, %v1345_v0  ;;  %v4619_v27 = vld [vmem:[%s5853_s1 + $0x1a] ss:$0 sm:$0xff] }
 0x148   : > { %441 = vrot.lane.b32.xlu1 %v4531_v9, %s2746_s16  ;;  %v1183_v44 = vmax.f32 %v1167_v19, 0.0  ;;  %v4608_v3 = vpop.permute.xlu2 %533  ;;  %v1621_v47 = vmul.f32 %v4619_v27, %v4564_v28  ;;  %v346_v19 = vmul.f32 %v6315_v2, %v320_v4  ;;  %v910_v29 = vmul.f32 %v6338_v33, %v320_v4  ;;  %v4647_v36 = vld [vmem:[%s2840_s13 + $0x18] sm:$0xff] }
 0x149   : > { %v4614_v8 = vpop.permute.xlu0 %581  ;;  %v1380_v34 = vmul.f32 %v6322_v56, %v320_v4  ;;  %v1783_v0 = vadd.f32 %v6348_v31, %v1766_v62  ;;  %v1801_v33 = vmul.f32 %v6326_v60, %v320_v4  ;;  %6358 = vst [vmem:[#allocation20_spill] sm:$0xff] %v4647_v36  ;;  %v2024_v56 = vadd.f32 %v2008_v39, %v4553_v26 }
 0x14a   : > { %1251 = vmatmul.f32.gmra.mxu2 %v1183_v44  ;;  %v609_v40 = vmul.f32 %v4397_v37, %v4614_v8  ;;  %v1515_v16 = vmul.f32 %v6332_v24, %v4614_v8  ;;  %v1936_v45 = vmul.f32 %v6333_v12, %v4614_v8  ;;  %v664_v63 = vpop.permute.xlu1 %663  ;;  %v4649_v44 = vadd.f32 %v1621_v47, %v1603_v38 }
 0x14b   : > { %v683_v30 = vmul.f32 %v6343_v42, %v664_v63  ;;  %v1557_v32 = vmul.f32 %v6345_v6, %v664_v63  ;;  %v1978_v2 = vmul.f32 %v4539_v57, %v664_v63  ;;  %v1053_v4 = vmul.f32 %v4490_v48, %v4503_v51 }
 0x14c   : > { %v4636_v54 = vadd.f32 %v609_v40, %v6355_v58  ;;  %v4639_v13 = vadd.f32 %v1515_v16, %v6356_v11  ;;  %v4642_v18 = vadd.f32 %v1936_v45, %v6357_v10  ;;  %6359 = vst [vmem:[#allocation35_spill] sm:$0xff] %v4649_v44  ;;  %v4657_v40 = vld [vmem:[%s5853_s1 + $0x23] ss:$0 sm:$0xff]  ;;  %v362_v38 = vadd.f32 %v346_v19, %v296_v21 }
 0x14d   : > { %6360 = vst [vmem:[#allocation39_spill] sm:$0xff] %v4657_v40  ;;  %v2042_v16 = vmul.f32 %v4657_v40, %v4564_v28  ;;  %v4662_v31 = vadd.f32 %v683_v30, %v4522_v43  ;;  %v4665_v60 = vadd.f32 %v1557_v32, %v4525_v7  ;;  %v4672_v26 = vadd.f32 %v1978_v2, %v4528_v55  ;;  %v6362_v32 = vld [vmem:[#allocation54_spill] sm:$0xff] }
 0x14e   : > { %311 = vrot.lane.b32.xlu2 %v4647_v36, %s6300_s11  ;;  %v926_v62 = vadd.f32 %v910_v29, %v892_v5  ;;  %v1396_v39 = vadd.f32 %v1380_v34, %v1362_v59  ;;  %v1817_v7 = vadd.f32 %v1801_v33, %v1783_v0  ;;  %v552_v47 = vmul.f32 %v6283_v15, %v4608_v3  ;;  %v6363_v34 = vld [vmem:[#allocation24_spill] sm:$0xff] }
 0x14f   : > { %507 = vrot.lane.b32.xlu0 %v4531_v9, %s6125_s9  ;;  %v4676_v28 = vadd.f32 %v2042_v16, %v2024_v56  ;;  %v1490_v51 = vmul.f32 %v6285_v22, %v4608_v3  ;;  %v1911_v55 = vmul.f32 %v6286_v14, %v4608_v3  ;;  %v1087_v29 = vmul.f32 %v6344_v23, %v664_v63  ;;  %v6365_v0 = vld [vmem:[#allocation40_spill] sm:$0xff] }
 0x150   : > { %769 = vrot.lane.b32.xlu1 %v4324_v53, %s6129_s29  ;;  %v796_v43 = vpop.permute.xlu2 %795  ;;  %v1069_v33 = vadd.f32 %v1053_v4, %v6365_v0 }
 0x151   : > { %6361 = vst [vmem:[#allocation48_spill] sm:$0xff] %v4676_v28  ;;  %v386_v45 = vpop.permute.xlu0 %385  ;;  %v6370_v28 = vld [vmem:[#allocation43_spill] sm:$0xff] }
 0x152   : > { %v412_v21 = vmul.f32 %v6330_v17, %v386_v45  ;;  %v944_v5 = vmul.f32 %v4012_v25, %v386_v45  ;;  %v1414_v53 = vmul.f32 %v6331_v61, %v386_v45  ;;  %v1835_v59 = vmul.f32 %v4024_v46, %v386_v45  ;;  %v4688_v19 = vpop.permute.xlu1 %467 }
 0x153   : > { %v486_v30 = vmul.f32 %v4240_v52, %v4688_v19  ;;  %v1456_v2 = vmul.f32 %v6362_v32, %v4688_v19  ;;  %v1877_v58 = vmul.f32 %v6363_v34, %v4688_v19  ;;  %v1155_v44 = vmul.f32 %v6370_v28, %v796_v43 }
 0x154   : > { %v428_v17 = vadd.f32 %v412_v21, %v362_v38  ;;  %v4697_v11 = vadd.f32 %v944_v5, %v926_v62  ;;  %v1430_v25 = vadd.f32 %v1414_v53, %v1396_v39  ;;  %v1851_v61 = vadd.f32 %v1835_v59, %v1817_v7  ;;  %v6366_v7 = vld [vmem:[#allocation15_spill] sm:$0xff] }
 0x155   : > { %v502_v46 = vadd.f32 %v486_v30, %v4590_v41  ;;  %v1472_v10 = vadd.f32 %v1456_v2, %v4594_v35  ;;  %v1893_v63 = vadd.f32 %v1877_v58, %v4596_v50  ;;  %v1103_v41 = vadd.f32 %v1087_v29, %v1069_v33  ;;  %v6367_v2 = vld [vmem:[#allocation36_spill] sm:$0xff] }
 0x156   : > { %6364 = vst [vmem:[#allocation52_spill] sm:$0xff] %v4697_v11  ;;  %639 = vrot.lane.b32.xlu2 %v4531_v9, %s6188_s28  ;;  %v1625_v5 = vmul.f32 %v4619_v27, %v796_v43  ;;  %v2046_v30 = vmul.f32 %v4657_v40, %v796_v43  ;;  %v2091_v11 = vld [vmem:[%s5855_s3 + $0x1d8] sm:$0xff] }
 0x157   : > { %573 = vrot.lane.b32.xlu0 %v4531_v9, %s2748_s18  ;;  %v568_v56 = vadd.f32 %v552_v47, %v502_v46  ;;  %v1506_v16 = vadd.f32 %v1490_v51, %v1472_v10  ;;  %v1927_v38 = vadd.f32 %v1911_v55, %v1893_v63  ;;  %v815_v47 = vmul.f32 %v6366_v7, %v796_v43  ;;  %v6368_v46 = vld [vmem:[#allocation14_spill] sm:$0xff] }
 0x158   : > { %377 = vrot.lane.b32.xlu1 %v4647_v36, %s6172_s12  ;;  %v4709_v62 = vpop.permute.xlu2 %599  ;;  %v6369_v63 = vld [vmem:[#allocation10_spill] sm:$0xff] }
 0x159   : > { %v618_v35 = vmul.f32 %v4397_v37, %v4709_v62  ;;  %v1524_v50 = vmul.f32 %v6332_v24, %v4709_v62  ;;  %v1945_v4 = vmul.f32 %v6333_v12, %v4709_v62  ;;  %v4717_v39 = vpop.permute.xlu0 %647 }
 0x15a   : > { %v675_v51 = vmul.f32 %v6343_v42, %v4717_v39  ;;  %v1549_v55 = vmul.f32 %v6345_v6, %v4717_v39  ;;  %v1970_v45 = vmul.f32 %v4539_v57, %v4717_v39  ;;  %v730_v21 = vpop.permute.xlu1 %729 }
 0x15b   : > { %v4727_v53 = vadd.f32 %v618_v35, %v568_v56  ;;  %v4729_v59 = vadd.f32 %v1524_v50, %v1506_v16  ;;  %v4731_v29 = vadd.f32 %v1945_v4, %v1927_v38  ;;  %v749_v58 = vmul.f32 %v6367_v2, %v730_v21 }
 0x15c   : > { %v1121_v10 = vmul.f32 %v6368_v46, %v730_v21  ;;  %v1591_v0 = vmul.f32 %v6369_v63, %v730_v21  ;;  %v2012_v33 = vmul.f32 %v6354_v49, %v730_v21  ;;  %v691_v1 = vadd.f32 %v675_v51, %v4636_v54 }
 0x15d   : > { %v1565_v56 = vadd.f32 %v1549_v55, %v4639_v13  ;;  %v1986_v16 = vadd.f32 %v1970_v45, %v4642_v18  ;;  %v765_v35 = vadd.f32 %v749_v58, %v4662_v31 }
 0x15e   : > { %v1137_v38 = vadd.f32 %v1121_v10, %v1103_v41  ;;  %509 = vrot.lane.b32.xlu2 %v4647_v36, %s6125_s9  ;;  %v1607_v50 = vadd.f32 %v1591_v0, %v4665_v60  ;;  %v2028_v4 = vadd.f32 %v2012_v33, %v4672_v26  ;;  %v6374_v0 = vld [vmem:[#allocation41_spill] sm:$0xff] }
 0x15f   : > { %443 = vrot.lane.b32.xlu0 %v4647_v36, %s2746_s16  ;;  %v4753_v13 = vadd.f32 %v815_v47, %v765_v35  ;;  %s2700_s16 = scalar_lea.hbm %s5858_s6, 512 }
 0x160   : > { %705 = vrot.lane.b32.xlu1 %v4531_v9, %s2750_s20  ;;  %v4751_v54 = vpop.permute.xlu2 %437  ;;  %v4755_v18 = vadd.f32 %v1625_v5, %v1607_v50  ;;  %v4757_v43 = vadd.f32 %v2046_v30, %v2028_v4  ;;  %v1171_v60 = vadd.f32 %v1155_v44, %v1137_v38  ;;  %v6375_v38 = vld [vmem:[#allocation32_spill] sm:$0xff] }
 0x161   : > { %6371 = vst [vmem:[#allocation45_spill] sm:$0xff] %v4753_v13  ;;  %v4759_v41 = vpop.permute.xlu0 %305  ;;  %v6376_v50 = vld [vmem:[#allocation8_spill] sm:$0xff]  ;;  %v1671_v13 = vld [vmem:[%s5855_s3 + $0x160] sm:$0xff] }
 0x162   : > { %6372 = vst [vmem:[#allocation31_spill] sm:$0xff] %v4755_v18  ;;  %v4761_v31 = vpop.permute.xlu1 %451  ;;  %v1187_v5 = vmax.f32 %v1171_v60, 0.0 }
 0x163   : > { %6373 = vst [vmem:[#allocation46_spill] sm:$0xff] %v4757_v43  ;;  %v478_v26 = vmul.f32 %v4240_v52, %v4761_v31  ;;  %v1448_v51 = vmul.f32 %v6362_v32, %v4761_v31  ;;  %v1869_v55 = vmul.f32 %v6363_v34, %v4761_v31 }
 0x164   : > { %1263 = vmatmul.f32.gmra.mxu3 %v1187_v5 }
 0x165   : > { %v494_v47 = vadd.f32 %v478_v26, %v428_v17  ;;  %v1464_v45 = vadd.f32 %v1448_v51, %v1430_v25  ;;  %v1885_v21 = vadd.f32 %v1869_v55, %v1851_v61 }
 0x166   : > { %641 = vrot.lane.b32.xlu2 %v4647_v36, %s6188_s28 }
 0x167   : > { %771 = vrot.lane.b32.xlu0 %v4531_v9, %s6129_s29 }
 0x168   : > { %575 = vrot.lane.b32.xlu1 %v4647_v36, %s2748_s18  ;;  %v4775_v44 = vpop.permute.xlu2 %723  ;;  %s243_s18 = sand.u32 1, %s2734_s22  }
 0x169   : > { %v4777_v32 = vpop.permute.xlu0 %591  ;;  %s2348_s26 = scalar_lea.sflag [#allocation3], %s243_s18 }
 0x16a   : > { %v714_v30 = vpop.permute.xlu1 %713  ;;  %v614_v34 = vmul.f32 %v4397_v37, %v4777_v32  ;;  %v1520_v17 = vmul.f32 %v6332_v24, %v4777_v32  ;;  %v1941_v25 = vmul.f32 %v6333_v12, %v4777_v32 }
 0x16b   : > { %v741_v61 = vmul.f32 %v6367_v2, %v714_v30  ;;  %v1583_v58 = vmul.f32 %v6369_v63, %v714_v30  ;;  %v2004_v10 = vmul.f32 %v6354_v49, %v714_v30 }
 0x16c   : > { %v4789_v33 = vadd.f32 %v614_v34, %v6374_v0  ;;  %v4792_v35 = vadd.f32 %v1520_v17, %v6375_v38  ;;  %v4795_v4 = vadd.f32 %v1941_v25, %v6376_v50  ;;  %v1079_v25 = vmul.f32 %v6344_v23, %v4717_v39  ;;  %v1673_v39 = vld [vmem:[%s5855_s3 + $0x170] sm:$0xff]  ;;  %v862_v38 = vld [vmem:[%s5855_s3 + $0x68] sm:$0xff] }
 0x16d   : > { %v4797_v60 = vadd.f32 %v741_v61, %v691_v1  ;;  %v4799_v26 = vadd.f32 %v1583_v58, %v1565_v56  ;;  %v4801_v51 = vadd.f32 %v2004_v10, %v1986_v16  ;;  %v1045_v1 = vmul.f32 %v4490_v48, %v4614_v8  ;;  %v864_v8 = vld [vmem:[%s5855_s3 + $0x78] sm:$0xff]  ;;  %v2094_v0 = vld [vmem:[%s5855_s3 + $0x1f0] sm:$0xff] }
 0x16e   : > { %1270 = vmatpush.msrb.mxu1 %v864_v8 }
 0x16f   : > { %707 = vrot.lane.b32.xlu0 %v4647_v36, %s2750_s20  ;;  %s2429_s20 = sshll.u32 %s243_s18, 7 }
 0x170   : > { %773 = vrot.lane.b32.xlu1 %v4647_v36, %s6129_s29  ;;  %v4811_v34 = vpop.permute.xlu2 %731  ;;  %v1588_v36 = vmul.f32 %v6369_v63, %v4775_v44  ;;  %s5790_s9 = scalar_lea.vmem [#allocation2], %s2429_s20  ;;  %s2453_s29 = sshll.u32 %s2809_s25, 7 }
 0x171   : > { %v4807_v55 = vpop.permute.xlu0 %371  ;;  %s2359_s15 = scalar_lea.hbm %s5858_s6, %s2453_s29  ;;  %s2360_s10 = sshll.u32 %s5790_s9, 4  ;;  %s2361_s10 = int_to_ptr.vmem [resolvable:$true] %s2360_s10 }
 0x172   : > { %v4809_v5 = vpop.permute.xlu1 %517  ;;  %s2362_s17 = sshll.u32 %s2359_s15, 4  ;;  %s2363_s17 = int_to_ptr.hbm [resolvable:$true] %s2362_s17 }
 0x173   : > { %v544_v56 = vmul.f32 %v6283_v15, %v4809_v5  ;;  %v1482_v16 = vmul.f32 %v6285_v22, %v4809_v5  ;;  %v1903_v17 = vmul.f32 %v6286_v14, %v4809_v5  ;;  %v1674_v15 = vld [vmem:[%s5855_s3 + $0x178] sm:$0xff]  ;;  %v863_v14 = vld [vmem:[%s5855_s3 + $0x70] sm:$0xff]  ;;  %s2694_s14 = sshra.s32 %s2363_s17, 4  ;;  %s2695_s14 = int_to_ptr.hbm [resolvable:$true] %s2694_s14 }
 0x174   : > { %v2095_v22 = vld [vmem:[%s5855_s3 + $0x1f8] sm:$0xff]  ;;  %1675 = vmatpush.msrb.mxu2 %v1674_v15  ;;  %1271 = vmatpush.msrb.mxu1 %v863_v14  ;;  %v861_v14 = vld [vmem:[%s5855_s3 + $0x60] sm:$0xff]  ;;  %s2696_s19 = scalar_lea.hbm %s2695_s14, 128  ;;  %p2701_p0 = scmp.lt.s32.totalorder %s2695_s14, %s5858_s6 }
 0x175   : > { %v4823_v61 = vadd.f32 %v544_v56, %v494_v47  ;;  %v4825_v58 = vadd.f32 %v1482_v16, %v1464_v45  ;;  %v4827_v10 = vadd.f32 %v1903_v17, %v1885_v21  ;;  %v6377_v47 = vld [vmem:[#allocation13_spill] sm:$0xff]  ;;  %v1113_v21 = vmul.f32 %v6368_v46, %v714_v30  ;;  %2096 = vmatpush.msrb.mxu3 %v2095_v22  ;;  %v2093_v30 = vld [vmem:[%s5855_s3 + $0x1e8] sm:$0xff]  ;;  %p2697_p11 = scmp.ne.s32.totalorder %s2695_s14, %s2696_s19  ;;  %p2702_p1 = scmp.lt.s32.totalorder %s2700_s16, %s2696_s19 }
 0x176   : > { %v1061_v45 = vadd.f32 %v1045_v1, %v6377_v47  ;;  %1676 = vmatpush.msrb.mxu2 %v1673_v39  ;;  %v1672_v1 = vld [vmem:[%s5855_s3 + $0x168] sm:$0xff]  ;;  %v4863_v16 = vld [vmem:[%s5853_s1 + $0x4] ss:$0 sm:$0xff]  ;;  %1272 = vmatpush.msrb.mxu1 %v862_v38 }
 0x177   : > { %6378 = vst [vmem:[#allocation9_spill] sm:$0xff] %v4863_v16  ;;  %v2638_v17 = vld [vmem:[%s2840_s13] sm:$0xff]  ;;  %2097 = vmatpush.msrb.mxu3 %v2094_v0  ;;  %p2698_p12 = pnand %p2697_p11, %p2826_p5  ;;  %p2703_p2 = por %p2702_p1, %p2701_p0 }
 0x178   : > { %v1095_v56 = vadd.f32 %v1079_v25, %v1061_v45  ;;  %v4867_v8 = vmul.f32 %v2638_v17, %v4863_v16  ;;  %v6379_v39 = vld [vmem:[#allocation53_spill] sm:$0xff]  ;;  %v746_v45 = vmul.f32 %v6367_v2, %v4775_v44  ;;  %v4891_v9 = vpop.permute.xlu2 %569  ;;  %1677 = vmatpush.msrb.mxu2 %v1672_v1  ;;  %1273 = vmatpush.msrb.mxu1 %v861_v14  ;;  %v1670_v16 = vld [vmem:[%s5855_s3 + $0x158] sm:$0xff] }
 0x179   : > { %v4852_v50 = vpop.permute.xlu0 %657  ;;  %v986_v47 = vmul.f32 %v6379_v39, %v4688_v19  ;;  %v2092_v0 = vld [vmem:[%s5855_s3 + $0x1e0] sm:$0xff]  ;;  %6380 = vst [vmem:[#allocation34_spill] sm:$0xff] %v4891_v9  ;;  %2098 = vmatpush.msrb.mxu3 %v2093_v30  ;;  %p2699_p13 = pneg %p2698_p12 }
 0x17a   : > { %v780_v15 = vpop.permute.xlu1 %779  ;;  %v680_v25 = vmul.f32 %v6343_v42, %v4852_v50  ;;  %v1554_v22 = vmul.f32 %v6345_v6, %v4852_v50  ;;  %v1129_v43 = vadd.f32 %v1113_v21, %v1095_v56  ;;  %v1975_v19 = vmul.f32 %v4539_v57, %v4852_v50  ;;  %v860_v21 = vld [vmem:[%s5855_s3 + $0x58] sm:$0xff]  ;;  %1678 = vmatpush.msrb.mxu2 %v1671_v13  ;;  %v4930_v13 = vld [vmem:[%s5853_s1 + $0x16] ss:$0 sm:$0xff] }
 0x17b   : > { %v1147_v18 = vmul.f32 %v6370_v28, %v780_v15  ;;  %v807_v38 = vmul.f32 %v6366_v7, %v780_v15  ;;  %v1617_v9 = vmul.f32 %v4619_v27, %v780_v15  ;;  %v2038_v1 = vmul.f32 %v4657_v40, %v780_v15  ;;  %v4909_v7 = vld [vmem:[%s5853_s1 + $0xd] ss:$0 sm:$0xff]  ;;  %2099 = vmatpush.msrb.mxu3 %v2092_v0  ;;  %v4945_v0 = vld [vmem:[%s5853_s1 + $0x1f] ss:$0 sm:$0xff]  ;;  %p2704_p3 = pnand %p2703_p2, %p2699_p13 }
 0x17c   : > { %v696_v30 = vadd.f32 %v680_v25, %v4789_v33  ;;  %v1570_v14 = vadd.f32 %v1554_v22, %v4792_v35  ;;  %1274 = vmatpush.msrb.mxu1 %v860_v21  ;;  %v859_v33 = vld [vmem:[%s5855_s3 + $0x50] sm:$0xff]  ;;  %v1338_v35 = vmul.f32 %v4930_v13, %v2638_v17  ;;  %1679 = vmatpush.msrb.mxu2 %v1670_v16  ;;  %v1668_v21 = vld [vmem:[%s5855_s3 + $0x148] sm:$0xff] }
 0x17d   : > { %v1163_v56 = vadd.f32 %v1147_v18, %v1129_v43  ;;  %v868_v18 = vmul.f32 %v4909_v7, %v2638_v17  ;;  %v4913_v43 = vadd.f32 %v807_v38, %v4797_v60  ;;  %v4920_v15 = vadd.f32 %v1617_v9, %v4799_v26  ;;  %2100 = vmatpush.msrb.mxu3 %v2091_v11  ;;  %v1669_v60 = vld [vmem:[%s5855_s3 + $0x150] sm:$0xff] }
 0x17e   : > { %v4923_v25 = vadd.f32 %v2038_v1, %v4801_v51  ;;  %v4925_v40 = vadd.f32 %v746_v45, %v696_v30  ;;  %v4936_v9 = vadd.f32 %v1588_v36, %v1570_v14  ;;  %v1991_v26 = vadd.f32 %v1975_v19, %v4795_v4  ;;  %v6384_v51 = vld [vmem:[#allocation42_spill] sm:$0xff]  ;;  %v2090_v4 = vld [vmem:[%s5855_s3 + $0x1d0] sm:$0xff]  ;;  %1275 = vmatpush.msrb.mxu1 %v859_v33 }
 0x17f   : > { %6381 = vst [vmem:[#allocation16_spill] sm:$0xff] %v4913_v43  ;;  %v1179_v28 = vmax.f32 %v1163_v56, 0.0  ;;  %v1020_v22 = vmul.f32 %v6384_v51, %v4608_v3  ;;  %v1002_v45 = vadd.f32 %v986_v47, %v4592_v20  ;;  %v1759_v11 = vmul.f32 %v4945_v0, %v2638_v17  ;;  %v858_v19 = vld [vmem:[%s5855_s3 + $0x48] sm:$0xff]  ;;  %1680 = vmatpush.msrb.mxu2 %v1669_v60  ;;  %v857_v60 = vld [vmem:[%s5855_s3 + $0x40] sm:$0xff] }
 0x180   : > { %6382 = vst [vmem:[#allocation51_spill] sm:$0xff] %v4920_v15  ;;  %v2009_v16 = vmul.f32 %v6354_v49, %v4775_v44  ;;  %v750_v20 = vmul.f32 %v6367_v2, %v4811_v34  ;;  %v1592_v38 = vmul.f32 %v6369_v63, %v4811_v34  ;;  %v2089_v14 = vld [vmem:[%s5855_s3 + $0x1c8] sm:$0xff]  ;;  %v2013_v33 = vmul.f32 %v6354_v49, %v4811_v34  ;;  %v1667_v43 = vld [vmem:[%s5855_s3 + $0x140] sm:$0xff] }
 0x181   : > { %6383 = vst [vmem:[#allocation7_spill] sm:$0xff] %v4923_v25  ;;  %1239 = vmatmul.f32.gmra.mxu1 %v1179_v28  ;;  %v4950_v36 = vpop.permute.xlu0 %583  ;;  %2101 = vmatpush.msrb.mxu3 %v2090_v4 }
 0x182   : > { %v4957_v3 = vpop.permute.xlu1 %665  ;;  %v610_v47 = vmul.f32 %v4397_v37, %v4950_v36  ;;  %v1516_v17 = vmul.f32 %v6332_v24, %v4950_v36  ;;  %v1937_v28 = vmul.f32 %v6333_v12, %v4950_v36  ;;  %1276 = vmatpush.msrb.mxu1 %v858_v19  ;;  %1681 = vmatpush.msrb.mxu2 %v1668_v21 }
 0x183   : > { %v684_v56 = vmul.f32 %v6343_v42, %v4957_v3  ;;  %v1558_v1 = vmul.f32 %v6345_v6, %v4957_v3  ;;  %v1979_v30 = vmul.f32 %v4539_v57, %v4957_v3  ;;  %v5011_v4 = vadd.f32 %v2009_v16, %v1991_v26  ;;  %2102 = vmatpush.msrb.mxu3 %v2089_v14  ;;  %v5040_v14 = vld [vmem:[%s5854_s2 + $0x3] ss:$0 sm:$0xff] }
 0x184   : > { %v4985_v51 = vadd.f32 %v610_v47, %v4823_v61  ;;  %v4988_v25 = vadd.f32 %v1516_v17, %v4825_v58  ;;  %v4991_v15 = vadd.f32 %v1937_v28, %v4827_v10  ;;  %v5002_v61 = vld [vmem:[%s5854_s2] ss:$0 sm:$0xff]  ;;  %v5016_v47 = vld [vmem:[%s5854_s2 + $0x1] ss:$0 sm:$0xff]  ;;  %v5021_v28 = vpop.permute.xlu2 %373  ;;  %v5029_v21 = vadd.f32 %v1020_v22, %v1002_v45  ;;  %6387 = vst [vmem:[#allocation24_spill] sm:$0xff] %v5040_v14 }
 0x185   : > { %v5006_v58 = vadd.f32 %v5002_v61, %v4867_v8  ;;  %v2088_v10 = vld [vmem:[%s5855_s3 + $0x1c0] sm:$0xff]  ;;  %v5019_v17 = vadd.f32 %v5016_v47, %v868_v18  ;;  %6385 = vst [vmem:[#allocation29_spill] sm:$0xff] %v5021_v28  ;;  %v856_v8 = vld [vmem:[%s5855_s3 + $0x38] sm:$0xff]  ;;  %v700_v19 = vadd.f32 %v684_v56, %v4727_v53  ;;  %v1574_v26 = vadd.f32 %v1558_v1, %v4729_v59 }
 0x186   : > { %v1995_v16 = vadd.f32 %v1979_v30, %v4731_v29  ;;  %v5034_v18 = vld [vmem:[%s5854_s2 + $0x2] ss:$0 sm:$0xff]  ;;  %v1776_v53 = vadd.f32 %v5040_v14, %v1759_v11  ;;  %1277 = vmatpush.msrb.mxu1 %v857_v60  ;;  %1682 = vmatpush.msrb.mxu2 %v1667_v43  ;;  %v1666_v59 = vld [vmem:[%s5855_s3 + $0x138] sm:$0xff]  ;;  %v1050_v29 = vmul.f32 %v4490_v48, %v4777_v32  ;;  %v5064_v11 = vld [vmem:[%s5853_s1] ss:$0 sm:$0xff] }
 0x187   : > { %6386 = vst [vmem:[#allocation54_spill] sm:$0xff] %v5034_v18  ;;  %v1355_v28 = vadd.f32 %v5034_v18, %v1338_v35  ;;  %2103 = vmatpush.msrb.mxu3 %v2088_v10  ;;  %v2087_v35 = vld [vmem:[%s5855_s3 + $0x1b8] sm:$0xff]  ;;  %v5051_v22 = vadd.f32 %v750_v20, %v700_v19  ;;  %v5053_v45 = vadd.f32 %v1592_v38, %v1574_v26  ;;  %v5084_v30 = vld [vmem:[%s5853_s1 + $0x9] ss:$0 sm:$0xff] }
 0x188   : > { %v5055_v56 = vadd.f32 %v2013_v33, %v1995_v16  ;;  %v5059_v43 = vmul.f32 %v4490_v48, %v4709_v62  ;;  %6391 = vst [vmem:[#allocation10_spill] sm:$0xff] %v5064_v11  ;;  %v339_v32 = vmul.f32 %v5064_v11, %v4759_v41  ;;  %v5070_v20 = vmul.f32 %v4240_v52, %v4751_v54  ;;  %v855_v62 = vld [vmem:[%s5855_s3 + $0x30] sm:$0xff]  ;;  %v5098_v10 = vld [vmem:[%s5853_s1 + $0x1b] ss:$0 sm:$0xff]  ;;  %v2085_v11 = vld [vmem:[%s5855_s3 + $0x1a8] sm:$0xff] }
 0x189   : > { %6388 = vst [vmem:[#allocation40_spill] sm:$0xff] %v5051_v22  ;;  %v5074_v38 = vmul.f32 %v6379_v39, %v4751_v54  ;;  %v5076_v1 = vpop.permute.xlu0 %503  ;;  %1278 = vmatpush.msrb.mxu1 %v856_v8  ;;  %v903_v52 = vmul.f32 %v5084_v30, %v4759_v41  ;;  %v5091_v33 = vld [vmem:[%s5853_s1 + $0x12] ss:$0 sm:$0xff]  ;;  %v1794_v8 = vmul.f32 %v5098_v10, %v4759_v41 }
 0x18a   : > { %6389 = vst [vmem:[#allocation36_spill] sm:$0xff] %v5053_v45  ;;  %v1373_v60 = vmul.f32 %v5091_v33, %v4759_v41  ;;  %v1084_v19 = vmul.f32 %v6344_v23, %v4852_v50  ;;  %v5104_v26 = vpop.permute.xlu1 %649  ;;  %1683 = vmatpush.msrb.mxu2 %v1666_v59  ;;  %v1665_v16 = vld [vmem:[%s5855_s3 + $0x130] sm:$0xff]  ;;  %v978_v45 = vmul.f32 %v6379_v39, %v4761_v31  ;;  %v5127_v31 = vld [vmem:[%s5853_s1 + $0x1] ss:$0 sm:$0xff] }
 0x18b   : > { %6390 = vst [vmem:[#allocation14_spill] sm:$0xff] %v5055_v56  ;;  %v2086_v56 = vld [vmem:[%s5855_s3 + $0x1b0] sm:$0xff]  ;;  %v676_v41 = vmul.f32 %v6343_v42, %v5104_v26  ;;  %v1550_v50 = vmul.f32 %v6345_v6, %v5104_v26  ;;  %v1971_v59 = vmul.f32 %v4539_v57, %v5104_v26  ;;  %2104 = vmatpush.msrb.mxu3 %v2087_v35  ;;  %v5134_v6 = vld [vmem:[%s5853_s1 + $0xa] ss:$0 sm:$0xff]  ;;  %v5154_v57 = vld [vmem:[%s5853_s1 + $0x1c] ss:$0 sm:$0xff] }
 0x18c   : > { %6392 = vst [vmem:[#allocation41_spill] sm:$0xff] %v5084_v30  ;;  %v405_v42 = vmul.f32 %v5127_v31, %v4807_v55  ;;  %v937_v39 = vmul.f32 %v5134_v6, %v4807_v55  ;;  %1279 = vmatpush.msrb.mxu1 %v855_v62  ;;  %1684 = vmatpush.msrb.mxu2 %v1665_v16  ;;  %v853_v62 = vld [vmem:[%s5855_s3 + $0x20] sm:$0xff] }
 0x18d   : > { %6393 = vst [vmem:[#allocation32_spill] sm:$0xff] %v5091_v33  ;;  %v6395_v33 = vld [vmem:[#allocation6_spill] sm:$0xff]  ;;  %2105 = vmatpush.msrb.mxu3 %v2086_v56  ;;  %v355_v22 = vadd.f32 %v339_v32, %v5006_v58  ;;  %v919_v14 = vadd.f32 %v903_v52, %v5019_v17  ;;  %v1118_v18 = vmul.f32 %v6368_v46, %v4775_v44  ;;  %v1663_v56 = vld [vmem:[%s5855_s3 + $0x120] sm:$0xff]  ;;  %v852_v58 = vld [vmem:[%s5855_s3 + $0x18] sm:$0xff]  ;;  %v5204_v52 = vpop.permute.xlu2 %439 }
 0x18e   : > { %6394 = vst [vmem:[#allocation8_spill] sm:$0xff] %v5098_v10  ;;  %v854_v10 = vld [vmem:[%s5855_s3 + $0x28] sm:$0xff]  ;;  %v1066_v30 = vadd.f32 %v1050_v29, %v6395_v33  ;;  %v5141_v29 = vld [vmem:[%s5853_s1 + $0x13] ss:$0 sm:$0xff]  ;;  %v1389_v16 = vadd.f32 %v1373_v60, %v1355_v28  ;;  %v5181_v44 = vadd.f32 %v1971_v59, %v4991_v15  ;;  %v5186_v17 = vld [vmem:[%s5853_s1 + $0x14] ss:$0 sm:$0xff] }
 0x18f   : > { %6396 = vst [vmem:[#allocation13_spill] sm:$0xff] %v5127_v31  ;;  %v1407_v35 = vmul.f32 %v5141_v29, %v4807_v55  ;;  %v1664_v33 = vld [vmem:[%s5855_s3 + $0x128] sm:$0xff]  ;;  %v5165_v31 = vadd.f32 %v1550_v50, %v4988_v25  ;;  %1280 = vmatpush.msrb.mxu1 %v854_v10  ;;  %v1810_v25 = vadd.f32 %v1794_v8, %v1776_v53  ;;  %v5193_v28 = vld [vmem:[%s5853_s1 + $0x1d] ss:$0 sm:$0xff]  ;;  %v6400_v59 = vld [vmem:[#allocation43_spill] sm:$0xff] }
 0x190   : > { %6397 = vst [vmem:[#allocation53_spill] sm:$0xff] %v5134_v6  ;;  %v1828_v6 = vmul.f32 %v5154_v57, %v4807_v55  ;;  %v1100_v55 = vadd.f32 %v1084_v19, %v1066_v30  ;;  %1685 = vmatpush.msrb.mxu2 %v1664_v33  ;;  %2106 = vmatpush.msrb.mxu3 %v2085_v11  ;;  %v5200_v15 = vld [vmem:[%s5853_s1 + $0xc] ss:$0 sm:$0xff]  ;;  %v1662_v60 = vld [vmem:[%s5855_s3 + $0x118] sm:$0xff] }
 0x191   : > { %6398 = vst [vmem:[#allocation42_spill] sm:$0xff] %v5141_v29  ;;  %v5162_v29 = vadd.f32 %v676_v41, %v4985_v51  ;;  %v2084_v51 = vld [vmem:[%s5855_s3 + $0x1a0] sm:$0xff]  ;;  %v1441_v32 = vmul.f32 %v5186_v17, %v4751_v54  ;;  %v1862_v53 = vmul.f32 %v5193_v28, %v4751_v54  ;;  %v1012_v11 = vmul.f32 %v5200_v15, %v4809_v5  ;;  %v5209_v54 = vpop.permute.xlu0 %789  ;;  %v2083_v41 = vld [vmem:[%s5855_s3 + $0x198] sm:$0xff]  ;;  %v851_v5 = vld [vmem:[%s5855_s3 + $0x10] sm:$0xff] }
 0x192   : > { %6399 = vst [vmem:[#allocation6_spill] sm:$0xff] %v5154_v57  ;;  %v421_v30 = vadd.f32 %v405_v42, %v355_v22  ;;  %1281 = vmatpush.msrb.mxu1 %v853_v62  ;;  %v953_v10 = vadd.f32 %v937_v39, %v919_v14  ;;  %v1423_v8 = vadd.f32 %v1407_v35, %v1389_v16  ;;  %v5217_v22 = vpop.permute.xlu1 %307  ;;  %v1661_v42 = vld [vmem:[%s5855_s3 + $0x110] sm:$0xff]  ;;  %v6402_v62 = vld [vmem:[#allocation52_spill] sm:$0xff] }
 0x193   : > { %v1844_v19 = vadd.f32 %v1828_v6, %v1810_v25  ;;  %1686 = vmatpush.msrb.mxu2 %v1663_v56  ;;  %2107 = vmatpush.msrb.mxu3 %v2084_v51  ;;  %v1134_v50 = vadd.f32 %v1118_v18, %v1100_v55  ;;  %v1152_v14 = vmul.f32 %v6400_v59, %v5209_v54  ;;  %v6401_v6 = vld [vmem:[#allocation15_spill] sm:$0xff] }
 0x194   : > { %1282 = vmatpush.msrb.mxu1 %v852_v58  ;;  %v812_v39 = vmul.f32 %v6401_v6, %v5209_v54  ;;  %v1622_v35 = vmul.f32 %v4619_v27, %v5209_v54  ;;  %v1070_v33 = vadd.f32 %v5059_v43, %v5029_v21  ;;  %v994_v18 = vadd.f32 %v978_v45, %v6402_v62  ;;  %v2082_v56 = vld [vmem:[%s5855_s3 + $0x190] sm:$0xff]  ;;  %v6405_v43 = vld [vmem:[#allocation9_spill] sm:$0xff] }
 0x195   : > { %v1088_v55 = vmul.f32 %v6344_v23, %v4957_v3  ;;  %1687 = vmatpush.msrb.mxu2 %v1662_v60  ;;  %v1168_v51 = vadd.f32 %v1152_v14, %v1134_v50  ;;  %2108 = vmatpush.msrb.mxu3 %v2083_v41  ;;  %v1122_v45 = vmul.f32 %v6368_v46, %v4811_v34  ;;  %v2657_v3 = vld [vmem:[%s2840_s13 + $0x8] sm:$0xff]  ;;  %v849_v41 = vld [vmem:[%s5855_s3] sm:$0xff] }
 0x196   : > { %1283 = vmatpush.msrb.mxu1 %v851_v5  ;;  %v5237_v16 = vadd.f32 %v812_v39, %v4925_v40  ;;  %v5240_v25 = vadd.f32 %v1622_v35, %v4936_v9  ;;  %v1028_v21 = vadd.f32 %v1012_v11, %v994_v18  ;;  %v487_v23 = vadd.f32 %v5070_v20, %v421_v30  ;;  %v850_v60 = vld [vmem:[%s5855_s3 + $0x8] sm:$0xff]  ;;  %v2080_v39 = vld [vmem:[%s5855_s3 + $0x180] sm:$0xff] }
 0x197   : > { %v273_v58 = vmul.f32 %v2657_v3, %v6405_v43  ;;  %1688 = vmatpush.msrb.mxu2 %v1661_v42  ;;  %v1660_v40 = vld [vmem:[%s5855_s3 + $0x108] sm:$0xff]  ;;  %v987_v34 = vadd.f32 %v5074_v38, %v953_v10  ;;  %v1457_v11 = vadd.f32 %v1441_v32, %v1423_v8  ;;  %v1878_v20 = vadd.f32 %v1862_v53, %v1844_v19  ;;  %v1659_v38 = vld [vmem:[%s5855_s3 + $0x100] sm:$0xff]  ;;  %v5274_v19 = vpop.permute.xlu2 %767 }
 0x198   : > { %6403 = vst [vmem:[#allocation43_spill] sm:$0xff] %v5237_v16  ;;  %v2081_v9 = vld [vmem:[%s5855_s3 + $0x188] sm:$0xff]  ;;  %v1184_v30 = vmax.f32 %v1168_v51, 0.0  ;;  %2109 = vmatpush.msrb.mxu3 %v2082_v56  ;;  %1284 = vmatpush.msrb.mxu1 %v850_v60  ;;  %v869_v5 = vmul.f32 %v2657_v3, %v4909_v7  ;;  %v1339_v50 = vmul.f32 %v2657_v3, %v4930_v13  ;;  %v6407_v56 = vld [vmem:[#allocation39_spill] sm:$0xff] }
 0x199   : > { %6404 = vst [vmem:[#allocation15_spill] sm:$0xff] %v5240_v25  ;;  %v1760_v14 = vmul.f32 %v2657_v3, %v4945_v0  ;;  %v1104_v42 = vadd.f32 %v1088_v55, %v1070_v33  ;;  %1689 = vmatpush.msrb.mxu2 %v1660_v40  ;;  %v1046_v32 = vmul.f32 %v4490_v48, %v4950_v36  ;;  %v6406_v53 = vld [vmem:[#allocation34_spill] sm:$0xff]  ;;  %v716_v62 = vpop.permute.xlu0 %715 }
 0x19a   : > { %v603_v10 = vmul.f32 %v4397_v37, %v6406_v53  ;;  %v5272_v8 = vmul.f32 %v4490_v48, %v6406_v53  ;;  %1254 = vmatmul.f32.gmra.mxu2 %v1184_v30  ;;  %2110 = vmatpush.msrb.mxu3 %v2081_v9  ;;  %v1509_v35 = vmul.f32 %v6332_v24, %v6406_v53  ;;  %v5286_v37 = vld [vmem:[%s5853_s1 + $0x3] ss:$0 sm:$0xff]  ;;  %v5293_v18 = vpop.permute.xlu1 %797  ;;  %v6410_v25 = vld [vmem:[#allocation54_spill] sm:$0xff] }
 0x19b   : > { %v1930_v36 = vmul.f32 %v6333_v12, %v6406_v53  ;;  %v537_v48 = vmul.f32 %v5286_v37, %v5076_v1  ;;  %v5291_v33 = vadd.f32 %v5002_v61, %v273_v58  ;;  %1285 = vmatpush.msrb.mxu1 %v849_v41  ;;  %v742_v24 = vmul.f32 %v6367_v2, %v716_v62 }
 0x19c   : > { %v1584_v55 = vmul.f32 %v6369_v63, %v716_v62  ;;  %v2005_v12 = vmul.f32 %v6354_v49, %v716_v62  ;;  %1690 = vmatpush.msrb.mxu2 %v1659_v38  ;;  %v2043_v51 = vmul.f32 %v6407_v56, %v5209_v54  ;;  %v1005_v3 = vmul.f32 %v5200_v15, %v5076_v1  ;;  %v5310_v49 = vld [vmem:[%s5853_s1 + $0xf] ss:$0 sm:$0xff]  ;;  %v5317_v54 = vld [vmem:[%s5853_s1 + $0x15] ss:$0 sm:$0xff] }
 0x19d   : > { %v5303_v58 = vadd.f32 %v5016_v47, %v869_v5  ;;  %v1138_v60 = vadd.f32 %v1122_v45, %v1104_v42  ;;  %v1156_v40 = vmul.f32 %v6400_v59, %v5293_v18  ;;  %2111 = vmatpush.msrb.mxu3 %v2080_v39  ;;  %v1062_v2 = vadd.f32 %v1046_v32, %v1028_v21  ;;  %v5324_v21 = vld [vmem:[%s5853_s1 + $0x1e] ss:$0 sm:$0xff] }
 0x19e   : > { %6408 = vst [vmem:[#allocation52_spill] sm:$0xff] %v5310_v49  ;;  %v1080_v63 = vmul.f32 %v5310_v49, %v5104_v26  ;;  %v1475_v45 = vmul.f32 %v5317_v54, %v5076_v1  ;;  %v1896_v9 = vmul.f32 %v5324_v21, %v5076_v1  ;;  %v553_v30 = vadd.f32 %v537_v48, %v487_v23  ;;  %v6411_v1 = vld [vmem:[#allocation24_spill] sm:$0xff] }
 0x19f   : > { %v1172_v41 = vadd.f32 %v1156_v40, %v1138_v60  ;;  %v758_v26 = vadd.f32 %v742_v24, %v5162_v29  ;;  %v1600_v5 = vadd.f32 %v1584_v55, %v5165_v31  ;;  %v1114_v42 = vmul.f32 %v6368_v46, %v716_v62  ;;  %v6412_v62 = vld [vmem:[#allocation40_spill] sm:$0xff]  ;;  %v5374_v40 = vld [vmem:[%s5853_s1 + $0xb] ss:$0 sm:$0xff] }
 0x1a0   : > { %v2021_v38 = vadd.f32 %v2005_v12, %v5181_v44  ;;  %v5333_v32 = vadd.f32 %v2043_v51, %v5011_v4  ;;  %v816_v53 = vmul.f32 %v6401_v6, %v5293_v18  ;;  %v1021_v39 = vadd.f32 %v1005_v3, %v987_v34  ;;  %v6414_v44 = vld [vmem:[#allocation29_spill] sm:$0xff]  ;;  %6419 = vst [vmem:[#allocation54_spill] sm:$0xff] %v5374_v40 }
 0x1a1   : > { %v5338_v16 = vadd.f32 %v6410_v25, %v1339_v50  ;;  %v5341_v23 = vadd.f32 %v6411_v1, %v1760_v14  ;;  %v1188_v29 = vmax.f32 %v1172_v41, 0.0  ;;  %v1491_v48 = vadd.f32 %v1475_v45, %v1457_v11  ;;  %v6415_v4 = vld [vmem:[#allocation13_spill] sm:$0xff]  ;;  %v6417_v50 = vld [vmem:[#allocation42_spill] sm:$0xff]  ;;  %v5380_v41 = vpop.permute.xlu2 %375 }
 0x1a2   : > { %6409 = vst [vmem:[#allocation9_spill] sm:$0xff] %v5333_v32  ;;  %v1912_v31 = vadd.f32 %v1896_v9, %v1878_v20  ;;  %v1096_v24 = vadd.f32 %v1080_v63, %v1062_v2  ;;  %v5344_v55 = vadd.f32 %v816_v53, %v6412_v62  ;;  %v5348_v12 = vmul.f32 %v6415_v4, %v6414_v44  ;;  %v6416_v51 = vld [vmem:[#allocation53_spill] sm:$0xff]  ;;  %v636_v20 = vpop.permute.xlu0 %635  ;;  %v782_v63 = vpop.permute.xlu1 %781 }
 0x1a3   : > { %v5352_v34 = vmul.f32 %v6416_v51, %v6414_v44  ;;  %v5356_v3 = vmul.f32 %v6417_v50, %v6414_v44  ;;  %v5360_v11 = vmul.f32 %v5154_v57, %v6414_v44  ;;  %1266 = vmatmul.f32.gmra.mxu3 %v1188_v29  ;;  %v5365_v14 = vld [vmem:[%s5853_s1 + $0x2] ss:$0 sm:$0xff]  ;;  %v5378_v2 = vmul.f32 %v5374_v40, %v5204_v52  ;;  %v6423_v51 = vld [vmem:[#allocation10_spill] sm:$0xff] }
 0x1a4   : > { %6413 = vst [vmem:[#allocation34_spill] sm:$0xff] %v5344_v55  ;;  %v5369_v60 = vmul.f32 %v5365_v14, %v5204_v52  ;;  %v619_v45 = vadd.f32 %v603_v10, %v553_v30  ;;  %v1130_v9 = vadd.f32 %v1114_v42, %v1096_v24  ;;  %v1148_v53 = vmul.f32 %v6400_v59, %v782_v63  ;;  %v5389_v55 = vld [vmem:[%s5853_s1 + $0x6] ss:$0 sm:$0xff]  ;;  %v5397_v24 = vld [vmem:[%s5853_s1 + $0x18] ss:$0 sm:$0xff] }
 0x1a5   : > { %6418 = vst [vmem:[#allocation39_spill] sm:$0xff] %v5365_v14  ;;  %v808_v29 = vmul.f32 %v6401_v6, %v782_v63  ;;  %v1618_v62 = vmul.f32 %v4619_v27, %v782_v63  ;;  %v2039_v44 = vmul.f32 %v6407_v56, %v782_v63  ;;  %v669_v32 = vmul.f32 %v5389_v55, %v636_v20  ;;  %v6422_v14 = vld [vmem:[#allocation12_spill] sm:$0xff] }
 0x1a6   : > { %6420 = vst [vmem:[#allocation40_spill] sm:$0xff] %v5389_v55  ;;  %v1525_v40 = vadd.f32 %v1509_v35, %v1491_v48  ;;  %v1946_v10 = vadd.f32 %v1930_v36, %v1912_v31  ;;  %v1055_v30 = vadd.f32 %v5272_v8, %v1021_v39  ;;  %v1073_v42 = vmul.f32 %v5310_v49, %v636_v20  ;;  %v6427_v36 = vld [vmem:[#allocation41_spill] sm:$0xff]  ;;  %v6428_v48 = vld [vmem:[#allocation32_spill] sm:$0xff] }
 0x1a7   : > { %6421 = vst [vmem:[#allocation29_spill] sm:$0xff] %v5397_v24  ;;  %v1543_v63 = vmul.f32 %v5397_v24, %v636_v20  ;;  %v1964_v57 = vmul.f32 %v6422_v14, %v636_v20  ;;  %v1164_v50 = vadd.f32 %v1148_v53, %v1130_v9  ;;  %v340_v1 = vmul.f32 %v6423_v51, %v5217_v22  ;;  %v6429_v24 = vld [vmem:[#allocation8_spill] sm:$0xff] }
 0x1a8   : > { %v5403_v55 = vadd.f32 %v808_v29, %v758_v26  ;;  %v5405_v35 = vadd.f32 %v1618_v62, %v1600_v5  ;;  %v5407_v8 = vadd.f32 %v2039_v44, %v2021_v38  ;;  %v904_v39 = vmul.f32 %v6427_v36, %v5217_v22 }
 0x1a9   : > { %v1374_v31 = vmul.f32 %v6428_v48, %v5217_v22  ;;  %v1795_v49 = vmul.f32 %v6429_v24, %v5217_v22  ;;  %v1180_v20 = vmax.f32 %v1164_v50, 0.0  ;;  %v801_v14 = vmul.f32 %v6401_v6, %v5274_v19  ;;  %v5426_v6 = vld [vmem:[%s5853_s1 + $0x7] ss:$0 sm:$0xff] }
 0x1aa   : > { %6424 = vst [vmem:[#allocation12_spill] sm:$0xff] %v5403_v55  ;;  %v1611_v26 = vmul.f32 %v4619_v27, %v5274_v19  ;;  %v2032_v5 = vmul.f32 %v6407_v56, %v5274_v19  ;;  %v1141_v38 = vmul.f32 %v6400_v59, %v5274_v19  ;;  %v685_v9 = vadd.f32 %v669_v32, %v619_v45  ;;  %v702_v62 = vpop.permute.xlu0 %701  ;;  %v506_v22 = vpop.permute.xlu1 %505  ;;  %v5433_v59 = vld [vmem:[%s5853_s1 + $0x19] ss:$0 sm:$0xff]  ;;  %v5439_v19 = vld [vmem:[%s5853_s1 + $0x22] ss:$0 sm:$0xff] }
 0x1ab   : > { %6425 = vst [vmem:[#allocation10_spill] sm:$0xff] %v5405_v35  ;;  %v1559_v53 = vadd.f32 %v1543_v63, %v1525_v40  ;;  %v1980_v29 = vadd.f32 %v1964_v57, %v1946_v10  ;;  %1242 = vmatmul.f32.gmra.mxu1 %v1180_v20  ;;  %v1089_v44 = vadd.f32 %v1073_v42, %v1055_v30  ;;  %v5446_v35 = vpop.permute.xlu2 %703 }
 0x1ac   : > { %6426 = vst [vmem:[#allocation55_spill] sm:$0xff] %v5407_v8  ;;  %v735_v50 = vmul.f32 %v5426_v6, %v702_v62  ;;  %v1107_v8 = vmul.f32 %v6368_v46, %v702_v62  ;;  %v1577_v57 = vmul.f32 %v5433_v59, %v702_v62  ;;  %v1998_v32 = vmul.f32 %v5439_v19, %v702_v62 }
 0x1ad   : > { %6430 = vst [vmem:[#allocation41_spill] sm:$0xff] %v5426_v6  ;;  %v356_v40 = vadd.f32 %v340_v1, %v5291_v33  ;;  %v920_v45 = vadd.f32 %v904_v39, %v5303_v58  ;;  %v1390_v46 = vadd.f32 %v1374_v31, %v5338_v16  ;;  %v1811_v10 = vadd.f32 %v1795_v49, %v5341_v23  ;;  %v6431_v33 = vld [vmem:[#allocation11_spill] sm:$0xff] }
 0x1ae   : > { %v1123_v30 = vadd.f32 %v1107_v8, %v1089_v44  ;;  %v751_v42 = vadd.f32 %v735_v50, %v685_v9  ;;  %v1593_v63 = vadd.f32 %v1577_v57, %v1559_v53  ;;  %v2014_v20 = vadd.f32 %v1998_v32, %v1980_v29  ;;  %v2669_v53 = vld [vmem:[%s2840_s13 + $0x10] sm:$0xff] }
 0x1af   : > { %v1442_v55 = vmul.f32 %v5186_v17, %v5204_v52  ;;  %v1863_v62 = vmul.f32 %v5193_v28, %v5204_v52  ;;  %v274_v58 = vmul.f32 %v6405_v43, %v6431_v33  ;;  %v870_v16 = vmul.f32 %v4909_v7, %v6431_v33  ;;  %v6435_v33 = vld [vmem:[#allocation6_spill] sm:$0xff] }
 0x1b0   : > { %v1157_v49 = vadd.f32 %v1141_v38, %v1123_v30  ;;  %v817_v1 = vadd.f32 %v801_v14, %v751_v42  ;;  %v1627_v23 = vadd.f32 %v1611_v26, %v1593_v63  ;;  %v2048_v8 = vadd.f32 %v2032_v5, %v2014_v20  ;;  %v6432_v20 = vld [vmem:[#allocation24_spill] sm:$0xff] }
 0x1b1   : > { %v422_v39 = vadd.f32 %v5348_v12, %v356_v40  ;;  %v954_v31 = vadd.f32 %v5352_v34, %v920_v45  ;;  %v1424_v9 = vadd.f32 %v5356_v3, %v1390_v46  ;;  %v1340_v29 = vmul.f32 %v2669_v53, %v4930_v13 }
 0x1b2   : > { %v1845_v52 = vadd.f32 %v5360_v11, %v1811_v10  ;;  %v1173_v44 = vmax.f32 %v1157_v49, 0.0  ;;  %v833_v50 = vmax.f32 %v817_v1, 0.0  ;;  %v1643_v57 = vmax.f32 %v1627_v23, 0.0  ;;  %v5462_v32 = vpop.permute.xlu0 %309  ;;  %v572_v14 = vpop.permute.xlu1 %571  ;;  %v5508_v49 = vld [vmem:[%s5853_s1 + $0x10] ss:$0 sm:$0xff]  ;;  %v6437_v23 = vld [vmem:[#allocation36_spill] sm:$0xff] }
 0x1b3   : > { %v2064_v38 = vmax.f32 %v2048_v8, 0.0  ;;  %v5465_v26 = vadd.f32 %v5002_v61, %v274_v58  ;;  %v5468_v12 = vadd.f32 %v5016_v47, %v870_v16  ;;  %v1761_v34 = vmul.f32 %v2669_v53, %v4945_v0  ;;  %v312_v16 = vpop.permute.xlu2 %311  ;;  %6436 = vst [vmem:[#allocation32_spill] sm:$0xff] %v5508_v49  ;;  %v5527_v53 = vld [vmem:[%s5853_s1 + $0xe] ss:$0 sm:$0xff] }
 0x1b4   : > { %1221 = vmatmul.f32.vlgmr.msra.gmra.mxu0 %v1173_v44  ;;  %v488_v3 = vadd.f32 %v5369_v60, %v422_v39  ;;  %v5473_v11 = vadd.f32 %v6410_v25, %v1340_v29  ;;  %1286 = vmatmul.f32.vlgmr.msrb.gmra.mxu1 %v833_v50  ;;  %v1626_v5 = vmul.f32 %v4619_v27, %v5293_v18  ;;  %v6439_v39 = vld [vmem:[#allocation14_spill] sm:$0xff]  ;;  %v5539_v50 = vld [vmem:[%s5853_s1 + $0x20] ss:$0 sm:$0xff] }
 0x1b5   : > { %v2047_v40 = vmul.f32 %v6407_v56, %v5293_v18  ;;  %v988_v45 = vadd.f32 %v5378_v2, %v954_v31  ;;  %v1458_v46 = vadd.f32 %v1442_v55, %v1424_v9  ;;  %v1879_v10 = vadd.f32 %v1863_v62, %v1845_v52  ;;  %1691 = vmatmul.f32.vlgmr.msrb.gmra.mxu2 %v1643_v57  ;;  %v6433_v56 = vld [vmem:[#allocation53_spill] sm:$0xff]  ;;  %v6434_v2 = vld [vmem:[#allocation42_spill] sm:$0xff]  ;;  %v5533_v52 = vld [vmem:[%s5853_s1 + $0x17] ss:$0 sm:$0xff] }
 0x1b6   : > { %v5482_v30 = vmul.f32 %v6415_v4, %v5380_v41  ;;  %v538_v60 = vmul.f32 %v5286_v37, %v506_v22  ;;  %v1006_v42 = vmul.f32 %v5200_v15, %v506_v22  ;;  %v1476_v63 = vmul.f32 %v5317_v54, %v506_v22  ;;  %2112 = vmatmul.f32.vlgmr.msrb.gmra.mxu3 %v2064_v38 }
 0x1b7   : > { %v1897_v27 = vmul.f32 %v5324_v21, %v506_v22  ;;  %v5489_v18 = vadd.f32 %v6432_v20, %v1761_v34  ;;  %v5493_v55 = vmul.f32 %v6433_v56, %v5380_v41  ;;  %v5497_v62 = vmul.f32 %v6434_v2, %v5380_v41  ;;  %6441 = vst [vmem:[#allocation24_spill] sm:$0xff] %v5527_v53  ;;  %v5550_v56 = vld [vmem:[%s5853_s1 + $0x21] ss:$0 sm:$0xff] }
 0x1b8   : > { %v5501_v58 = vmul.f32 %v6435_v33, %v5380_v41  ;;  %v736_v22 = vmul.f32 %v5426_v6, %v5446_v35  ;;  %v1108_v1 = vmul.f32 %v5508_v49, %v5446_v35  ;;  %v5513_v8 = vadd.f32 %v1626_v5, %v6437_v23  ;;  %v5521_v41 = vld [vmem:[%s5853_s1 + $0x5] ss:$0 sm:$0xff]  ;;  %6442 = vst [vmem:[#allocation36_spill] sm:$0xff] %v5533_v52  ;;  %v6445_v49 = vld [vmem:[#allocation52_spill] sm:$0xff] }
 0x1b9   : > { %v5516_v31 = vadd.f32 %v2047_v40, %v6439_v39  ;;  %v604_v9 = vmul.f32 %v5521_v41, %v572_v14  ;;  %v1040_v29 = vmul.f32 %v5527_v53, %v572_v14  ;;  %v1510_v44 = vmul.f32 %v5533_v52, %v572_v14  ;;  %6443 = vst [vmem:[#allocation14_spill] sm:$0xff] %v5539_v50  ;;  %v6446_v33 = vld [vmem:[#allocation29_spill] sm:$0xff] }
 0x1ba   : > { %6438 = vst [vmem:[#allocation8_spill] sm:$0xff] %v5513_v8  ;;  %v1931_v57 = vmul.f32 %v5539_v50, %v572_v14  ;;  %v554_v38 = vadd.f32 %v538_v60, %v488_v3  ;;  %v1022_v34 = vadd.f32 %v1006_v42, %v988_v45  ;;  %v1492_v5 = vadd.f32 %v1476_v63, %v1458_v46  ;;  %v638_v23 = vpop.permute.xlu0 %637  ;;  %v5542_v39 = vpop.permute.xlu1 %441  ;;  %v6447_v3 = vld [vmem:[#allocation20_spill] sm:$0xff] }
 0x1bb   : > { %6440 = vst [vmem:[#allocation11_spill] sm:$0xff] %v5516_v31  ;;  %v1913_v40 = vadd.f32 %v1897_v27, %v1879_v10  ;;  %v6444_v31 = vld [vmem:[#allocation40_spill] sm:$0xff]  ;;  %v1074_v6 = vmul.f32 %v6445_v49, %v638_v23  ;;  %v1544_v2 = vmul.f32 %v6446_v33, %v638_v23  ;;  %v1965_v14 = vmul.f32 %v5550_v56, %v638_v23 }
 0x1bc   : > { %v670_v8 = vmul.f32 %v6444_v31, %v638_v23  ;;  %v275_v45 = vmul.f32 %v6405_v43, %v6447_v3  ;;  %v871_v46 = vmul.f32 %v4909_v7, %v6447_v3  ;;  %v1341_v10 = vmul.f32 %v4930_v13, %v6447_v3 }
 0x1bd   : > { %v1762_v60 = vmul.f32 %v4945_v0, %v6447_v3  ;;  %v620_v42 = vadd.f32 %v604_v9, %v554_v38  ;;  %v1056_v63 = vadd.f32 %v1040_v29, %v1022_v34  ;;  %v1526_v27 = vadd.f32 %v1510_v44, %v1492_v5 }
 0x1be   : > { %v1947_v4 = vadd.f32 %v1931_v57, %v1913_v40  ;;  %v341_v50 = vmul.f32 %v6423_v51, %v5462_v32  ;;  %v905_v23 = vmul.f32 %v6427_v36, %v5462_v32  ;;  %v1578_v43 = vmul.f32 %v5433_v59, %v5446_v35 }
 0x1bf   : > { %v1999_v7 = vmul.f32 %v5439_v19, %v5446_v35  ;;  %v1090_v13 = vadd.f32 %v1074_v6, %v1056_v63  ;;  %v686_v52 = vadd.f32 %v670_v8, %v620_v42  ;;  %v1560_v53 = vadd.f32 %v1544_v2, %v1526_v27  ;;  %v640_v2 = vpop.permute.xlu2 %639 }
 0x1c0   : > { %v1981_v0 = vadd.f32 %v1965_v14, %v1947_v4  ;;  %v292_v9 = vadd.f32 %v5002_v61, %v275_v45  ;;  %v888_v29 = vadd.f32 %v5016_v47, %v871_v46  ;;  %v1358_v44 = vadd.f32 %v6410_v25, %v1341_v10 }
 0x1c1   : > { %v1779_v57 = vadd.f32 %v6432_v20, %v1762_v60  ;;  %v1375_v38 = vmul.f32 %v6428_v48, %v5462_v32  ;;  %v1796_v34 = vmul.f32 %v6429_v24, %v5462_v32  ;;  %v342_v35 = vmul.f32 %v6423_v51, %v312_v16  ;;  %v5586_v51 = vld [vmem:[%s5853_s1 + $0x11] ss:$0 sm:$0xff]  ;;  %v5592_v32 = vld [vmem:[%s5853_s1 + $0x8] ss:$0 sm:$0xff] }
 0x1c2   : > { %v906_v6 = vmul.f32 %v6427_v36, %v312_v16  ;;  %v357_v4 = vadd.f32 %v341_v50, %v5465_v26  ;;  %v921_v61 = vadd.f32 %v905_v23, %v5468_v12  ;;  %v508_v47 = vpop.permute.xlu0 %507  ;;  %v1376_v25 = vmul.f32 %v6428_v48, %v312_v16  ;;  %v770_v8 = vpop.permute.xlu1 %769  ;;  %v5604_v12 = vld [vmem:[%s5853_s1 + $0x23] ss:$0 sm:$0xff] }
 0x1c3   : > { %v1797_v20 = vmul.f32 %v6429_v24, %v312_v16  ;;  %v1124_v5 = vadd.f32 %v1108_v1, %v1090_v13  ;;  %v752_v40 = vadd.f32 %v736_v22, %v686_v52  ;;  %v1594_v14 = vadd.f32 %v1578_v43, %v1560_v53  ;;  %v5598_v24 = vld [vmem:[%s5853_s1 + $0x1a] ss:$0 sm:$0xff] }
 0x1c4   : > { %v2015_v3 = vadd.f32 %v1999_v7, %v1981_v0  ;;  %v1142_v36 = vmul.f32 %v5586_v51, %v770_v8  ;;  %v802_v48 = vmul.f32 %v5592_v32, %v770_v8  ;;  %v1612_v26 = vmul.f32 %v5598_v24, %v770_v8  ;;  %v6449_v0 = vld [vmem:[#allocation54_spill] sm:$0xff] }
 0x1c5   : > { %v2033_v16 = vmul.f32 %v5604_v12, %v770_v8  ;;  %v1391_v22 = vadd.f32 %v1375_v38, %v5473_v11  ;;  %v1812_v1 = vadd.f32 %v1796_v34, %v5489_v18  ;;  %v5609_v53 = vadd.f32 %v342_v35, %v292_v9  ;;  %v6448_v18 = vld [vmem:[#allocation39_spill] sm:$0xff] }
 0x1c6   : > { %v5611_v52 = vadd.f32 %v906_v6, %v888_v29  ;;  %v1158_v50 = vadd.f32 %v1142_v36, %v1124_v5  ;;  %v818_v45 = vadd.f32 %v802_v48, %v752_v40  ;;  %v1628_v46 = vadd.f32 %v1612_v26, %v1594_v14  ;;  %v6451_v36 = vld [vmem:[#allocation36_spill] sm:$0xff]  ;;  %v6452_v26 = vld [vmem:[#allocation14_spill] sm:$0xff] }
 0x1c7   : > { %v2049_v10 = vadd.f32 %v2033_v16, %v2015_v3  ;;  %v423_v60 = vadd.f32 %v5482_v30, %v357_v4  ;;  %v955_v42 = vadd.f32 %v5493_v55, %v921_v61  ;;  %v1392_v63 = vadd.f32 %v1376_v25, %v1358_v44  ;;  %v510_v61 = vpop.permute.xlu2 %509  ;;  %v6450_v3 = vld [vmem:[#allocation24_spill] sm:$0xff] }
 0x1c8   : > { %v1813_v27 = vadd.f32 %v1797_v20, %v1779_v57  ;;  %v1174_v23 = vmax.f32 %v1158_v50, 0.0  ;;  %v834_v43 = vmax.f32 %v818_v45, 0.0  ;;  %v1644_v7 = vmax.f32 %v1628_v46, 0.0  ;;  %v6453_v46 = vld [vmem:[#allocation13_spill] sm:$0xff] }
 0x1c9   : > { %v2065_v11 = vmax.f32 %v2049_v10, 0.0  ;;  %v473_v13 = vmul.f32 %v6448_v18, %v5542_v39  ;;  %v973_v9 = vmul.f32 %v6449_v0, %v5542_v39  ;;  %v1443_v29 = vmul.f32 %v5186_v17, %v5542_v39 }
 0x1ca   : > { %v1864_v30 = vmul.f32 %v5193_v28, %v5542_v39  ;;  %v1425_v55 = vadd.f32 %v5497_v62, %v1391_v22  ;;  %v1846_v44 = vadd.f32 %v5501_v58, %v1812_v1  ;;  %v539_v57 = vmul.f32 %v5286_v37, %v508_v47  ;;  %1224 = vmatmul.f32.gmra.mxu0 %v1174_v23  ;;  %v574_v38 = vpop.permute.xlu0 %573  ;;  %v378_v4 = vpop.permute.xlu1 %377  ;;  %v6454_v23 = vld [vmem:[#allocation53_spill] sm:$0xff] }
 0x1cb   : > { %1289 = vmatmul.f32.gmra.mxu1 %v834_v43  ;;  %v1007_v34 = vmul.f32 %v5200_v15, %v508_v47  ;;  %v1477_v35 = vmul.f32 %v5317_v54, %v508_v47  ;;  %v1898_v6 = vmul.f32 %v5324_v21, %v508_v47  ;;  %1694 = vmatmul.f32.gmra.mxu2 %v1644_v7  ;;  %v6456_v43 = vld [vmem:[#allocation6_spill] sm:$0xff] }
 0x1cc   : > { %2115 = vmatmul.f32.gmra.mxu3 %v2065_v11  ;;  %v671_v39 = vmul.f32 %v6444_v31, %v640_v2  ;;  %v1075_v62 = vmul.f32 %v6445_v49, %v640_v2  ;;  %v1545_v58 = vmul.f32 %v6446_v33, %v640_v2  ;;  %v1966_v25 = vmul.f32 %v5550_v56, %v640_v2 }
 0x1cd   : > { %v489_v20 = vadd.f32 %v473_v13, %v423_v60  ;;  %v989_v8 = vadd.f32 %v973_v9, %v955_v42  ;;  %v1459_v5 = vadd.f32 %v1443_v29, %v1425_v55  ;;  %v1880_v40 = vadd.f32 %v1864_v30, %v1846_v44  ;;  %v6455_v60 = vld [vmem:[#allocation42_spill] sm:$0xff] }
 0x1ce   : > { %v605_v14 = vmul.f32 %v5521_v41, %v574_v38  ;;  %v1041_v47 = vmul.f32 %v6450_v3, %v574_v38  ;;  %v1511_v48 = vmul.f32 %v6451_v36, %v574_v38  ;;  %v1932_v16 = vmul.f32 %v6452_v26, %v574_v38 }
 0x1cf   : > { %v555_v22 = vadd.f32 %v539_v57, %v489_v20  ;;  %v1023_v1 = vadd.f32 %v1007_v34, %v989_v8  ;;  %v1493_v50 = vadd.f32 %v1477_v35, %v1459_v5  ;;  %v1914_v45 = vadd.f32 %v1898_v6, %v1880_v40  ;;  %v6458_v5 = vld [vmem:[#allocation32_spill] sm:$0xff] }
 0x1d0   : > { %v408_v10 = vmul.f32 %v6453_v46, %v378_v4  ;;  %v940_v2 = vmul.f32 %v6454_v23, %v378_v4  ;;  %v1410_v42 = vmul.f32 %v6455_v60, %v378_v4  ;;  %v1831_v7 = vmul.f32 %v6456_v43, %v378_v4 }
 0x1d1   : > { %v540_v11 = vmul.f32 %v5286_v37, %v510_v61  ;;  %v1008_v13 = vmul.f32 %v5200_v15, %v510_v61  ;;  %v1478_v9 = vmul.f32 %v5317_v54, %v510_v61  ;;  %v1899_v29 = vmul.f32 %v5324_v21, %v510_v61  ;;  %v6457_v61 = vld [vmem:[#allocation41_spill] sm:$0xff] }
 0x1d2   : > { %v621_v30 = vadd.f32 %v605_v14, %v555_v22  ;;  %v1057_v55 = vadd.f32 %v1041_v47, %v1023_v1  ;;  %v1527_v44 = vadd.f32 %v1511_v48, %v1493_v50  ;;  %v1948_v57 = vadd.f32 %v1932_v16, %v1914_v45  ;;  %v444_v38 = vpop.permute.xlu0 %443  ;;  %v706_v34 = vpop.permute.xlu1 %705 }
 0x1d3   : > { %v474_v35 = vmul.f32 %v6448_v18, %v444_v38  ;;  %v974_v6 = vmul.f32 %v6449_v0, %v444_v38  ;;  %v1444_v4 = vmul.f32 %v5186_v17, %v444_v38  ;;  %v1865_v37 = vmul.f32 %v5193_v28, %v444_v38  ;;  %v642_v47 = vpop.permute.xlu2 %641 }
 0x1d4   : > { %v424_v15 = vadd.f32 %v408_v10, %v5609_v53  ;;  %v956_v54 = vadd.f32 %v940_v2, %v5611_v52  ;;  %v1426_v20 = vadd.f32 %v1410_v42, %v1392_v63  ;;  %v1847_v21 = vadd.f32 %v1831_v7, %v1813_v27 }
 0x1d5   : > { %v737_v8 = vmul.f32 %v6457_v61, %v706_v34  ;;  %v1109_v40 = vmul.f32 %v6458_v5, %v706_v34  ;;  %v1579_v14 = vmul.f32 %v5433_v59, %v706_v34  ;;  %v2000_v18 = vmul.f32 %v5439_v19, %v706_v34 }
 0x1d6   : > { %v490_v0 = vadd.f32 %v474_v35, %v424_v15  ;;  %v990_v48 = vadd.f32 %v974_v6, %v956_v54  ;;  %v1460_v17 = vadd.f32 %v1444_v4, %v1426_v20  ;;  %v1881_v16 = vadd.f32 %v1865_v37, %v1847_v21 }
 0x1d7   : > { %v1091_v28 = vadd.f32 %v1075_v62, %v1057_v55  ;;  %v687_v22 = vadd.f32 %v671_v39, %v621_v30  ;;  %v1561_v53 = vadd.f32 %v1545_v58, %v1527_v44  ;;  %v1982_v1 = vadd.f32 %v1966_v25, %v1948_v57 }
 0x1d8   : > { %v672_v52 = vmul.f32 %v6444_v31, %v642_v47  ;;  %v1076_v63 = vmul.f32 %v6445_v49, %v642_v47  ;;  %v1546_v27 = vmul.f32 %v6446_v33, %v642_v47  ;;  %v1967_v50 = vmul.f32 %v5550_v56, %v642_v47 }
 0x1d9   : > { %v1125_v45 = vadd.f32 %v1109_v40, %v1091_v28  ;;  %v753_v46 = vadd.f32 %v737_v8, %v687_v22  ;;  %v1595_v10 = vadd.f32 %v1579_v14, %v1561_v53  ;;  %v2016_v23 = vadd.f32 %v2000_v18, %v1982_v1 }
 0x1da   : > { %v556_v2 = vadd.f32 %v540_v11, %v490_v0  ;;  %v1024_v60 = vadd.f32 %v1008_v13, %v990_v48  ;;  %v1494_v42 = vadd.f32 %v1478_v9, %v1460_v17  ;;  %v1915_v43 = vadd.f32 %v1899_v29, %v1881_v16  ;;  %v772_v62 = vpop.permute.xlu0 %771  ;;  %v576_v39 = vpop.permute.xlu1 %575 }
 0x1db   : > { %v1143_v58 = vmul.f32 %v5586_v51, %v772_v62  ;;  %v803_v31 = vmul.f32 %v5592_v32, %v772_v62  ;;  %v1613_v49 = vmul.f32 %v5598_v24, %v772_v62  ;;  %v2034_v33 = vmul.f32 %v5604_v12, %v772_v62  ;;  %v6467_v62 = vld [vmem:[#allocation7_spill] sm:$0xff] }
 0x1dc   : > { %v606_v56 = vmul.f32 %v5521_v41, %v576_v39  ;;  %v1042_v25 = vmul.f32 %v6450_v3, %v576_v39  ;;  %v1512_v7 = vmul.f32 %v6451_v36, %v576_v39  ;;  %v1933_v11 = vmul.f32 %v6452_v26, %v576_v39 }
 0x1dd   : > { %v1159_v13 = vadd.f32 %v1143_v58, %v1125_v45  ;;  %v819_v9 = vadd.f32 %v803_v31, %v753_v46  ;;  %v1629_v29 = vadd.f32 %v1613_v49, %v1595_v10  ;;  %v2050_v30 = vadd.f32 %v2034_v33, %v2016_v23  ;;  %v6463_v45 = vld [vmem:[#allocation49_spill] sm:$0xff]  ;;  %v6464_v10 = vld [vmem:[#allocation50_spill] sm:$0xff]  ;;  %v6468_v58 = vld [vmem:[#allocation12_spill] sm:$0xff] }
 0x1de   : > { %v622_v55 = vadd.f32 %v606_v56, %v556_v2  ;;  %v1058_v44 = vadd.f32 %v1042_v25, %v1024_v60  ;;  %v1528_v57 = vadd.f32 %v1512_v7, %v1494_v42  ;;  %v1949_v38 = vadd.f32 %v1933_v11, %v1915_v43  ;;  %v6465_v2 = vld [vmem:[#allocation16_spill] sm:$0xff]  ;;  %v6466_v42 = vld [vmem:[#allocation51_spill] sm:$0xff]  ;;  %v6469_v49 = vld [vmem:[#allocation10_spill] sm:$0xff] }
 0x1df   : > { %v1175_v34 = vmax.f32 %v1159_v13, 0.0  ;;  %v835_v35 = vmax.f32 %v819_v9, 0.0  ;;  %v1645_v6 = vmax.f32 %v1629_v29, 0.0  ;;  %v2066_v4 = vmax.f32 %v2050_v30, 0.0  ;;  %v6470_v56 = vld [vmem:[#allocation55_spill] sm:$0xff]  ;;  %v6471_v7 = vld [vmem:[#allocation21_spill] sm:$0xff] }
 0x1e0   : > { %v688_v37 = vadd.f32 %v672_v52, %v622_v55  ;;  %v1092_v41 = vadd.f32 %v1076_v63, %v1058_v44  ;;  %v1562_v3 = vadd.f32 %v1546_v27, %v1528_v57  ;;  %v1983_v36 = vadd.f32 %v1967_v50, %v1949_v38  ;;  %v6461_v52 = vld [vmem:[#allocation28_spill] sm:$0xff]  ;;  %v6462_v27 = vld [vmem:[#allocation33_spill] sm:$0xff]  ;;  %v6473_v29 = vld [vmem:[#allocation18_spill] sm:$0xff]  ;;  %v5690_v55 = vpop.f32.mrf.mxu1  ;;  %v5692_v44 = vpop.f32.mrf.mxu2 }
 0x1e1   : > { %1227 = vmatmul.f32.gmra.mxu0 %v1175_v34  ;;  %1292 = vmatmul.f32.gmra.mxu1 %v835_v35  ;;  %v2068_v63 = vmax.f32 %v6461_v52, 0.0  ;;  %v838_v50 = vmax.f32 %v6462_v27, 0.0  ;;  %v1648_v46 = vmax.f32 %v6463_v45, 0.0  ;;  %v2069_v23 = vmax.f32 %v6464_v10, 0.0  ;;  %v6472_v13 = vld [vmem:[#allocation17_spill] sm:$0xff]  ;;  %v6474_v57 = vld [vmem:[#allocation22_spill] sm:$0xff]  ;;  %v5695_v34 = vpop.f32.mrf.mxu3 }
 0x1e2   : > { %1697 = vmatmul.f32.gmra.mxu2 %v1645_v6  ;;  %2118 = vmatmul.f32.gmra.mxu3 %v2066_v4  ;;  %v708_v26 = vpop.permute.xlu0 %707  ;;  %v774_v8 = vpop.permute.xlu1 %773  ;;  %v839_v60 = vmax.f32 %v6465_v2, 0.0  ;;  %v1649_v43 = vmax.f32 %v6466_v42, 0.0  ;;  %v2070_v39 = vmax.f32 %v6467_v62, 0.0  ;;  %v840_v31 = vmax.f32 %v6468_v58, 0.0  ;;  %v6475_v35 = vld [vmem:[#allocation47_spill] sm:$0xff]  ;;  %v6485_v52 = vld [vmem:[#allocation37_spill] sm:$0xff] }
 0x1e3   : > { %v738_v15 = vmul.f32 %v6457_v61, %v708_v26  ;;  %v1110_v54 = vmul.f32 %v6458_v5, %v708_v26  ;;  %v1580_v20 = vmul.f32 %v5433_v59, %v708_v26  ;;  %v2001_v21 = vmul.f32 %v5439_v19, %v708_v26  ;;  %v6476_v4 = vld [vmem:[#allocation23_spill] sm:$0xff] }
 0x1e4   : > { %v804_v40 = vmul.f32 %v5592_v32, %v774_v8  ;;  %v1144_v14 = vmul.f32 %v5586_v51, %v774_v8  ;;  %v1614_v18 = vmul.f32 %v5598_v24, %v774_v8  ;;  %v2035_v47 = vmul.f32 %v5604_v12, %v774_v8  ;;  %v6459_v51 = vld [vmem:[#allocation26_spill] sm:$0xff]  ;;  %v6460_v24 = vld [vmem:[#allocation27_spill] sm:$0xff] }
 0x1e5   : > { %v1126_v0 = vadd.f32 %v1110_v54, %v1092_v41  ;;  %v754_v48 = vadd.f32 %v738_v15, %v688_v37  ;;  %v1596_v17 = vadd.f32 %v1580_v20, %v1562_v3  ;;  %v2017_v16 = vadd.f32 %v2001_v21, %v1983_v36  ;;  %v2216_v3 = vld [vmem:[%s5857_s5 + $0x18] sm:$0xff]  ;;  %v2215_v36 = vld [vmem:[%s5857_s5 + $0x10] sm:$0xff]  ;;  %v6477_v15 = vld [vmem:[#allocation30_spill] sm:$0xff] }
 0x1e6   : > { %v837_v32 = vmax.f32 %v6459_v51, 0.0  ;;  %v1647_v12 = vmax.f32 %v6460_v24, 0.0  ;;  %v1650_v33 = vmax.f32 %v6469_v49, 0.0  ;;  %v2071_v25 = vmax.f32 %v6470_v56, 0.0  ;;  %2278 = vmatpush.msrb.mxu0 %v2216_v3  ;;  %v6478_v21 = vld [vmem:[#allocation35_spill] sm:$0xff]  ;;  %v6484_v24 = vld [vmem:[#allocation25_spill] sm:$0xff] }
 0x1e7   : > { %v1160_v61 = vadd.f32 %v1144_v14, %v1126_v0  ;;  %v820_v28 = vadd.f32 %v804_v40, %v754_v48  ;;  %v1630_v5 = vadd.f32 %v1614_v18, %v1596_v17  ;;  %v2051_v22 = vadd.f32 %v2035_v47, %v2017_v16  ;;  %v6479_v40 = vld [vmem:[#allocation48_spill] sm:$0xff]  ;;  %v2214_v18 = vld [vmem:[%s5857_s5 + $0x8] sm:$0xff]  ;;  %v2213_v0 = vld [vmem:[%s5857_s5] sm:$0xff] }
 0x1e8   : > { %v841_v11 = vmax.f32 %v6471_v7, 0.0  ;;  %v1651_v9 = vmax.f32 %v6472_v13, 0.0  ;;  %v2072_v30 = vmax.f32 %v6473_v29, 0.0  ;;  %v842_v38 = vmax.f32 %v6474_v57, 0.0  ;;  %v5699_v41 = vpop.f32.mrf.mxu1  ;;  %v5707_v26 = vpop.f32.mrf.mxu2  ;;  %2279 = vmatpush.msrb.mxu0 %v2215_v36  ;;  %v6480_v17 = vld [vmem:[#allocation43_spill] sm:$0xff]  ;;  %v6489_v56 = vld [vmem:[#allocation45_spill] sm:$0xff] }
 0x1e9   : > { %v1176_v59 = vmax.f32 %v1160_v61, 0.0  ;;  %v836_v53 = vmax.f32 %v820_v28, 0.0  ;;  %v1646_v19 = vmax.f32 %v1630_v5, 0.0  ;;  %v2067_v1 = vmax.f32 %v2051_v22, 0.0  ;;  %v5710_v20 = vpop.f32.mrf.mxu3  ;;  %v6481_v28 = vld [vmem:[#allocation15_spill] sm:$0xff]  ;;  %v6482_v22 = vld [vmem:[#allocation9_spill] sm:$0xff] }
 0x1ea   : > { %v1652_v6 = vmax.f32 %v6475_v35, 0.0  ;;  %v2073_v37 = vmax.f32 %v6476_v4, 0.0  ;;  %v843_v54 = vmax.f32 %v6477_v15, 0.0  ;;  %v1653_v8 = vmax.f32 %v6478_v21, 0.0  ;;  %2280 = vmatpush.msrb.mxu0 %v2214_v18  ;;  %v6486_v2 = vld [vmem:[#allocation19_spill] sm:$0xff]  ;;  %v6491_v13 = vld [vmem:[#allocation46_spill] sm:$0xff] }
 0x1eb   : > { %1230 = vmatmul.f32.gmra.mxu0 %v1176_v59  ;;  %1295 = vmatmul.f32.gmra.mxu1 %v836_v53  ;;  %v2074_v14 = vmax.f32 %v6479_v40, 0.0  ;;  %v844_v16 = vmax.f32 %v6480_v17, 0.0  ;;  %v1654_v5 = vmax.f32 %v6481_v28, 0.0  ;;  %v2075_v59 = vmax.f32 %v6482_v22, 0.0  ;;  %v6490_v7 = vld [vmem:[#allocation31_spill] sm:$0xff]  ;;  %v6492_v29 = vld [vmem:[#allocation34_spill] sm:$0xff] }
 0x1ec   : > { %1700 = vmatmul.f32.gmra.mxu2 %v1646_v19  ;;  %2121 = vmatmul.f32.gmra.mxu3 %v2067_v1  ;;  %v6483_v1 = vld [vmem:[#allocation38_spill] sm:$0xff]  ;;  %v6493_v35 = vld [vmem:[#allocation8_spill] sm:$0xff]  ;;  %v6494_v4 = vld [vmem:[#allocation11_spill] sm:$0xff] }
 0x1ed   : > { %2281 = vmatpush.msrb.mxu0 %v2213_v0  ;;  %v845_v51 = vmax.f32 %v6483_v1, 0.0 }
 0x1f0   : > { %v5722_v48 = vpop.f32.mrf.mxu2 }
 0x1f1   : > { %v5725_v61 = vpop.f32.mrf.mxu3 }
 0x1f3   : > { %1298 = vmatmul.f32.gmra.mxu1 %v837_v32 }
 0x1f4   : > { %1703 = vmatmul.f32.gmra.mxu2 %v1647_v12  ;;  %2124 = vmatmul.f32.gmra.mxu3 %v2068_v63  ;;  %v1655_v12 = vmax.f32 %v6484_v24, 0.0  ;;  %v2076_v63 = vmax.f32 %v6485_v52, 0.0 }
 0x1fb   : > { %1301 = vmatmul.f32.gmra.mxu1 %v838_v50 }
 0x1fc   : > { %1706 = vmatmul.f32.gmra.mxu2 %v1648_v46  ;;  %2127 = vmatmul.f32.gmra.mxu3 %v2069_v23  ;;  %v5741_v23 = vld [vmem:[%s5856_s4] ss:$0 sm:$0xff] }
 0x1fe   : > { %v5717_v47 = vpop.f32.mrf.mxu1 }
 0x203   : > { %1304 = vmatmul.f32.gmra.mxu1 %v839_v60  ;;  %v846_v60 = vmax.f32 %v6486_v2, 0.0 }
 0x204   : > { %1709 = vmatmul.f32.gmra.mxu2 %v1649_v43  ;;  %2130 = vmatmul.f32.gmra.mxu3 %v2070_v39  ;;  %v6487_v43 = vld [vmem:[#allocation44_spill] sm:$0xff]  ;;  %v6488_v39 = vld [vmem:[#allocation5_spill] sm:$0xff] }
 0x205   : > { %v1656_v62 = vmax.f32 %v6487_v43, 0.0  ;;  %v2077_v58 = vmax.f32 %v6488_v39, 0.0 }
 0x20b   : > { %1307 = vmatmul.f32.gmra.mxu1 %v840_v31 }
 0x20c   : > { %1712 = vmatmul.f32.gmra.mxu2 %v1650_v33  ;;  %2133 = vmatmul.f32.gmra.mxu3 %v2071_v25  ;;  %v847_v25 = vmax.f32 %v6489_v56, 0.0 }
 0x213   : > { %1310 = vmatmul.f32.gmra.mxu1 %v841_v11  ;;  %v1657_v11 = vmax.f32 %v6490_v7, 0.0 }
 0x214   : > { %1715 = vmatmul.f32.gmra.mxu2 %v1651_v9  ;;  %2136 = vmatmul.f32.gmra.mxu3 %v2072_v30  ;;  %v2078_v9 = vmax.f32 %v6491_v13, 0.0  ;;  %v848_v30 = vmax.f32 %v6492_v29, 0.0 }
 0x21b   : > { %1313 = vmatmul.f32.gmra.mxu1 %v842_v38 }
 0x21c   : > { %1718 = vmatmul.f32.gmra.mxu2 %v1652_v6  ;;  %2139 = vmatmul.f32.gmra.mxu3 %v2073_v37  ;;  %v1658_v6 = vmax.f32 %v6493_v35, 0.0  ;;  %v2079_v37 = vmax.f32 %v6494_v4, 0.0 }
 0x21d   : > { %v5731_v19 = vpop.f32.mrf.mxu2 }
 0x223   : > { %1316 = vmatmul.f32.gmra.mxu1 %v843_v54 }
 0x224   : > { %1721 = vmatmul.f32.gmra.mxu2 %v1653_v8  ;;  %2142 = vmatmul.f32.gmra.mxu3 %v2074_v14 }
 0x226   : > { %v5734_v32 = vpop.f32.mrf.mxu3 }
 0x228   : > { %v5729_v53 = vpop.f32.mrf.mxu1 }
 0x22b   : > { %1319 = vmatmul.f32.gmra.mxu1 %v844_v16 }
 0x22c   : > { %1724 = vmatmul.f32.gmra.mxu2 %v1654_v5  ;;  %2145 = vmatmul.f32.gmra.mxu3 %v2075_v59 }
 0x231   : > { %v1222_v27 = vpop.f32.mrf.mxu0  ;;  %v1287_v50 = vpop.f32.mrf.mxu1 }
 0x232   : > { %v1288_v45 = vadd.f32 %v1287_v50, %v1222_v27 }
 0x233   : > { %1322 = vmatmul.f32.gmra.mxu1 %v845_v51 }
 0x234   : > { %1727 = vmatmul.f32.gmra.mxu2 %v1655_v12  ;;  %2148 = vmatmul.f32.gmra.mxu3 %v2076_v63 }
 0x238   : > { %v1692_v46 = vpop.f32.mrf.mxu2 }
 0x239   : > { %v1740_v10 = vadd.f32 %v1692_v46, %v1288_v45  ;;  %v2113_v42 = vpop.f32.mrf.mxu3 }
 0x23b   : > { %v2161_v31 = vadd.f32 %v2113_v42, %v1740_v10  ;;  %1325 = vmatmul.f32.gmra.mxu1 %v846_v60 }
 0x23c   : > { %1730 = vmatmul.f32.gmra.mxu2 %v1656_v62  ;;  %2151 = vmatmul.f32.gmra.mxu3 %v2077_v58 }
 0x23d   : > { %v2181_v49 = vadd.f32 %v5741_v23, %v2161_v31 }
 0x23f   : > { %v2197_v33 = vmax.f32 %v2181_v49, 0.0 }
 0x241   : > { %2432 = vmatmul.msk.f32.vlgmr.msrb.gmra.mxu0 %vm2217_vm0, %v2197_v33 }
 0x243   : > { %1328 = vmatmul.f32.gmra.mxu1 %v847_v25 }
 0x244   : > { %1733 = vmatmul.f32.gmra.mxu2 %v1657_v11  ;;  %2154 = vmatmul.f32.gmra.mxu3 %v2078_v9 }
 0x247   : > { %v1225_v57 = vpop.f32.mrf.mxu0 }
 0x248   : > { %v1290_v38 = vpop.f32.mrf.mxu1 }
 0x249   : > { %v1291_v3 = vadd.f32 %v1290_v38, %v1225_v57 }
 0x24b   : > { %1331 = vmatmul.f32.gmra.mxu1 %v848_v30 }
 0x24c   : > { %1736 = vmatmul.f32.gmra.mxu2 %v1658_v6  ;;  %2157 = vmatmul.f32.gmra.mxu3 %v2079_v37 }
 0x24e   : > { %v1695_v36 = vpop.f32.mrf.mxu2 }
 0x24f   : > { %v1741_v15 = vadd.f32 %v1695_v36, %v1291_v3  ;;  %v2116_v54 = vpop.f32.mrf.mxu3 }
 0x251   : > { %v2162_v21 = vadd.f32 %v2116_v54, %v1741_v15 }
 0x253   : > { %v2182_v8 = vadd.f32 %v5741_v23, %v2162_v21 }
 0x255   : > { %v2198_v40 = vmax.f32 %v2182_v8, 0.0 }
 0x257   : > { %2433 = vmatmul.msk.f32.gmra.mxu0 %vm2217_vm0, %v2198_v40 }
 0x25e   : > { %v1293_v14 = vpop.f32.mrf.mxu1  ;;  %v1228_v18 = vpop.f32.mrf.mxu0 }
 0x25f   : > { %v1294_v0 = vadd.f32 %v1293_v14, %v1228_v18 }
 0x265   : > { %v1698_v17 = vpop.f32.mrf.mxu2  ;;  %v2119_v28 = vpop.f32.mrf.mxu3 }
 0x266   : > { %v1742_v16 = vadd.f32 %v1698_v17, %v1294_v0 }
 0x268   : > { %v2163_v5 = vadd.f32 %v2119_v28, %v1742_v16  ;;  %v1296_v22 = vpop.f32.mrf.mxu1  ;;  %v1231_v1 = vpop.f32.mrf.mxu0 }
 0x269   : > { %v1297_v24 = vadd.f32 %v1296_v22, %v1231_v1 }
 0x26a   : > { %v2183_v59 = vadd.f32 %v5741_v23, %v2163_v5 }
 0x26c   : > { %v2199_v51 = vmax.f32 %v2183_v59, 0.0 }
 0x26e   : > { %2434 = vmatmul.msk.f32.gmra.mxu0 %vm2217_vm0, %v2199_v51 }
 0x26f   : > { %v1701_v12 = vpop.f32.mrf.mxu2  ;;  %v2122_v52 = vpop.f32.mrf.mxu3 }
 0x270   : > { %v1743_v63 = vadd.f32 %v1701_v12, %v1297_v24  ;;  %v1299_v27 = vpop.f32.mrf.mxu1 }
 0x271   : > { %v1300_v10 = vadd.f32 %v1299_v27, %v5690_v55 }
 0x272   : > { %v2164_v50 = vadd.f32 %v2122_v52, %v1743_v63 }
 0x274   : > { %v2184_v45 = vadd.f32 %v5741_v23, %v2164_v50 }
 0x276   : > { %v2200_v46 = vmax.f32 %v2184_v45, 0.0 }
 0x277   : > { %v1704_v2 = vpop.f32.mrf.mxu2  ;;  %v2125_v60 = vpop.f32.mrf.mxu3 }
 0x278   : > { %v1744_v42 = vadd.f32 %v1704_v2, %v1300_v10  ;;  %2435 = vmatmul.msk.f32.gmra.mxu0 %vm2217_vm0, %v2200_v46  ;;  %v1302_v43 = vpop.f32.mrf.mxu1 }
 0x279   : > { %v1303_v31 = vadd.f32 %v1302_v43, %v5699_v41 }
 0x27a   : > { %v2165_v62 = vadd.f32 %v2125_v60, %v1744_v42 }
 0x27c   : > { %v2185_v39 = vadd.f32 %v5741_v23, %v2165_v62 }
 0x27e   : > { %v2201_v58 = vmax.f32 %v2185_v39, 0.0 }
 0x27f   : > { %v1707_v49 = vpop.f32.mrf.mxu2  ;;  %v2128_v33 = vpop.f32.mrf.mxu3 }
 0x280   : > { %v1745_v56 = vadd.f32 %v1707_v49, %v1303_v31  ;;  %2436 = vmatmul.msk.f32.gmra.mxu0 %vm2217_vm0, %v2201_v58  ;;  %v1305_v25 = vpop.f32.mrf.mxu1 }
 0x281   : > { %v1306_v13 = vadd.f32 %v1305_v25, %v5717_v47 }
 0x282   : > { %v2166_v7 = vadd.f32 %v2128_v33, %v1745_v56 }
 0x284   : > { %v2186_v55 = vadd.f32 %v5741_v23, %v2166_v7 }
 0x286   : > { %v2202_v11 = vmax.f32 %v2186_v55, 0.0 }
 0x287   : > { %v1710_v9 = vpop.f32.mrf.mxu2  ;;  %v2131_v29 = vpop.f32.mrf.mxu3 }
 0x288   : > { %v1746_v30 = vadd.f32 %v1710_v9, %v1306_v13  ;;  %2437 = vmatmul.msk.f32.gmra.mxu0 %vm2217_vm0, %v2202_v11  ;;  %v1308_v57 = vpop.f32.mrf.mxu1 }
 0x289   : > { %v1309_v6 = vadd.f32 %v1308_v57, %v5729_v53 }
 0x28a   : > { %v2167_v38 = vadd.f32 %v2131_v29, %v1746_v30 }
 0x28c   : > { %v2187_v41 = vadd.f32 %v5741_v23, %v2167_v38 }
 0x28e   : > { %v2203_v35 = vmax.f32 %v2187_v41, 0.0 }
 0x28f   : > { %v1713_v4 = vpop.f32.mrf.mxu2  ;;  %v2134_v37 = vpop.f32.mrf.mxu3 }
 0x290   : > { %v1747_v3 = vadd.f32 %v1713_v4, %v1309_v6  ;;  %2438 = vmatmul.msk.f32.gmra.mxu0 %vm2217_vm0, %v2203_v35  ;;  %v1311_v36 = vpop.f32.mrf.mxu1 }
 0x291   : > { %v1312_v21 = vadd.f32 %v1311_v36, %v5692_v44 }
 0x292   : > { %v2168_v15 = vadd.f32 %v2134_v37, %v1747_v3 }
 0x294   : > { %v2188_v47 = vadd.f32 %v5741_v23, %v2168_v15 }
 0x296   : > { %v2204_v54 = vmax.f32 %v2188_v47, 0.0 }
 0x297   : > { %v1716_v8 = vpop.f32.mrf.mxu2  ;;  %v2137_v40 = vpop.f32.mrf.mxu3 }
 0x298   : > { %v1748_v14 = vadd.f32 %v1716_v8, %v1312_v21  ;;  %2439 = vmatmul.msk.f32.gmra.mxu0 %vm2217_vm0, %v2204_v54  ;;  %v1314_v18 = vpop.f32.mrf.mxu1 }
 0x299   : > { %v1315_v16 = vadd.f32 %v1314_v18, %v5707_v26 }
 0x29a   : > { %v2169_v0 = vadd.f32 %v2137_v40, %v1748_v14 }
 0x29c   : > { %v2189_v53 = vadd.f32 %v5741_v23, %v2169_v0 }
 0x29e   : > { %v2205_v17 = vmax.f32 %v2189_v53, 0.0 }
 0x29f   : > { %v1719_v28 = vpop.f32.mrf.mxu2  ;;  %v2140_v5 = vpop.f32.mrf.mxu3 }
 0x2a0   : > { %v1749_v22 = vadd.f32 %v1719_v28, %v1315_v16  ;;  %2440 = vmatmul.msk.f32.gmra.mxu0 %vm2217_vm0, %v2205_v17  ;;  %v1317_v59 = vpop.f32.mrf.mxu1 }
 0x2a1   : > { %v1318_v24 = vadd.f32 %v1317_v59, %v5722_v48 }
 0x2a2   : > { %v2170_v1 = vadd.f32 %v2140_v5, %v1749_v22 }
 0x2a4   : > { %v2190_v44 = vadd.f32 %v5741_v23, %v2170_v1 }
 0x2a6   : > { %v2206_v51 = vmax.f32 %v2190_v44, 0.0 }
 0x2a7   : > { %v1722_v12 = vpop.f32.mrf.mxu2  ;;  %v2143_v52 = vpop.f32.mrf.mxu3 }
 0x2a8   : > { %v1750_v63 = vadd.f32 %v1722_v12, %v1318_v24  ;;  %2441 = vmatmul.msk.f32.gmra.mxu0 %vm2217_vm0, %v2206_v51  ;;  %v1320_v27 = vpop.f32.mrf.mxu1 }
 0x2a9   : > { %v1321_v46 = vadd.f32 %v1320_v27, %v5731_v19 }
 0x2aa   : > { %v2171_v26 = vadd.f32 %v2143_v52, %v1750_v63 }
 0x2ac   : > { %v2191_v50 = vadd.f32 %v5741_v23, %v2171_v26 }
 0x2ae   : > { %v2207_v45 = vmax.f32 %v2191_v50, 0.0 }
 0x2af   : > { %v1725_v10 = vpop.f32.mrf.mxu2  ;;  %v2146_v2 = vpop.f32.mrf.mxu3 }
 0x2b0   : > { %v1751_v60 = vadd.f32 %v1725_v10, %v1321_v46  ;;  %2442 = vmatmul.msk.f32.gmra.mxu0 %vm2217_vm0, %v2207_v45  ;;  %v1323_v48 = vpop.f32.mrf.mxu1 }
 0x2b1   : > { %v1324_v39 = vadd.f32 %v1323_v48, %v5695_v34 }
 0x2b2   : > { %v2172_v42 = vadd.f32 %v2146_v2, %v1751_v60 }
 0x2b4   : > { %v2192_v43 = vadd.f32 %v5741_v23, %v2172_v42 }
 0x2b6   : > { %v2208_v62 = vmax.f32 %v2192_v43, 0.0 }
 0x2b7   : > { %v1728_v58 = vpop.f32.mrf.mxu2  ;;  %v2149_v31 = vpop.f32.mrf.mxu3 }
 0x2b8   : > { %v1752_v49 = vadd.f32 %v1728_v58, %v1324_v39  ;;  %2443 = vmatmul.msk.f32.gmra.mxu0 %vm2217_vm0, %v2208_v62  ;;  %v1326_v19 = vpop.f32.mrf.mxu1 }
 0x2b9   : > { %v1327_v7 = vadd.f32 %v1326_v19, %v5710_v20 }
 0x2ba   : > { %v2173_v33 = vadd.f32 %v2149_v31, %v1752_v49 }
 0x2bc   : > { %v2193_v56 = vadd.f32 %v5741_v23, %v2173_v33 }
 0x2be   : > { %v2209_v25 = vmax.f32 %v2193_v56, 0.0  ;;  %v2283_v55 = vpop.f32.mrf.mxu0 }
 0x2bf   : > { %2331 = vst [vmem:[%s5790_s9] sm:$0xff] %v2283_v55  ;;  %v1731_v34 = vpop.f32.mrf.mxu2  ;;  %v2152_v11 = vpop.f32.mrf.mxu3 }
 0x2c0   : > { %v1753_v13 = vadd.f32 %v1731_v34, %v1327_v7  ;;  %2444 = vmatmul.msk.f32.gmra.mxu0 %vm2217_vm0, %v2209_v25  ;;  %v1329_v9 = vpop.f32.mrf.mxu1 }
 0x2c1   : > { %v1330_v38 = vadd.f32 %v1329_v9, %v5725_v61 }
 0x2c2   : > { %v2174_v29 = vadd.f32 %v2152_v11, %v1753_v13 }
 0x2c4   : > { %v2194_v30 = vadd.f32 %v5741_v23, %v2174_v29 }
 0x2c6   : > { %v2210_v57 = vmax.f32 %v2194_v30, 0.0 }
 0x2c7   : > { %v1734_v41 = vpop.f32.mrf.mxu2  ;;  %v2155_v20 = vpop.f32.mrf.mxu3 }
 0x2c8   : > { %v1754_v35 = vadd.f32 %v1734_v41, %v1330_v38  ;;  %2445 = vmatmul.msk.f32.gmra.mxu0 %vm2217_vm0, %v2210_v57  ;;  %v1332_v4 = vpop.f32.mrf.mxu1 }
 0x2c9   : > { %v1333_v36 = vadd.f32 %v1332_v4, %v5734_v32 }
 0x2ca   : > { %v2175_v6 = vadd.f32 %v2155_v20, %v1754_v35 }
 0x2cc   : > { %v2195_v37 = vadd.f32 %v5741_v23, %v2175_v6 }
 0x2ce   : > { %v2211_v3 = vmax.f32 %v2195_v37, 0.0 }
 0x2cf   : > { %v1737_v15 = vpop.f32.mrf.mxu2  ;;  %v2158_v61 = vpop.f32.mrf.mxu3 }
 0x2d0   : > { %v1755_v47 = vadd.f32 %v1737_v15, %v1333_v36  ;;  %2446 = vmatmul.msk.f32.gmra.mxu0 %vm2217_vm0, %v2211_v3 }
 0x2d2   : > { %v2176_v54 = vadd.f32 %v2158_v61, %v1755_v47 }
 0x2d4   : > { %v2196_v21 = vadd.f32 %v5741_v23, %v2176_v54  ;;  %v2286_v8 = vpop.f32.mrf.mxu0 }
 0x2d5   : > { %2332 = vst [vmem:[%s5790_s9 + $0x8] sm:$0xff] %v2286_v8 }
 0x2d6   : > { %v2212_v40 = vmax.f32 %v2196_v21, 0.0 }
 0x2d8   : > { %2447 = vmatmul.msk.f32.gmra.mxu0 %vm2217_vm0, %v2212_v40 }
 0x2eb   : > { %v2289_v32 = vpop.f32.mrf.mxu0 }
 0x2ec   : > { %2333 = vst [vmem:[%s5790_s9 + $0x10] sm:$0xff] %v2289_v32 }
 0x2f5   : > { %v2292_v14 = vpop.f32.mrf.mxu0 }
 0x2f6   : > { %2334 = vst [vmem:[%s5790_s9 + $0x18] sm:$0xff] %v2292_v14 }
 0x2fd   : > { %v2295_v18 = vpop.f32.mrf.mxu0 }
 0x2fe   : > { %2335 = vst [vmem:[%s5790_s9 + $0x20] sm:$0xff] %v2295_v18 }
 0x305   : > { %v2298_v0 = vpop.f32.mrf.mxu0 }
 0x306   : > { %2336 = vst [vmem:[%s5790_s9 + $0x28] sm:$0xff] %v2298_v0 }
 0x30d   : > { %v2301_v23 = vpop.f32.mrf.mxu0 }
 0x30e   : > { %2337 = vst [vmem:[%s5790_s9 + $0x30] sm:$0xff] %v2301_v23 }
 0x315   : > { %v2304_v53 = vpop.f32.mrf.mxu0 }
 0x316   : > { %2338 = vst [vmem:[%s5790_s9 + $0x38] sm:$0xff] %v2304_v53 }
 0x31d   : > { %v2307_v17 = vpop.f32.mrf.mxu0 }
 0x31e   : > { %2339 = vst [vmem:[%s5790_s9 + $0x40] sm:$0xff] %v2307_v17 }
 0x325   : > { %v2310_v16 = vpop.f32.mrf.mxu0 }
 0x326   : > { %2340 = vst [vmem:[%s5790_s9 + $0x48] sm:$0xff] %v2310_v16 }
 0x32d   : > { %v2313_v28 = vpop.f32.mrf.mxu0 }
 0x32e   : > { %2341 = vst [vmem:[%s5790_s9 + $0x50] sm:$0xff] %v2313_v28 }
 0x335   : > { %v2316_v5 = vpop.f32.mrf.mxu0 }
 0x336   : > { %2342 = vst [vmem:[%s5790_s9 + $0x58] sm:$0xff] %v2316_v5 }
 0x33d   : > { %v2319_v22 = vpop.f32.mrf.mxu0 }
 0x33e   : > { %2343 = vst [vmem:[%s5790_s9 + $0x60] sm:$0xff] %v2319_v22 }
 0x345   : > { %v2322_v59 = vpop.f32.mrf.mxu0 }
 0x346   : > { %2344 = vst [vmem:[%s5790_s9 + $0x68] sm:$0xff] %v2322_v59 }
 0x34d   : > { %v2325_v1 = vpop.f32.mrf.mxu0 }
 0x34e   : > { %2345 = vst [vmem:[%s5790_s9 + $0x70] sm:$0xff] %v2325_v1 }
 0x355   : > { %v2328_v44 = vpop.f32.mrf.mxu0 }
 0x356   : > { %2346 = vst [vmem:[%s5790_s9 + $0x78] sm:$0xff] %v2328_v44 }
 0x357   : > { %2707 = shalt.err (!%p2704_p3)
}
 0x358   : > { %s2752_s18 = smov 128  }
 0x359   : > { %2502 = dma.vmem_to_hbm [thread:$0]  (%p2826_p5), %s2361_s10, 2048, %s2363_s17, %s2348_s26, %s2752_s18, %s2752_s18, %s6172_s12  }
 0x35a PF: > { %p2508_p4 = scmp.ge.s32.totalorder %s2742_s24, 2  ;;  %s2377_s9 = sand.u32 1, %s2730_s21  }
 0x35b   : > { %s2378_s28 = scalar_lea.sflag [#allocation3], %s2377_s9 }
 0x35c   : > { %p2505_p7 = pnand %p2508_p4, %p2830_p6 }
 0x35e   : > { %p2506_p8 = pneg %p2505_p7 }
 0x360   : > { %2725 = dma.done.wait (%p2506_p8), %s2378_s28, 2048  }
 0x361   : > { %2727 = vsyncadd (%p2506_p8), %s2378_s28, 4294965248  ;;  %p16_p9 = scmp.ge.s32.totalorder %s2813_s27, 6   ;;  %s6495_s21 = smov %s2734_s22 }
 0x362   : > { %s6496_s22 = smov %s2738_s23  ;;  %s6497_s23 = smov %s2824_s30 }
 0x363   : > { %s6498_s24 = smov %s2813_s27  ;;  %18 = sbr.rel (!%p16_p9) target bundleno = 3 (0x3), region = 79 }
 0x368   :  { %2384 = vsyncpa [#allocation3], 1 }
 0x369   :  { %2386 = vsyncpa [#allocation3 + $0x1], 1 }

</bundles_post_ra>
